<compile_context>
chip_gen: v7x
topology: tpu7x:2x2x1
jax: 0.10.0
libtpu: 0.0.40
codegen_flags: <defaults>
</compile_context>

<pallas_src>
import jax
import jax.numpy as jnp
from jax import lax
from jax.experimental import pallas as pl
from jax.experimental.pallas import tpu as pltpu


DEFAULT_BLOCK_IMAGES = 16            # images per grid step (raise to 32-64 on v5e/v6e)
DEFAULT_VMEM_LIMIT = 56 * 1024 * 1024


# ----------------------------------------------------------------------------
# in-kernel helpers (traced, static shapes)
# ----------------------------------------------------------------------------
def _prelu(x, a):
    return jnp.where(x >= 0.0, x, a * x)


def _window_max(x, axis, k):
    """Sliding max of width k (stride 1) along `axis` via shifted maxima."""
    n = x.shape[axis] - k + 1
    out = lax.slice_in_dim(x, 0, n, axis=axis)
    for d in range(1, k):
        out = jnp.maximum(out, lax.slice_in_dim(x, d, d + n, axis=axis))
    return out


def _select_stride2(x, axis, num):
    """Take indices 0, 2, ..., 2*(num-1) along `axis` (static slices + concat)."""
    pieces = [lax.slice_in_dim(x, 2 * q, 2 * q + 1, axis=axis) for q in range(num)]
    return jnp.concatenate(pieces, axis=axis)


def _maxpool3x3s2(x, oh, ow):
    """MaxPool2d(kernel=3, stride=2) on an NHWC block; only first oh/ow outputs."""
    t = _window_max(x, 1, 3)          # H direction: untiled axis, cheap
    t = _select_stride2(t, 1, oh)
    t = _window_max(t, 2, 3)          # W direction: sublane axis
    t = _select_stride2(t, 2, ow)
    return t


# ----------------------------------------------------------------------------
# the fused RNet kernel (one block of images per grid step)
# ----------------------------------------------------------------------------
def _rnet_kernel(alpha_ref, xcol_ref, w1_ref, b1_ref, w2_ref, b2_ref,
                 w3_ref, b3_ref, fcw_ref, fcb_ref, hw_ref, hb_ref, out_ref):
    f32, bf16 = jnp.float32, jnp.bfloat16
    b = xcol_ref.shape[0]
    a1, a2, a3, afc = (alpha_ref[0], alpha_ref[1], alpha_ref[2], alpha_ref[3])

    # ---- stage 1: Conv(3->28, 3x3, pad=1) as ONE matmul on prebuilt patches
    lhs1 = xcol_ref[...].reshape(b * 576, 27)                         # bf16
    c1 = jnp.dot(lhs1, w1_ref[...], preferred_element_type=f32) + b1_ref[...]
    c1 = c1.reshape(b, 24, 24, 28)                                    # NHWC f32

    # MaxPool(3,2) -> PReLU; pad W 11->18 (min multiple of 8 for conv2 slabs)
    p1 = _prelu(_maxpool3x3s2(c1, 11, 11), a1)                        # (b,11,11,28)
    p1 = jnp.concatenate([p1.astype(bf16),
                          jnp.zeros((b, 11, 7, 28), bf16)], axis=2)   # (b,11,18,28)

    # ---- stage 2: Conv(28->48, 3x3): one K=84 matmul per kernel row
    c2 = None
    for i in range(3):
        g = jnp.concatenate([p1[:, i:i + 9, j:j + 16, :] for j in range(3)],
                            axis=-1)                                  # (b,9,16,84)
        d = jnp.dot(g.reshape(b * 144, 84), w2_ref[i],
                    preferred_element_type=f32)
        c2 = d if c2 is None else c2 + d
    c2 = (c2 + b2_ref[...]).reshape(b, 9, 16, 48)                     # cols>=9 unused

    p2 = _prelu(_maxpool3x3s2(c2, 4, 4), a2)                          # (b,4,4,48)
    p2 = jnp.concatenate([p2.astype(bf16),
                          jnp.zeros((b, 4, 5, 48), bf16)], axis=2)    # (b,4,9,48)

    # ---- stage 3: Conv(48->64, 2x2): one K=96 matmul per kernel row
    c3 = None
    for i in range(2):
        g = jnp.concatenate([p2[:, i:i + 3, j:j + 8, :] for j in range(2)],
                            axis=-1)                                  # (b,3,8,96)
        d = jnp.dot(g.reshape(b * 24, 96), w3_ref[i],
                    preferred_element_type=f32)
        c3 = d if c3 is None else c3 + d
    p3 = _prelu(c3 + b3_ref[...], a3).astype(bf16).reshape(b, 3, 8, 64)

    # ---- fc1 (576 -> 128): gather the valid 3x3 window, ONE K=576 matmul
    pieces = []
    for h in range(3):
        row = p3[:, h]                                                # (b, 8, 64)
        for w in range(3):
            pieces.append(jnp.sum(row[:, w:w + 1, :], axis=1))        # (b, 64)
    flat = jnp.concatenate(pieces, axis=-1)                           # (b, 576) bf16
    feat = _prelu(jnp.dot(flat, fcw_ref[...], preferred_element_type=f32)
                  + fcb_ref[...], afc)                                # (b, 128) f32

    # ---- heads: [cls | reg | 0 0 0] in one (128, 8) matmul, sigmoid on col 0
    z = jnp.dot(feat.astype(bf16), hw_ref[...],
                preferred_element_type=f32) + hb_ref[...]             # (b, 8)
    col = lax.broadcasted_iota(jnp.int32, z.shape, 1)
    out_ref[...] = jnp.where(col == 0, jax.nn.sigmoid(z), z)


# ----------------------------------------------------------------------------
# parameters: torch-layout init + one-time kernel-layout preparation
# ----------------------------------------------------------------------------
def init_params(key):
    ks = jax.random.split(key, 12)

    def w_init(k, shape, fan_in):
        return (jax.random.normal(k, shape, jnp.float32) / jnp.sqrt(fan_in)).astype(jnp.float32)

    return {
        "conv1_w": w_init(ks[0], (28, 3, 3, 3), 3 * 3 * 3),
        "conv1_b": w_init(ks[1], (28,), 3 * 3 * 3),
        "conv2_w": w_init(ks[2], (48, 28, 3, 3), 28 * 3 * 3),
        "conv2_b": w_init(ks[3], (48,), 28 * 3 * 3),
        "conv3_w": w_init(ks[4], (64, 48, 2, 2), 48 * 2 * 2),
        "conv3_b": w_init(ks[5], (64,), 48 * 2 * 2),
        "fc1_w":   w_init(ks[6], (128, 576), 576),
        "fc1_b":   w_init(ks[7], (128,), 576),
        "cls_w":   w_init(ks[8], (1, 128), 128),
        "cls_b":   w_init(ks[9], (1,), 128),
        "reg_w":   w_init(ks[10], (4, 128), 128),
        "reg_b":   w_init(ks[11], (4,), 128),
        # nn.PReLU() default: one shared parameter, init 0.25
        "prelu1":  jnp.float32(0.25),
        "prelu2":  jnp.float32(0.25),
        "prelu3":  jnp.float32(0.25),
        "prelu_fc": jnp.float32(0.25),
    }


def prepare_params(p):
    """One-time re-layout of torch-layout params for the fused kernel (bf16)."""
    def conv_rows(w):  # (Cout, Cin, kh, kw) -> (kh, kw*Cin, Cout), K order (kj, cin)
        cout, cin, kh, kw = w.shape
        return (jnp.transpose(w, (2, 3, 1, 0))
                .reshape(kh, kw * cin, cout).astype(jnp.bfloat16))

    def bias(bv):
        return bv.reshape(1, -1).astype(jnp.float32)

    w1 = conv_rows(p["conv1_w"]).reshape(27, 28)       # conv1: all 9 taps, K=27
    w2 = conv_rows(p["conv2_w"])                       # (3, 84, 48)
    w3 = conv_rows(p["conv3_w"])                       # (2, 96, 64)

    # fc1 columns are in torch (c, h, w) order; the kernel gathers (h, w, c)
    fcw = (p["fc1_w"].T.reshape(64, 3, 3, 128)
           .transpose(1, 2, 0, 3).reshape(576, 128).astype(jnp.bfloat16))
    hw = jnp.concatenate([p["cls_w"].T, p["reg_w"].T,
                          jnp.zeros((128, 3), jnp.float32)],
                         axis=1).astype(jnp.bfloat16)                     # (128, 8)
    hb = jnp.concatenate([p["cls_b"], p["reg_b"],
                          jnp.zeros((3,), jnp.float32)]).reshape(1, 8).astype(jnp.float32)
    alphas = jnp.stack([p["prelu1"], p["prelu2"], p["prelu3"],
                        p["prelu_fc"]]).astype(jnp.float32)
    return {"w1": w1, "b1": bias(p["conv1_b"]),
            "w2": w2, "b2": bias(p["conv2_b"]),
            "w3": w3, "b3": bias(p["conv3_b"]),
            "fcw": fcw, "fcb": bias(p["fc1_b"]),
            "hw": hw, "hb": hb, "alphas": alphas}


# ----------------------------------------------------------------------------
# forward pass (single fused pallas_call, grid over batch blocks)
# ----------------------------------------------------------------------------
def _pick_block(n, max_block):
    """Images per grid step: block==batch for tiny batches, otherwise a
    multiple of 8 chosen so there are >=2 grid steps (both v7x TCs engage)."""
    max_block = max(8, 8 * (max_block // 8))
    if n <= 8:
        return n
    half_rounded = 8 * pl.cdiv(pl.cdiv(n, 2), 8)
    return max(8, min(max_block, half_rounded))


def _rnet_forward_impl(kp, x, block_images=DEFAULT_BLOCK_IMAGES,
                       vmem_limit_bytes=DEFAULT_VMEM_LIMIT):
    n = x.shape[0]
    bimg = _pick_block(n, block_images)
    npad = pl.cdiv(n, bimg) * bimg

    # NCHW -> NHWC, conv1 spatial pad, batch pad to a whole number of blocks.
    xh = jnp.transpose(x, (0, 2, 3, 1)).astype(jnp.float32)
    xh = jnp.pad(xh, ((0, npad - n), (1, 1), (1, 1), (0, 0)))         # (npad,26,26,3)
    # conv1 patches built once on the XLA side -> lane-dense kernel input and a
    # single K=27 conv1 matmul (Cin=3 would otherwise be ~50x lane-padded).
    xcol = jnp.concatenate([xh[:, i:i + 24, j:j + 24, :]
                            for i in range(3) for j in range(3)], axis=-1)
    xcol = xcol.reshape(npad, 576, 27).astype(jnp.bfloat16)

    flops_per_img = 2 * (576 * 27 * 28 + 3 * 144 * 84 * 48
                         + 2 * 24 * 96 * 64 + 576 * 128 + 128 * 8)
    weight_bytes = sum(int(v.size) * v.dtype.itemsize for v in kp.values())
    cost = pl.CostEstimate(
        flops=flops_per_img * npad,
        transcendentals=8 * npad,
        bytes_accessed=int(xcol.size) * 2 + weight_bytes + npad * 8 * 4)

    def full(arr):
        nd = arr.ndim
        return pl.BlockSpec(arr.shape, lambda i: (0,) * nd)

    out = pl.pallas_call(
        _rnet_kernel,
        out_shape=jax.ShapeDtypeStruct((npad, 8), jnp.float32),
        grid=(npad // bimg,),
        in_specs=[
            pl.BlockSpec(memory_space=pltpu.MemorySpace.SMEM),         # PReLU alphas
            pl.BlockSpec((bimg, 576, 27), lambda i: (i, 0, 0)),        # conv1 patches
            full(kp["w1"]), full(kp["b1"]),
            full(kp["w2"]), full(kp["b2"]),
            full(kp["w3"]), full(kp["b3"]),
            full(kp["fcw"]), full(kp["fcb"]),
            full(kp["hw"]), full(kp["hb"]),
        ],
        out_specs=pl.BlockSpec((bimg, 8), lambda i: (i, 0)),
        compiler_params=pltpu.CompilerParams(
            dimension_semantics=("parallel",),
            vmem_limit_bytes=vmem_limit_bytes),
        cost_estimate=cost,
    )(kp["alphas"], xcol, kp["w1"], kp["b1"], kp["w2"], kp["b2"],
      kp["w3"], kp["b3"], kp["fcw"], kp["fcb"], kp["hw"], kp["hb"])
    return out[:n, 0:1], out[:n, 1:5]


def make_rnet_forward(block_images=DEFAULT_BLOCK_IMAGES,
                      vmem_limit_bytes=DEFAULT_VMEM_LIMIT):
    """Tunable builder: bump block_images (and the VMEM limit) on 128 MiB chips."""
    return jax.jit(lambda kp, x: _rnet_forward_impl(kp, x, block_images,
                                                    vmem_limit_bytes))


rnet_forward = make_rnet_forward()


# ----------------------------------------------------------------------------
# plain-JAX reference (same math, matching bf16 matmul operand precision)
# ----------------------------------------------------------------------------
@jax.jit
def rnet_reference(p, x):
    bf16, f32 = jnp.bfloat16, jnp.float32

    def conv(h, w, b, pad):
        y = lax.conv_general_dilated(
            h.astype(bf16), w.astype(bf16), (1, 1), [(pad, pad), (pad, pad)],
            dimension_numbers=("NCHW", "OIHW", "NCHW"),
            preferred_element_type=f32)
        return y + b.reshape(1, -1, 1, 1)

    def maxpool(h):
        return lax.reduce_window(h, -jnp.inf, lax.max,
                                 (1, 1, 3, 3), (1, 1, 2, 2), "VALID")

    def prelu(h, a):
        return jnp.where(h >= 0, h, a * h)

    h = prelu(maxpool(conv(x, p["conv1_w"], p["conv1_b"], 1)), p["prelu1"])
    h = prelu(maxpool(conv(h, p["conv2_w"], p["conv2_b"], 0)), p["prelu2"])
    h = prelu(conv(h, p["conv3_w"], p["conv3_b"], 0), p["prelu3"])
    flat = h.reshape(x.shape[0], 576)
    feat = prelu(jnp.dot(flat.astype(bf16), p["fc1_w"].T.astype(bf16),
                         preferred_element_type=f32) + p["fc1_b"], p["prelu_fc"])
    cls = jax.nn.sigmoid(jnp.dot(feat.astype(bf16), p["cls_w"].T.astype(bf16),
                                 preferred_element_type=f32) + p["cls_b"])
    reg = jnp.dot(feat.astype(bf16), p["reg_w"].T.astype(bf16),
                  preferred_element_type=f32) + p["reg_b"]
    return cls, reg


if __name__ == "__main__":
    # RNet's forward hard-codes reshape(-1, 576), which forces 24x24 inputs.
    torch_params = init_params(jax.random.PRNGKey(1))
    kparams = prepare_params(torch_params)          # one-time weight re-layout (bf16)

    for batch in (2, 20):                           # 20 -> two grid steps (megacore path)
        x = jax.random.normal(jax.random.PRNGKey(0), (batch, 3, 24, 24), jnp.float32)

        cls, reg = rnet_forward(kparams, x)
        jax.block_until_ready((cls, reg))

        cls_ref, reg_ref = rnet_reference(torch_params, x)
        jax.block_until_ready((cls_ref, reg_ref))

        assert cls.shape == (batch, 1) and reg.shape == (batch, 4)
        assert bool(jnp.all(jnp.isfinite(cls))) and bool(jnp.all(jnp.isfinite(reg)))
        assert bool(jnp.all((cls >= 0.0) & (cls <= 1.0)))
        assert bool(jnp.allclose(cls, cls_ref, atol=2e-2, rtol=2e-2))
        assert bool(jnp.allclose(reg, reg_ref, atol=2e-2, rtol=2e-2))

    print("KERNEL_OK")
</pallas_src>

<mosaic_0001>
module attributes {stable_mosaic.version = 11 : i64} {
  func.func @_rnet_kernel(%arg0: i32, %arg1: memref<4xf32, #tpu.memory_space<smem>>, %arg2: memref<2x576x27xbf16, #tpu.memory_space<vmem>>, %arg3: memref<27x28xbf16, #tpu.memory_space<vmem>>, %arg4: memref<1x28xf32, #tpu.memory_space<vmem>>, %arg5: memref<3x84x48xbf16, #tpu.memory_space<vmem>>, %arg6: memref<1x48xf32, #tpu.memory_space<vmem>>, %arg7: memref<2x96x64xbf16, #tpu.memory_space<vmem>>, %arg8: memref<1x64xf32, #tpu.memory_space<vmem>>, %arg9: memref<576x128xbf16, #tpu.memory_space<vmem>>, %arg10: memref<1x128xf32, #tpu.memory_space<vmem>>, %arg11: memref<128x8xbf16, #tpu.memory_space<vmem>>, %arg12: memref<1x8xf32, #tpu.memory_space<vmem>>, %arg13: memref<2x8xf32, #tpu.memory_space<vmem>>) attributes {dimension_semantics = [#tpu.dimension_semantics<parallel>], iteration_bounds = array<i64: 1>, scalar_prefetch = 0 : i64, scratch_operands = 0 : i64, tpu.core_type = #tpu.core_type<tc>, window_params = [{transform_indices = @transform_0, window_bounds = array<i64: 4>}, {transform_indices = @transform_1, window_bounds = array<i64: 2, 576, 27>}, {pipeline_mode = #tpu.pipeline_mode<synchronous>, transform_indices = @transform_2, window_bounds = array<i64: 27, 28>}, {pipeline_mode = #tpu.pipeline_mode<synchronous>, transform_indices = @transform_3, window_bounds = array<i64: 1, 28>}, {pipeline_mode = #tpu.pipeline_mode<synchronous>, transform_indices = @transform_4, window_bounds = array<i64: 3, 84, 48>}, {pipeline_mode = #tpu.pipeline_mode<synchronous>, transform_indices = @transform_5, window_bounds = array<i64: 1, 48>}, {pipeline_mode = #tpu.pipeline_mode<synchronous>, transform_indices = @transform_6, window_bounds = array<i64: 2, 96, 64>}, {pipeline_mode = #tpu.pipeline_mode<synchronous>, transform_indices = @transform_7, window_bounds = array<i64: 1, 64>}, {pipeline_mode = #tpu.pipeline_mode<synchronous>, transform_indices = @transform_8, window_bounds = array<i64: 576, 128>}, {pipeline_mode = #tpu.pipeline_mode<synchronous>, transform_indices = @transform_9, window_bounds = array<i64: 1, 128>}, {pipeline_mode = #tpu.pipeline_mode<synchronous>, transform_indices = @transform_10, window_bounds = array<i64: 128, 8>}, {pipeline_mode = #tpu.pipeline_mode<synchronous>, transform_indices = @transform_11, window_bounds = array<i64: 1, 8>}, {transform_indices = @transform_12, window_bounds = array<i64: 2, 8>}]} {
    %c0 = arith.constant 0 : index
    %0 = memref.load %arg1[%c0] : memref<4xf32, #tpu.memory_space<smem>>
    %c1 = arith.constant 1 : index
    %1 = memref.load %arg1[%c1] : memref<4xf32, #tpu.memory_space<smem>>
    %c2 = arith.constant 2 : index
    %2 = memref.load %arg1[%c2] : memref<4xf32, #tpu.memory_space<smem>>
    %c3 = arith.constant 3 : index
    %3 = memref.load %arg1[%c3] : memref<4xf32, #tpu.memory_space<smem>>
    %c0_0 = arith.constant 0 : index
    %c0_1 = arith.constant 0 : index
    %c0_2 = arith.constant 0 : index
    %4 = vector.load %arg2[%c0_0, %c0_1, %c0_2] : memref<2x576x27xbf16, #tpu.memory_space<vmem>>, vector<2x576x27xbf16>
    %5 = vector.shape_cast %4 : vector<2x576x27xbf16> to vector<1152x27xbf16>
    %c0_3 = arith.constant 0 : index
    %c0_4 = arith.constant 0 : index
    %6 = vector.load %arg3[%c0_3, %c0_4] : memref<27x28xbf16, #tpu.memory_space<vmem>>, vector<27x28xbf16>
    %cst = arith.constant dense<0.000000e+00> : vector<1152x28xf32>
    %7 = tpu.matmul %5, %6, %cst {dimension_numbers = #tpu.dot_dimension_numbers<[1], [0], [0], [1], [0, 0, 1, 1], [], []>} : vector<1152x27xbf16>, vector<27x28xbf16>, vector<1152x28xf32> -> vector<1152x28xf32>
    %c0_5 = arith.constant 0 : index
    %c0_6 = arith.constant 0 : index
    %8 = vector.load %arg4[%c0_5, %c0_6] : memref<1x28xf32, #tpu.memory_space<vmem>>, vector<1x28xf32>
    %9 = vector.broadcast %8 : vector<1x28xf32> to vector<1152x28xf32>
    %10 = arith.addf %7, %9 : vector<1152x28xf32>
    %11 = vector.shape_cast %10 : vector<1152x28xf32> to vector<2x24x24x28xf32>
    %12 = vector.extract_strided_slice %11 {offsets = [0, 0, 0, 0], sizes = [2, 22, 24, 28], strides = [1, 1, 1, 1]} : vector<2x24x24x28xf32> to vector<2x22x24x28xf32>
    %13 = vector.extract_strided_slice %11 {offsets = [0, 1, 0, 0], sizes = [2, 22, 24, 28], strides = [1, 1, 1, 1]} : vector<2x24x24x28xf32> to vector<2x22x24x28xf32>
    %14 = arith.maximumf %12, %13 : vector<2x22x24x28xf32>
    %15 = vector.extract_strided_slice %11 {offsets = [0, 2, 0, 0], sizes = [2, 22, 24, 28], strides = [1, 1, 1, 1]} : vector<2x24x24x28xf32> to vector<2x22x24x28xf32>
    %16 = arith.maximumf %14, %15 : vector<2x22x24x28xf32>
    %17 = vector.extract_strided_slice %16 {offsets = [0, 0, 0, 0], sizes = [2, 1, 24, 28], strides = [1, 1, 1, 1]} : vector<2x22x24x28xf32> to vector<2x1x24x28xf32>
    %18 = vector.extract_strided_slice %16 {offsets = [0, 2, 0, 0], sizes = [2, 1, 24, 28], strides = [1, 1, 1, 1]} : vector<2x22x24x28xf32> to vector<2x1x24x28xf32>
    %19 = vector.extract_strided_slice %16 {offsets = [0, 4, 0, 0], sizes = [2, 1, 24, 28], strides = [1, 1, 1, 1]} : vector<2x22x24x28xf32> to vector<2x1x24x28xf32>
    %20 = vector.extract_strided_slice %16 {offsets = [0, 6, 0, 0], sizes = [2, 1, 24, 28], strides = [1, 1, 1, 1]} : vector<2x22x24x28xf32> to vector<2x1x24x28xf32>
    %21 = vector.extract_strided_slice %16 {offsets = [0, 8, 0, 0], sizes = [2, 1, 24, 28], strides = [1, 1, 1, 1]} : vector<2x22x24x28xf32> to vector<2x1x24x28xf32>
    %22 = vector.extract_strided_slice %16 {offsets = [0, 10, 0, 0], sizes = [2, 1, 24, 28], strides = [1, 1, 1, 1]} : vector<2x22x24x28xf32> to vector<2x1x24x28xf32>
    %23 = vector.extract_strided_slice %16 {offsets = [0, 12, 0, 0], sizes = [2, 1, 24, 28], strides = [1, 1, 1, 1]} : vector<2x22x24x28xf32> to vector<2x1x24x28xf32>
    %24 = vector.extract_strided_slice %16 {offsets = [0, 14, 0, 0], sizes = [2, 1, 24, 28], strides = [1, 1, 1, 1]} : vector<2x22x24x28xf32> to vector<2x1x24x28xf32>
    %25 = vector.extract_strided_slice %16 {offsets = [0, 16, 0, 0], sizes = [2, 1, 24, 28], strides = [1, 1, 1, 1]} : vector<2x22x24x28xf32> to vector<2x1x24x28xf32>
    %26 = vector.extract_strided_slice %16 {offsets = [0, 18, 0, 0], sizes = [2, 1, 24, 28], strides = [1, 1, 1, 1]} : vector<2x22x24x28xf32> to vector<2x1x24x28xf32>
    %27 = vector.extract_strided_slice %16 {offsets = [0, 20, 0, 0], sizes = [2, 1, 24, 28], strides = [1, 1, 1, 1]} : vector<2x22x24x28xf32> to vector<2x1x24x28xf32>
    %28 = tpu.concatenate %17, %18, %19, %20, %21, %22, %23, %24, %25, %26, %27 in 1 : vector<2x1x24x28xf32>, vector<2x1x24x28xf32>, vector<2x1x24x28xf32>, vector<2x1x24x28xf32>, vector<2x1x24x28xf32>, vector<2x1x24x28xf32>, vector<2x1x24x28xf32>, vector<2x1x24x28xf32>, vector<2x1x24x28xf32>, vector<2x1x24x28xf32>, vector<2x1x24x28xf32> -> vector<2x11x24x28xf32>
    %29 = vector.extract_strided_slice %28 {offsets = [0, 0, 0, 0], sizes = [2, 11, 22, 28], strides = [1, 1, 1, 1]} : vector<2x11x24x28xf32> to vector<2x11x22x28xf32>
    %30 = vector.extract_strided_slice %28 {offsets = [0, 0, 1, 0], sizes = [2, 11, 22, 28], strides = [1, 1, 1, 1]} : vector<2x11x24x28xf32> to vector<2x11x22x28xf32>
    %31 = arith.maximumf %29, %30 : vector<2x11x22x28xf32>
    %32 = vector.extract_strided_slice %28 {offsets = [0, 0, 2, 0], sizes = [2, 11, 22, 28], strides = [1, 1, 1, 1]} : vector<2x11x24x28xf32> to vector<2x11x22x28xf32>
    %33 = arith.maximumf %31, %32 : vector<2x11x22x28xf32>
    %34 = vector.extract_strided_slice %33 {offsets = [0, 0, 0, 0], sizes = [2, 11, 1, 28], strides = [1, 1, 1, 1]} : vector<2x11x22x28xf32> to vector<2x11x1x28xf32>
    %35 = vector.extract_strided_slice %33 {offsets = [0, 0, 2, 0], sizes = [2, 11, 1, 28], strides = [1, 1, 1, 1]} : vector<2x11x22x28xf32> to vector<2x11x1x28xf32>
    %36 = vector.extract_strided_slice %33 {offsets = [0, 0, 4, 0], sizes = [2, 11, 1, 28], strides = [1, 1, 1, 1]} : vector<2x11x22x28xf32> to vector<2x11x1x28xf32>
    %37 = vector.extract_strided_slice %33 {offsets = [0, 0, 6, 0], sizes = [2, 11, 1, 28], strides = [1, 1, 1, 1]} : vector<2x11x22x28xf32> to vector<2x11x1x28xf32>
    %38 = vector.extract_strided_slice %33 {offsets = [0, 0, 8, 0], sizes = [2, 11, 1, 28], strides = [1, 1, 1, 1]} : vector<2x11x22x28xf32> to vector<2x11x1x28xf32>
    %39 = vector.extract_strided_slice %33 {offsets = [0, 0, 10, 0], sizes = [2, 11, 1, 28], strides = [1, 1, 1, 1]} : vector<2x11x22x28xf32> to vector<2x11x1x28xf32>
    %40 = vector.extract_strided_slice %33 {offsets = [0, 0, 12, 0], sizes = [2, 11, 1, 28], strides = [1, 1, 1, 1]} : vector<2x11x22x28xf32> to vector<2x11x1x28xf32>
    %41 = vector.extract_strided_slice %33 {offsets = [0, 0, 14, 0], sizes = [2, 11, 1, 28], strides = [1, 1, 1, 1]} : vector<2x11x22x28xf32> to vector<2x11x1x28xf32>
    %42 = vector.extract_strided_slice %33 {offsets = [0, 0, 16, 0], sizes = [2, 11, 1, 28], strides = [1, 1, 1, 1]} : vector<2x11x22x28xf32> to vector<2x11x1x28xf32>
    %43 = vector.extract_strided_slice %33 {offsets = [0, 0, 18, 0], sizes = [2, 11, 1, 28], strides = [1, 1, 1, 1]} : vector<2x11x22x28xf32> to vector<2x11x1x28xf32>
    %44 = vector.extract_strided_slice %33 {offsets = [0, 0, 20, 0], sizes = [2, 11, 1, 28], strides = [1, 1, 1, 1]} : vector<2x11x22x28xf32> to vector<2x11x1x28xf32>
    %45 = tpu.concatenate %34, %35, %36, %37, %38, %39, %40, %41, %42, %43, %44 in 2 : vector<2x11x1x28xf32>, vector<2x11x1x28xf32>, vector<2x11x1x28xf32>, vector<2x11x1x28xf32>, vector<2x11x1x28xf32>, vector<2x11x1x28xf32>, vector<2x11x1x28xf32>, vector<2x11x1x28xf32>, vector<2x11x1x28xf32>, vector<2x11x1x28xf32>, vector<2x11x1x28xf32> -> vector<2x11x11x28xf32>
    %cst_7 = arith.constant 0.000000e+00 : f32
    %46 = vector.broadcast %cst_7 : f32 to vector<2x11x11x28xf32>
    %47 = arith.cmpf oge, %45, %46 : vector<2x11x11x28xf32>
    %48 = vector.broadcast %0 : f32 to vector<2x11x11x28xf32>
    %49 = arith.mulf %48, %45 : vector<2x11x11x28xf32>
    %50 = arith.select %47, %45, %49 : vector<2x11x11x28xi1>, vector<2x11x11x28xf32>
    %51 = arith.truncf %50 : vector<2x11x11x28xf32> to vector<2x11x11x28xbf16>
    %cst_8 = arith.constant 0.000000e+00 : bf16
    %52 = vector.broadcast %cst_8 : bf16 to vector<2x11x7x28xbf16>
    %53 = tpu.concatenate %51, %52 in 2 : vector<2x11x11x28xbf16>, vector<2x11x7x28xbf16> -> vector<2x11x18x28xbf16>
    %54 = vector.extract_strided_slice %53 {offsets = [0, 0, 0, 0], sizes = [2, 9, 16, 28], strides = [1, 1, 1, 1]} : vector<2x11x18x28xbf16> to vector<2x9x16x28xbf16>
    %55 = vector.extract_strided_slice %53 {offsets = [0, 0, 1, 0], sizes = [2, 9, 16, 28], strides = [1, 1, 1, 1]} : vector<2x11x18x28xbf16> to vector<2x9x16x28xbf16>
    %56 = vector.extract_strided_slice %53 {offsets = [0, 0, 2, 0], sizes = [2, 9, 16, 28], strides = [1, 1, 1, 1]} : vector<2x11x18x28xbf16> to vector<2x9x16x28xbf16>
    %57 = tpu.concatenate %54, %55, %56 in 3 : vector<2x9x16x28xbf16>, vector<2x9x16x28xbf16>, vector<2x9x16x28xbf16> -> vector<2x9x16x84xbf16>
    %58 = vector.shape_cast %57 : vector<2x9x16x84xbf16> to vector<288x84xbf16>
    %c0_9 = arith.constant 0 : index
    %c0_10 = arith.constant 0 : index
    %c0_11 = arith.constant 0 : index
    %59 = vector.load %arg5[%c0_9, %c0_10, %c0_11] : memref<3x84x48xbf16, #tpu.memory_space<vmem>>, vector<1x84x48xbf16>
    %60 = vector.shape_cast %59 : vector<1x84x48xbf16> to vector<84x48xbf16>
    %cst_12 = arith.constant dense<0.000000e+00> : vector<288x48xf32>
    %61 = tpu.matmul %58, %60, %cst_12 {dimension_numbers = #tpu.dot_dimension_numbers<[1], [0], [0], [1], [0, 0, 1, 1], [], []>} : vector<288x84xbf16>, vector<84x48xbf16>, vector<288x48xf32> -> vector<288x48xf32>
    %62 = vector.extract_strided_slice %53 {offsets = [0, 1, 0, 0], sizes = [2, 9, 16, 28], strides = [1, 1, 1, 1]} : vector<2x11x18x28xbf16> to vector<2x9x16x28xbf16>
    %63 = vector.extract_strided_slice %53 {offsets = [0, 1, 1, 0], sizes = [2, 9, 16, 28], strides = [1, 1, 1, 1]} : vector<2x11x18x28xbf16> to vector<2x9x16x28xbf16>
    %64 = vector.extract_strided_slice %53 {offsets = [0, 1, 2, 0], sizes = [2, 9, 16, 28], strides = [1, 1, 1, 1]} : vector<2x11x18x28xbf16> to vector<2x9x16x28xbf16>
    %65 = tpu.concatenate %62, %63, %64 in 3 : vector<2x9x16x28xbf16>, vector<2x9x16x28xbf16>, vector<2x9x16x28xbf16> -> vector<2x9x16x84xbf16>
    %66 = vector.shape_cast %65 : vector<2x9x16x84xbf16> to vector<288x84xbf16>
    %c1_13 = arith.constant 1 : index
    %c0_14 = arith.constant 0 : index
    %c0_15 = arith.constant 0 : index
    %67 = vector.load %arg5[%c1_13, %c0_14, %c0_15] : memref<3x84x48xbf16, #tpu.memory_space<vmem>>, vector<1x84x48xbf16>
    %68 = vector.shape_cast %67 : vector<1x84x48xbf16> to vector<84x48xbf16>
    %cst_16 = arith.constant dense<0.000000e+00> : vector<288x48xf32>
    %69 = tpu.matmul %66, %68, %cst_16 {dimension_numbers = #tpu.dot_dimension_numbers<[1], [0], [0], [1], [0, 0, 1, 1], [], []>} : vector<288x84xbf16>, vector<84x48xbf16>, vector<288x48xf32> -> vector<288x48xf32>
    %70 = arith.addf %61, %69 : vector<288x48xf32>
    %71 = vector.extract_strided_slice %53 {offsets = [0, 2, 0, 0], sizes = [2, 9, 16, 28], strides = [1, 1, 1, 1]} : vector<2x11x18x28xbf16> to vector<2x9x16x28xbf16>
    %72 = vector.extract_strided_slice %53 {offsets = [0, 2, 1, 0], sizes = [2, 9, 16, 28], strides = [1, 1, 1, 1]} : vector<2x11x18x28xbf16> to vector<2x9x16x28xbf16>
    %73 = vector.extract_strided_slice %53 {offsets = [0, 2, 2, 0], sizes = [2, 9, 16, 28], strides = [1, 1, 1, 1]} : vector<2x11x18x28xbf16> to vector<2x9x16x28xbf16>
    %74 = tpu.concatenate %71, %72, %73 in 3 : vector<2x9x16x28xbf16>, vector<2x9x16x28xbf16>, vector<2x9x16x28xbf16> -> vector<2x9x16x84xbf16>
    %75 = vector.shape_cast %74 : vector<2x9x16x84xbf16> to vector<288x84xbf16>
    %c2_17 = arith.constant 2 : index
    %c0_18 = arith.constant 0 : index
    %c0_19 = arith.constant 0 : index
    %76 = vector.load %arg5[%c2_17, %c0_18, %c0_19] : memref<3x84x48xbf16, #tpu.memory_space<vmem>>, vector<1x84x48xbf16>
    %77 = vector.shape_cast %76 : vector<1x84x48xbf16> to vector<84x48xbf16>
    %cst_20 = arith.constant dense<0.000000e+00> : vector<288x48xf32>
    %78 = tpu.matmul %75, %77, %cst_20 {dimension_numbers = #tpu.dot_dimension_numbers<[1], [0], [0], [1], [0, 0, 1, 1], [], []>} : vector<288x84xbf16>, vector<84x48xbf16>, vector<288x48xf32> -> vector<288x48xf32>
    %79 = arith.addf %70, %78 : vector<288x48xf32>
    %c0_21 = arith.constant 0 : index
    %c0_22 = arith.constant 0 : index
    %80 = vector.load %arg6[%c0_21, %c0_22] : memref<1x48xf32, #tpu.memory_space<vmem>>, vector<1x48xf32>
    %81 = vector.broadcast %80 : vector<1x48xf32> to vector<288x48xf32>
    %82 = arith.addf %79, %81 : vector<288x48xf32>
    %83 = vector.shape_cast %82 : vector<288x48xf32> to vector<2x9x16x48xf32>
    %84 = vector.extract_strided_slice %83 {offsets = [0, 0, 0, 0], sizes = [2, 7, 16, 48], strides = [1, 1, 1, 1]} : vector<2x9x16x48xf32> to vector<2x7x16x48xf32>
    %85 = vector.extract_strided_slice %83 {offsets = [0, 1, 0, 0], sizes = [2, 7, 16, 48], strides = [1, 1, 1, 1]} : vector<2x9x16x48xf32> to vector<2x7x16x48xf32>
    %86 = arith.maximumf %84, %85 : vector<2x7x16x48xf32>
    %87 = vector.extract_strided_slice %83 {offsets = [0, 2, 0, 0], sizes = [2, 7, 16, 48], strides = [1, 1, 1, 1]} : vector<2x9x16x48xf32> to vector<2x7x16x48xf32>
    %88 = arith.maximumf %86, %87 : vector<2x7x16x48xf32>
    %89 = vector.extract_strided_slice %88 {offsets = [0, 0, 0, 0], sizes = [2, 1, 16, 48], strides = [1, 1, 1, 1]} : vector<2x7x16x48xf32> to vector<2x1x16x48xf32>
    %90 = vector.extract_strided_slice %88 {offsets = [0, 2, 0, 0], sizes = [2, 1, 16, 48], strides = [1, 1, 1, 1]} : vector<2x7x16x48xf32> to vector<2x1x16x48xf32>
    %91 = vector.extract_strided_slice %88 {offsets = [0, 4, 0, 0], sizes = [2, 1, 16, 48], strides = [1, 1, 1, 1]} : vector<2x7x16x48xf32> to vector<2x1x16x48xf32>
    %92 = vector.extract_strided_slice %88 {offsets = [0, 6, 0, 0], sizes = [2, 1, 16, 48], strides = [1, 1, 1, 1]} : vector<2x7x16x48xf32> to vector<2x1x16x48xf32>
    %93 = tpu.concatenate %89, %90, %91, %92 in 1 : vector<2x1x16x48xf32>, vector<2x1x16x48xf32>, vector<2x1x16x48xf32>, vector<2x1x16x48xf32> -> vector<2x4x16x48xf32>
    %94 = vector.extract_strided_slice %93 {offsets = [0, 0, 0, 0], sizes = [2, 4, 14, 48], strides = [1, 1, 1, 1]} : vector<2x4x16x48xf32> to vector<2x4x14x48xf32>
    %95 = vector.extract_strided_slice %93 {offsets = [0, 0, 1, 0], sizes = [2, 4, 14, 48], strides = [1, 1, 1, 1]} : vector<2x4x16x48xf32> to vector<2x4x14x48xf32>
    %96 = arith.maximumf %94, %95 : vector<2x4x14x48xf32>
    %97 = vector.extract_strided_slice %93 {offsets = [0, 0, 2, 0], sizes = [2, 4, 14, 48], strides = [1, 1, 1, 1]} : vector<2x4x16x48xf32> to vector<2x4x14x48xf32>
    %98 = arith.maximumf %96, %97 : vector<2x4x14x48xf32>
    %99 = vector.extract_strided_slice %98 {offsets = [0, 0, 0, 0], sizes = [2, 4, 1, 48], strides = [1, 1, 1, 1]} : vector<2x4x14x48xf32> to vector<2x4x1x48xf32>
    %100 = vector.extract_strided_slice %98 {offsets = [0, 0, 2, 0], sizes = [2, 4, 1, 48], strides = [1, 1, 1, 1]} : vector<2x4x14x48xf32> to vector<2x4x1x48xf32>
    %101 = vector.extract_strided_slice %98 {offsets = [0, 0, 4, 0], sizes = [2, 4, 1, 48], strides = [1, 1, 1, 1]} : vector<2x4x14x48xf32> to vector<2x4x1x48xf32>
    %102 = vector.extract_strided_slice %98 {offsets = [0, 0, 6, 0], sizes = [2, 4, 1, 48], strides = [1, 1, 1, 1]} : vector<2x4x14x48xf32> to vector<2x4x1x48xf32>
    %103 = tpu.concatenate %99, %100, %101, %102 in 2 : vector<2x4x1x48xf32>, vector<2x4x1x48xf32>, vector<2x4x1x48xf32>, vector<2x4x1x48xf32> -> vector<2x4x4x48xf32>
    %cst_23 = arith.constant 0.000000e+00 : f32
    %104 = vector.broadcast %cst_23 : f32 to vector<2x4x4x48xf32>
    %105 = arith.cmpf oge, %103, %104 : vector<2x4x4x48xf32>
    %106 = vector.broadcast %1 : f32 to vector<2x4x4x48xf32>
    %107 = arith.mulf %106, %103 : vector<2x4x4x48xf32>
    %108 = arith.select %105, %103, %107 : vector<2x4x4x48xi1>, vector<2x4x4x48xf32>
    %109 = arith.truncf %108 : vector<2x4x4x48xf32> to vector<2x4x4x48xbf16>
    %cst_24 = arith.constant 0.000000e+00 : bf16
    %110 = vector.broadcast %cst_24 : bf16 to vector<2x4x5x48xbf16>
    %111 = tpu.concatenate %109, %110 in 2 : vector<2x4x4x48xbf16>, vector<2x4x5x48xbf16> -> vector<2x4x9x48xbf16>
    %112 = vector.extract_strided_slice %111 {offsets = [0, 0, 0, 0], sizes = [2, 3, 8, 48], strides = [1, 1, 1, 1]} : vector<2x4x9x48xbf16> to vector<2x3x8x48xbf16>
    %113 = vector.extract_strided_slice %111 {offsets = [0, 0, 1, 0], sizes = [2, 3, 8, 48], strides = [1, 1, 1, 1]} : vector<2x4x9x48xbf16> to vector<2x3x8x48xbf16>
    %114 = tpu.concatenate %112, %113 in 3 : vector<2x3x8x48xbf16>, vector<2x3x8x48xbf16> -> vector<2x3x8x96xbf16>
    %115 = vector.shape_cast %114 : vector<2x3x8x96xbf16> to vector<48x96xbf16>
    %c0_25 = arith.constant 0 : index
    %c0_26 = arith.constant 0 : index
    %c0_27 = arith.constant 0 : index
    %116 = vector.load %arg7[%c0_25, %c0_26, %c0_27] : memref<2x96x64xbf16, #tpu.memory_space<vmem>>, vector<1x96x64xbf16>
    %117 = vector.shape_cast %116 : vector<1x96x64xbf16> to vector<96x64xbf16>
    %cst_28 = arith.constant dense<0.000000e+00> : vector<48x64xf32>
    %118 = tpu.matmul %115, %117, %cst_28 {dimension_numbers = #tpu.dot_dimension_numbers<[1], [0], [0], [1], [0, 0, 1, 1], [], []>} : vector<48x96xbf16>, vector<96x64xbf16>, vector<48x64xf32> -> vector<48x64xf32>
    %119 = vector.extract_strided_slice %111 {offsets = [0, 1, 0, 0], sizes = [2, 3, 8, 48], strides = [1, 1, 1, 1]} : vector<2x4x9x48xbf16> to vector<2x3x8x48xbf16>
    %120 = vector.extract_strided_slice %111 {offsets = [0, 1, 1, 0], sizes = [2, 3, 8, 48], strides = [1, 1, 1, 1]} : vector<2x4x9x48xbf16> to vector<2x3x8x48xbf16>
    %121 = tpu.concatenate %119, %120 in 3 : vector<2x3x8x48xbf16>, vector<2x3x8x48xbf16> -> vector<2x3x8x96xbf16>
    %122 = vector.shape_cast %121 : vector<2x3x8x96xbf16> to vector<48x96xbf16>
    %c1_29 = arith.constant 1 : index
    %c0_30 = arith.constant 0 : index
    %c0_31 = arith.constant 0 : index
    %123 = vector.load %arg7[%c1_29, %c0_30, %c0_31] : memref<2x96x64xbf16, #tpu.memory_space<vmem>>, vector<1x96x64xbf16>
    %124 = vector.shape_cast %123 : vector<1x96x64xbf16> to vector<96x64xbf16>
    %cst_32 = arith.constant dense<0.000000e+00> : vector<48x64xf32>
    %125 = tpu.matmul %122, %124, %cst_32 {dimension_numbers = #tpu.dot_dimension_numbers<[1], [0], [0], [1], [0, 0, 1, 1], [], []>} : vector<48x96xbf16>, vector<96x64xbf16>, vector<48x64xf32> -> vector<48x64xf32>
    %126 = arith.addf %118, %125 : vector<48x64xf32>
    %c0_33 = arith.constant 0 : index
    %c0_34 = arith.constant 0 : index
    %127 = vector.load %arg8[%c0_33, %c0_34] : memref<1x64xf32, #tpu.memory_space<vmem>>, vector<1x64xf32>
    %128 = vector.broadcast %127 : vector<1x64xf32> to vector<48x64xf32>
    %129 = arith.addf %126, %128 : vector<48x64xf32>
    %cst_35 = arith.constant 0.000000e+00 : f32
    %130 = vector.broadcast %cst_35 : f32 to vector<48x64xf32>
    %131 = arith.cmpf oge, %129, %130 : vector<48x64xf32>
    %132 = vector.broadcast %2 : f32 to vector<48x64xf32>
    %133 = arith.mulf %132, %129 : vector<48x64xf32>
    %134 = arith.select %131, %129, %133 : vector<48x64xi1>, vector<48x64xf32>
    %135 = arith.truncf %134 : vector<48x64xf32> to vector<48x64xbf16>
    %136 = vector.shape_cast %135 : vector<48x64xbf16> to vector<2x3x8x64xbf16>
    %137 = vector.extract_strided_slice %136 {offsets = [0, 0, 0, 0], sizes = [2, 1, 8, 64], strides = [1, 1, 1, 1]} : vector<2x3x8x64xbf16> to vector<2x1x8x64xbf16>
    %138 = vector.shape_cast %137 : vector<2x1x8x64xbf16> to vector<2x8x64xbf16>
    %139 = vector.extract_strided_slice %138 {offsets = [0, 0, 0], sizes = [2, 1, 64], strides = [1, 1, 1]} : vector<2x8x64xbf16> to vector<2x1x64xbf16>
    %140 = arith.extf %139 : vector<2x1x64xbf16> to vector<2x1x64xf32>
    %cst_36 = arith.constant dense<0.000000e+00> : vector<2x64xf32>
    %141 = vector.multi_reduction <add>, %140, %cst_36 [1] : vector<2x1x64xf32> to vector<2x64xf32>
    %142 = arith.truncf %141 : vector<2x64xf32> to vector<2x64xbf16>
    %143 = vector.extract_strided_slice %138 {offsets = [0, 1, 0], sizes = [2, 1, 64], strides = [1, 1, 1]} : vector<2x8x64xbf16> to vector<2x1x64xbf16>
    %144 = arith.extf %143 : vector<2x1x64xbf16> to vector<2x1x64xf32>
    %cst_37 = arith.constant dense<0.000000e+00> : vector<2x64xf32>
    %145 = vector.multi_reduction <add>, %144, %cst_37 [1] : vector<2x1x64xf32> to vector<2x64xf32>
    %146 = arith.truncf %145 : vector<2x64xf32> to vector<2x64xbf16>
    %147 = vector.extract_strided_slice %138 {offsets = [0, 2, 0], sizes = [2, 1, 64], strides = [1, 1, 1]} : vector<2x8x64xbf16> to vector<2x1x64xbf16>
    %148 = arith.extf %147 : vector<2x1x64xbf16> to vector<2x1x64xf32>
    %cst_38 = arith.constant dense<0.000000e+00> : vector<2x64xf32>
    %149 = vector.multi_reduction <add>, %148, %cst_38 [1] : vector<2x1x64xf32> to vector<2x64xf32>
    %150 = arith.truncf %149 : vector<2x64xf32> to vector<2x64xbf16>
    %151 = vector.extract_strided_slice %136 {offsets = [0, 1, 0, 0], sizes = [2, 1, 8, 64], strides = [1, 1, 1, 1]} : vector<2x3x8x64xbf16> to vector<2x1x8x64xbf16>
    %152 = vector.shape_cast %151 : vector<2x1x8x64xbf16> to vector<2x8x64xbf16>
    %153 = vector.extract_strided_slice %152 {offsets = [0, 0, 0], sizes = [2, 1, 64], strides = [1, 1, 1]} : vector<2x8x64xbf16> to vector<2x1x64xbf16>
    %154 = arith.extf %153 : vector<2x1x64xbf16> to vector<2x1x64xf32>
    %cst_39 = arith.constant dense<0.000000e+00> : vector<2x64xf32>
    %155 = vector.multi_reduction <add>, %154, %cst_39 [1] : vector<2x1x64xf32> to vector<2x64xf32>
    %156 = arith.truncf %155 : vector<2x64xf32> to vector<2x64xbf16>
    %157 = vector.extract_strided_slice %152 {offsets = [0, 1, 0], sizes = [2, 1, 64], strides = [1, 1, 1]} : vector<2x8x64xbf16> to vector<2x1x64xbf16>
    %158 = arith.extf %157 : vector<2x1x64xbf16> to vector<2x1x64xf32>
    %cst_40 = arith.constant dense<0.000000e+00> : vector<2x64xf32>
    %159 = vector.multi_reduction <add>, %158, %cst_40 [1] : vector<2x1x64xf32> to vector<2x64xf32>
    %160 = arith.truncf %159 : vector<2x64xf32> to vector<2x64xbf16>
    %161 = vector.extract_strided_slice %152 {offsets = [0, 2, 0], sizes = [2, 1, 64], strides = [1, 1, 1]} : vector<2x8x64xbf16> to vector<2x1x64xbf16>
    %162 = arith.extf %161 : vector<2x1x64xbf16> to vector<2x1x64xf32>
    %cst_41 = arith.constant dense<0.000000e+00> : vector<2x64xf32>
    %163 = vector.multi_reduction <add>, %162, %cst_41 [1] : vector<2x1x64xf32> to vector<2x64xf32>
    %164 = arith.truncf %163 : vector<2x64xf32> to vector<2x64xbf16>
    %165 = vector.extract_strided_slice %136 {offsets = [0, 2, 0, 0], sizes = [2, 1, 8, 64], strides = [1, 1, 1, 1]} : vector<2x3x8x64xbf16> to vector<2x1x8x64xbf16>
    %166 = vector.shape_cast %165 : vector<2x1x8x64xbf16> to vector<2x8x64xbf16>
    %167 = vector.extract_strided_slice %166 {offsets = [0, 0, 0], sizes = [2, 1, 64], strides = [1, 1, 1]} : vector<2x8x64xbf16> to vector<2x1x64xbf16>
    %168 = arith.extf %167 : vector<2x1x64xbf16> to vector<2x1x64xf32>
    %cst_42 = arith.constant dense<0.000000e+00> : vector<2x64xf32>
    %169 = vector.multi_reduction <add>, %168, %cst_42 [1] : vector<2x1x64xf32> to vector<2x64xf32>
    %170 = arith.truncf %169 : vector<2x64xf32> to vector<2x64xbf16>
    %171 = vector.extract_strided_slice %166 {offsets = [0, 1, 0], sizes = [2, 1, 64], strides = [1, 1, 1]} : vector<2x8x64xbf16> to vector<2x1x64xbf16>
    %172 = arith.extf %171 : vector<2x1x64xbf16> to vector<2x1x64xf32>
    %cst_43 = arith.constant dense<0.000000e+00> : vector<2x64xf32>
    %173 = vector.multi_reduction <add>, %172, %cst_43 [1] : vector<2x1x64xf32> to vector<2x64xf32>
    %174 = arith.truncf %173 : vector<2x64xf32> to vector<2x64xbf16>
    %175 = vector.extract_strided_slice %166 {offsets = [0, 2, 0], sizes = [2, 1, 64], strides = [1, 1, 1]} : vector<2x8x64xbf16> to vector<2x1x64xbf16>
    %176 = arith.extf %175 : vector<2x1x64xbf16> to vector<2x1x64xf32>
    %cst_44 = arith.constant dense<0.000000e+00> : vector<2x64xf32>
    %177 = vector.multi_reduction <add>, %176, %cst_44 [1] : vector<2x1x64xf32> to vector<2x64xf32>
    %178 = arith.truncf %177 : vector<2x64xf32> to vector<2x64xbf16>
    %179 = tpu.concatenate %142, %146, %150, %156, %160, %164, %170, %174, %178 in 1 : vector<2x64xbf16>, vector<2x64xbf16>, vector<2x64xbf16>, vector<2x64xbf16>, vector<2x64xbf16>, vector<2x64xbf16>, vector<2x64xbf16>, vector<2x64xbf16>, vector<2x64xbf16> -> vector<2x576xbf16>
    %c0_45 = arith.constant 0 : index
    %c0_46 = arith.constant 0 : index
    %180 = vector.load %arg9[%c0_45, %c0_46] : memref<576x128xbf16, #tpu.memory_space<vmem>>, vector<576x128xbf16>
    %cst_47 = arith.constant dense<0.000000e+00> : vector<2x128xf32>
    %181 = tpu.matmul %179, %180, %cst_47 {dimension_numbers = #tpu.dot_dimension_numbers<[1], [0], [0], [1], [0, 0, 1, 1], [], []>} : vector<2x576xbf16>, vector<576x128xbf16>, vector<2x128xf32> -> vector<2x128xf32>
    %c0_48 = arith.constant 0 : index
    %c0_49 = arith.constant 0 : index
    %182 = vector.load %arg10[%c0_48, %c0_49] : memref<1x128xf32, #tpu.memory_space<vmem>>, vector<1x128xf32>
    %183 = vector.broadcast %182 : vector<1x128xf32> to vector<2x128xf32>
    %184 = arith.addf %181, %183 : vector<2x128xf32>
    %cst_50 = arith.constant 0.000000e+00 : f32
    %185 = vector.broadcast %cst_50 : f32 to vector<2x128xf32>
    %186 = arith.cmpf oge, %184, %185 : vector<2x128xf32>
    %187 = vector.broadcast %3 : f32 to vector<2x128xf32>
    %188 = arith.mulf %187, %184 : vector<2x128xf32>
    %189 = arith.select %186, %184, %188 : vector<2x128xi1>, vector<2x128xf32>
    %190 = arith.truncf %189 : vector<2x128xf32> to vector<2x128xbf16>
    %c0_51 = arith.constant 0 : index
    %c0_52 = arith.constant 0 : index
    %191 = vector.load %arg11[%c0_51, %c0_52] : memref<128x8xbf16, #tpu.memory_space<vmem>>, vector<128x8xbf16>
    %cst_53 = arith.constant dense<0.000000e+00> : vector<2x8xf32>
    %192 = tpu.matmul %190, %191, %cst_53 {dimension_numbers = #tpu.dot_dimension_numbers<[1], [0], [0], [1], [0, 0, 1, 1], [], []>} : vector<2x128xbf16>, vector<128x8xbf16>, vector<2x8xf32> -> vector<2x8xf32>
    %c0_54 = arith.constant 0 : index
    %c0_55 = arith.constant 0 : index
    %193 = vector.load %arg12[%c0_54, %c0_55] : memref<1x8xf32, #tpu.memory_space<vmem>>, vector<1x8xf32>
    %194 = vector.broadcast %193 : vector<1x8xf32> to vector<2x8xf32>
    %195 = arith.addf %192, %194 : vector<2x8xf32>
    %196 = tpu.iota {dimensions = array<i32: 1>} : vector<2x8xi32>
    %c0_i32 = arith.constant 0 : i32
    %197 = vector.broadcast %c0_i32 : i32 to vector<2x8xi32>
    %198 = arith.cmpi eq, %196, %197 : vector<2x8xi32>
    %199 = arith.negf %195 : vector<2x8xf32>
    %200 = math.exp %199 : vector<2x8xf32>
    %cst_56 = arith.constant 1.000000e+00 : f32
    %201 = vector.broadcast %cst_56 : f32 to vector<2x8xf32>
    %202 = arith.addf %201, %200 : vector<2x8xf32>
    %203 = arith.divf %201, %202 : vector<2x8xf32>
    %204 = arith.select %198, %203, %195 : vector<2x8xi1>, vector<2x8xf32>
    %c0_57 = arith.constant 0 : index
    %c0_58 = arith.constant 0 : index
    %205 = vector.load %arg13[%c0_57, %c0_58] : memref<2x8xf32, #tpu.memory_space<vmem>>, vector<2x8xf32>
    tpu.vector_store %arg13[%c0_57, %c0_58], %204 {strides = array<i32>} : memref<2x8xf32, #tpu.memory_space<vmem>>, vector<2x8xf32>,
    return
  }
  func.func @transform_0(%arg0: i32) -> i32 {
    %c0_i32 = arith.constant 0 : i32
    %c0_i32_0 = arith.constant 0 : i32
    return %c0_i32 : i32
  }
  func.func @transform_1(%arg0: i32) -> (i32, i32, i32) {
    %c0_i32 = arith.constant 0 : i32
    %c0_i32_0 = arith.constant 0 : i32
    %c0_i32_1 = arith.constant 0 : i32
    return %arg0, %c0_i32, %c0_i32_0 : i32, i32, i32
  }
  func.func @transform_2(%arg0: i32) -> (i32, i32) {
    %c0_i32 = arith.constant 0 : i32
    %c0_i32_0 = arith.constant 0 : i32
    %c0_i32_1 = arith.constant 0 : i32
    return %c0_i32, %c0_i32_0 : i32, i32
  }
  func.func @transform_3(%arg0: i32) -> (i32, i32) {
    %c0_i32 = arith.constant 0 : i32
    %c0_i32_0 = arith.constant 0 : i32
    %c0_i32_1 = arith.constant 0 : i32
    return %c0_i32, %c0_i32_0 : i32, i32
  }
  func.func @transform_4(%arg0: i32) -> (i32, i32, i32) {
    %c0_i32 = arith.constant 0 : i32
    %c0_i32_0 = arith.constant 0 : i32
    %c0_i32_1 = arith.constant 0 : i32
    %c0_i32_2 = arith.constant 0 : i32
    return %c0_i32, %c0_i32_0, %c0_i32_1 : i32, i32, i32
  }
  func.func @transform_5(%arg0: i32) -> (i32, i32) {
    %c0_i32 = arith.constant 0 : i32
    %c0_i32_0 = arith.constant 0 : i32
    %c0_i32_1 = arith.constant 0 : i32
    return %c0_i32, %c0_i32_0 : i32, i32
  }
  func.func @transform_6(%arg0: i32) -> (i32, i32, i32) {
    %c0_i32 = arith.constant 0 : i32
    %c0_i32_0 = arith.constant 0 : i32
    %c0_i32_1 = arith.constant 0 : i32
    %c0_i32_2 = arith.constant 0 : i32
    return %c0_i32, %c0_i32_0, %c0_i32_1 : i32, i32, i32
  }
  func.func @transform_7(%arg0: i32) -> (i32, i32) {
    %c0_i32 = arith.constant 0 : i32
    %c0_i32_0 = arith.constant 0 : i32
    %c0_i32_1 = arith.constant 0 : i32
    return %c0_i32, %c0_i32_0 : i32, i32
  }
  func.func @transform_8(%arg0: i32) -> (i32, i32) {
    %c0_i32 = arith.constant 0 : i32
    %c0_i32_0 = arith.constant 0 : i32
    %c0_i32_1 = arith.constant 0 : i32
    return %c0_i32, %c0_i32_0 : i32, i32
  }
  func.func @transform_9(%arg0: i32) -> (i32, i32) {
    %c0_i32 = arith.constant 0 : i32
    %c0_i32_0 = arith.constant 0 : i32
    %c0_i32_1 = arith.constant 0 : i32
    return %c0_i32, %c0_i32_0 : i32, i32
  }
  func.func @transform_10(%arg0: i32) -> (i32, i32) {
    %c0_i32 = arith.constant 0 : i32
    %c0_i32_0 = arith.constant 0 : i32
    %c0_i32_1 = arith.constant 0 : i32
    return %c0_i32, %c0_i32_0 : i32, i32
  }
  func.func @transform_11(%arg0: i32) -> (i32, i32) {
    %c0_i32 = arith.constant 0 : i32
    %c0_i32_0 = arith.constant 0 : i32
    %c0_i32_1 = arith.constant 0 : i32
    return %c0_i32, %c0_i32_0 : i32, i32
  }
  func.func @transform_12(%arg0: i32) -> (i32, i32) {
    %c0_i32 = arith.constant 0 : i32
    %c0_i32_0 = arith.constant 0 : i32
    return %arg0, %c0_i32 : i32, i32
  }
}

</mosaic_0001>

<bundles_post_ra>
// kernel: _lambda_.1
= control target key start
LH: loop header
LB: loop body
LE: loop exit
PB: predicated region body
PF: predicated region fallthrough
CT: control target
= control target key end

     0   :  { %17 = vsyncpa [#allocation3], 0  ;;  %s9558_s0 = inlined_call_operand.vmem [shape: f32[4], index: 0, kind: input, shape index: {}]   ;;  %s9559_s1 = inlined_call_operand.vmem [shape: bf16[2,576,27], index: 1, kind: input, shape index: {}]   ;;  %s9560_s2 = inlined_call_operand.vmem [shape: bf16[27,28], index: 2, kind: input, shape index: {}]   ;;  %s9561_s3 = inlined_call_operand.vmem [shape: f32[1,28], index: 3, kind: input, shape index: {}]   ;;  %s9562_s4 = inlined_call_operand.vmem [shape: bf16[3,84,48], index: 4, kind: input, shape index: {}]   ;;  %s9563_s5 = inlined_call_operand.vmem [shape: f32[1,48], index: 5, kind: input, shape index: {}]   ;;  %s9564_s6 = inlined_call_operand.vmem [shape: bf16[2,96,64], index: 6, kind: input, shape index: {}]   ;;  %s9565_s7 = inlined_call_operand.vmem [shape: f32[1,64], index: 7, kind: input, shape index: {}]   ;;  %s9566_s8 = inlined_call_operand.vmem [shape: bf16[576,128], index: 8, kind: input, shape index: {}]   ;;  %s9567_s9 = inlined_call_operand.vmem [shape: f32[1,128], index: 9, kind: input, shape index: {}]   ;;  %s9568_s10 = inlined_call_operand.vmem [shape: bf16[128,8], index: 10, kind: input, shape index: {}]   ;;  %s9569_s11 = inlined_call_operand.vmem [shape: f32[1,8], index: 11, kind: input, shape index: {}]   ;;  %s9570_s12 = inlined_call_operand.vmem [shape: f32[2,8], index: 12, kind: output, shape index: {}]  }
   0x1   :  { %s24_s23 = sshll.u32 %s9558_s0, 4  ;;  %s25_s23 = int_to_ptr.vmem [resolvable:$true] %s24_s23 }
   0x2   :  { %s6635_s24 = scalar_lea.vmem %s25_s23, 16  ;;  %p6640_p1 = scmp.lt.s32.totalorder %s25_s23, %s25_s23 }
   0x3   :  { %p6636_p0 = scmp.ne.s32.totalorder %s25_s23, %s6635_s24  ;;  %p6641_p2 = scmp.lt.s32.totalorder %s6635_s24, %s6635_s24 }
   0x5   :  { %p6642_p3 = por %p6641_p2, %p6640_p1 }
   0x7   :  { %p6643_p4 = pnand %p6642_p3, %p6636_p0 }
   0x9   :  { %6646 = shalt.err (!%p6643_p4)
}
   0xa   :  { %s6649_s25 = smov [#allocation2]  }
   0xb   :  { %27 = dma.vmem_to_smem %s25_s23, 16, %s6649_s25, [#allocation3]  }
   0xc   :  { %6647 = dma.done.wait [#allocation3], 16  }
   0xd   :  { %6648 = vsyncadd [#allocation3], 4294967280 }
   0xe   :  { %53 = sfence }
   0xf   :  { %v6480_v0 = vld [vmem:[%s9560_s2] sm:$0xff]   ;;  %vm802_vm0 = vcmask 1044480   ;;  %v6481_v1 = vld [vmem:[%s9560_s2 + $0x8] sm:$0x3f]   ;;  %vm803_vm1 = vcmask 1045504   ;;  %v6650_v2 = vmov 65535  }
  0x10   :  { %6024 = vmatprep.subr.bf16.mxu0 %v6480_v0  ;;  %v804_v3 = vsel %vm802_vm0, 4294967295, %v6650_v2  ;;  %v6482_v4 = vld [vmem:[%s9559_s1] sm:$0xff]   ;;  %vm585_vm2 = vcmask 220160   ;;  %v6483_v7 = vld [vmem:[%s9559_s1 + $0x8] sm:$0xff]   ;;  %v6484_v8 = vld [vmem:[%s9559_s1 + $0x10] sm:$0xff]   ;;  %vm1610_vm3 = vcmask 1046528  }
  0x11   :  { %6025 = vmatpush3.bf16.msra.mxu0 %v6480_v0  ;;  %v805_v5 = vsel %vm803_vm1, %v804_v3, 0  ;;  %6028 = vmatprep.mubr.msk.bf16.mxu0 %vm585_vm2, %v6482_v4  ;;  %v6485_v9 = vld [vmem:[%s9559_s1 + $0x18] sm:$0xff]   ;;  %v6486_v10 = vld [vmem:[%s9559_s1 + $0x20] sm:$0xff]   ;;  %v6487_v11 = vld [vmem:[%s9559_s1 + $0x28] sm:$0xff]   ;;  %s7006_s2 = sld [smem:[#allocation2]]  ;;  %vm2557_vm4 = vcmask 1040384  }
  0x12   :  { %v807_v6 = vand.u32 %v6481_v1, %v805_v5  ;;  %v6488_v12 = vld [vmem:[%s9559_s1 + $0x30] sm:$0xff]   ;;  %v6489_v13 = vld [vmem:[%s9559_s1 + $0x38] sm:$0xff]   ;;  %v6490_v14 = vld [vmem:[%s9559_s1 + $0x40] sm:$0xff]   ;;  %vm2580_vm5 = vcmask 1041408   ;;  %vm2603_vm6 = vcmask 1042432   ;;  %vm2626_vm7 = vcmask 1043456  }
  0x13   :  { %v6491_v15 = vld [vmem:[%s9559_s1 + $0x48] sm:$0xff]   ;;  %v6492_v16 = vld [vmem:[%s9559_s1 + $0x50] sm:$0xff]   ;;  %v6493_v17 = vld [vmem:[%s9559_s1 + $0x58] sm:$0xff]   ;;  %vm2915_vm9 = vsmask.f32 5376  ;;  %s6653_s21 = smov 28  }
  0x14   :  { %6026 = vmatprep.subr.bf16.mxu0 %v807_v6  ;;  %v6494_v18 = vld [vmem:[%s9559_s1 + $0x60] sm:$0xff]   ;;  %v6495_v19 = vld [vmem:[%s9559_s1 + $0x68] sm:$0xff]   ;;  %v6496_v20 = vld [vmem:[%s9559_s1 + $0x70] sm:$0xff]   ;;  %vm2939_vm12 = vsmask.f32 7424  ;;  %s5449_s23 = sld [smem:[#allocation2 + $0x2]] }
  0x15   :  { %6027 = vmatpush3.bf16.msra.mxu0 %v807_v6  ;;  %v6497_v21 = vld [vmem:[%s9559_s1 + $0x78] sm:$0xff]   ;;  %v6498_v22 = vld [vmem:[%s9559_s1 + $0x80] sm:$0xff]   ;;  %v6499_v23 = vld [vmem:[%s9559_s1 + $0x88] sm:$0xff]   ;;  %s6657_s14 = smov 64  }
  0x16   :  { %v6500_v24 = vld [vmem:[%s9559_s1 + $0x90] sm:$0xff]   ;;  %v6501_v25 = vld [vmem:[%s9559_s1 + $0x98] sm:$0xff]   ;;  %v6502_v26 = vld [vmem:[%s9559_s1 + $0xa0] sm:$0xff]  }
  0x17   :  { %v6503_v27 = vld [vmem:[%s9559_s1 + $0xa8] sm:$0xff]   ;;  %v6504_v28 = vld [vmem:[%s9559_s1 + $0xb0] sm:$0xff]   ;;  %v6505_v29 = vld [vmem:[%s9559_s1 + $0xb8] sm:$0xff]  }
  0x18   :  { %6029 = vmatmul.mubr.msk.bf16.vlgmr.msra.gmra.mrb[0].mxu0 %vm585_vm2, %v6483_v7  ;;  %v6506_v30 = vld [vmem:[%s9559_s1 + $0xc0] sm:$0xff]   ;;  %v6507_v31 = vld [vmem:[%s9559_s1 + $0xc8] sm:$0xff]   ;;  %v6508_v32 = vld [vmem:[%s9559_s1 + $0xd0] sm:$0xff]  }
  0x19   :  { %6032 = vmatprep.mubr.msk.bf16.mxu0 %vm585_vm2, %v6484_v8  ;;  %v6509_v33 = vld [vmem:[%s9559_s1 + $0xd8] sm:$0xff]   ;;  %v6510_v34 = vld [vmem:[%s9559_s1 + $0xe0] sm:$0xff]   ;;  %v6511_v35 = vld [vmem:[%s9559_s1 + $0xe8] sm:$0xff]  }
  0x1a   :  { %v6512_v36 = vld [vmem:[%s9559_s1 + $0xf0] sm:$0xff]   ;;  %v6513_v37 = vld [vmem:[%s9559_s1 + $0xf8] sm:$0xff]   ;;  %v6514_v38 = vld [vmem:[%s9559_s1 + $0x100] sm:$0xff]  }
  0x1b   :  { %v6515_v39 = vld [vmem:[%s9559_s1 + $0x108] sm:$0xff]   ;;  %v6516_v40 = vld [vmem:[%s9559_s1 + $0x110] sm:$0xff]   ;;  %v6517_v41 = vld [vmem:[%s9559_s1 + $0x118] sm:$0xff]  }
  0x1c   :  { %v6518_v42 = vld [vmem:[%s9559_s1 + $0x120] sm:$0xff]   ;;  %v6519_v43 = vld [vmem:[%s9559_s1 + $0x128] sm:$0xff]   ;;  %v6520_v44 = vld [vmem:[%s9559_s1 + $0x130] sm:$0xff]  }
  0x1d   :  { %v6521_v45 = vld [vmem:[%s9559_s1 + $0x138] sm:$0xff]   ;;  %v6522_v46 = vld [vmem:[%s9559_s1 + $0x140] sm:$0xff]   ;;  %v6523_v47 = vld [vmem:[%s9559_s1 + $0x148] sm:$0xff]  }
  0x1e   :  { %v6524_v48 = vld [vmem:[%s9559_s1 + $0x150] sm:$0xff]   ;;  %v6525_v49 = vld [vmem:[%s9559_s1 + $0x158] sm:$0xff]   ;;  %v6526_v50 = vld [vmem:[%s9559_s1 + $0x160] sm:$0xff]  }
  0x1f   :  { %v6527_v51 = vld [vmem:[%s9559_s1 + $0x168] sm:$0xff]   ;;  %v6528_v52 = vld [vmem:[%s9559_s1 + $0x170] sm:$0xff]   ;;  %v6529_v53 = vld [vmem:[%s9559_s1 + $0x178] sm:$0xff]  }
  0x20   :  { %6033 = vmatmul.mubr.msk.bf16.gmra.mrb[4].mxu0 %vm585_vm2, %v6485_v9  ;;  %v6530_v54 = vld [vmem:[%s9559_s1 + $0x180] sm:$0xff]   ;;  %v6531_v55 = vld [vmem:[%s9559_s1 + $0x188] sm:$0xff]   ;;  %v6532_v56 = vld [vmem:[%s9559_s1 + $0x190] sm:$0xff]  }
  0x21   :  { %6036 = vmatprep.mubr.msk.bf16.mxu0 %vm585_vm2, %v6486_v10  ;;  %v6533_v57 = vld [vmem:[%s9559_s1 + $0x198] sm:$0xff]   ;;  %v6534_v58 = vld [vmem:[%s9559_s1 + $0x1a0] sm:$0xff]   ;;  %v6535_v59 = vld [vmem:[%s9559_s1 + $0x1a8] sm:$0xff]  }
  0x22   :  { %v6536_v60 = vld [vmem:[%s9559_s1 + $0x1b0] sm:$0xff]   ;;  %v6957_v61 = vld [vmem:[%s9561_s3] ss:$0 sm:$0xff]  ;;  %v6537_v0 = vld [vmem:[%s9559_s1 + $0x1b8] sm:$0xff]  }
  0x23   :  { %v6538_v3 = vld [vmem:[%s9559_s1 + $0x1c0] sm:$0xff]   ;;  %v6539_v10 = vld [vmem:[%s9559_s1 + $0x1c8] sm:$0xff]   ;;  %vm7178_vm11 = vmand %vm803_vm1, %vm2915_vm9 }
  0x28   :  { %6037 = vmatmul.mubr.msk.bf16.gmra.mrb[8].mxu0 %vm585_vm2, %v6487_v11 }
  0x29   :  { %6040 = vmatprep.mubr.msk.bf16.mxu0 %vm585_vm2, %v6488_v12 }
  0x30   :  { %6041 = vmatmul.mubr.msk.bf16.gmra.mrb[12].mxu0 %vm585_vm2, %v6489_v13 }
  0x31   :  { %6044 = vmatprep.mubr.msk.bf16.mxu0 %vm585_vm2, %v6490_v14  ;;  %v6540_v14 = vld [vmem:[%s9559_s1 + $0x1d0] sm:$0xff]  }
  0x38   :  { %6045 = vmatmul.mubr.msk.bf16.gmra.mrb[16].mxu0 %vm585_vm2, %v6491_v15 }
  0x39   :  { %6048 = vmatprep.mubr.msk.bf16.mxu0 %vm585_vm2, %v6492_v16 }
  0x40   :  { %6049 = vmatmul.mubr.msk.bf16.gmra.mrb[20].mxu0 %vm585_vm2, %v6493_v17 }
  0x41   :  { %6052 = vmatprep.mubr.msk.bf16.mxu0 %vm585_vm2, %v6494_v18 }
  0x48   :  { %6053 = vmatmul.mubr.msk.bf16.gmra.mrb[24].mxu0 %vm585_vm2, %v6495_v19 }
  0x49   :  { %6056 = vmatprep.mubr.msk.bf16.mxu0 %vm585_vm2, %v6496_v20 }
  0x50   :  { %6057 = vmatmul.mubr.msk.bf16.gmra.mrb[28].mxu0 %vm585_vm2, %v6497_v21 }
  0x51   :  { %6060 = vmatprep.mubr.msk.bf16.mxu0 %vm585_vm2, %v6498_v22 }
  0x58   :  { %6061 = vmatmul.mubr.msk.bf16.gmra.mrb[32].mxu0 %vm585_vm2, %v6499_v23 }
  0x59   :  { %6064 = vmatprep.mubr.msk.bf16.mxu0 %vm585_vm2, %v6500_v24 }
  0x60   :  { %6065 = vmatmul.mubr.msk.bf16.gmra.mrb[36].mxu0 %vm585_vm2, %v6501_v25 }
  0x61   :  { %6068 = vmatprep.mubr.msk.bf16.mxu0 %vm585_vm2, %v6502_v26 }
  0x68   :  { %6069 = vmatmul.mubr.msk.bf16.gmra.mrb[40].mxu0 %vm585_vm2, %v6503_v27 }
  0x69   :  { %6072 = vmatprep.mubr.msk.bf16.mxu0 %vm585_vm2, %v6504_v28 }
  0x70   :  { %6073 = vmatmul.mubr.msk.bf16.gmra.mrb[44].mxu0 %vm585_vm2, %v6505_v29 }
  0x71   :  { %6076 = vmatprep.mubr.msk.bf16.mxu0 %vm585_vm2, %v6506_v30  ;;  %v6541_v30 = vld [vmem:[%s9559_s1 + $0x1d8] sm:$0xff]  }
  0x78   :  { %6077 = vmatmul.mubr.msk.bf16.gmra.mrb[48].mxu0 %vm585_vm2, %v6507_v31 }
  0x79   :  { %6080 = vmatprep.mubr.msk.bf16.mxu0 %vm585_vm2, %v6508_v32 }
  0x80   :  { %6081 = vmatmul.mubr.msk.bf16.gmra.mrb[52].mxu0 %vm585_vm2, %v6509_v33 }
  0x81   :  { %6084 = vmatprep.mubr.msk.bf16.mxu0 %vm585_vm2, %v6510_v34 }
  0x88   :  { %6085 = vmatmul.mubr.msk.bf16.gmra.mrb[56].mxu0 %vm585_vm2, %v6511_v35  ;;  %v6542_v35 = vld [vmem:[%s9559_s1 + $0x1e0] sm:$0xff]  }
  0x89   :  { %6088 = vmatprep.mubr.msk.bf16.mxu0 %vm585_vm2, %v6512_v36 }
  0x90   :  { %6089 = vmatmul.mubr.msk.bf16.gmra.mrb[60].mxu0 %vm585_vm2, %v6513_v37 }
  0x91   :  { %6092 = vmatprep.mubr.msk.bf16.mxu0 %vm585_vm2, %v6514_v38 }
  0x98   :  { %6093 = vmatmul.mubr.msk.bf16.gmra.mrb[64].mxu0 %vm585_vm2, %v6515_v39 }
  0x99   :  { %6096 = vmatprep.mubr.msk.bf16.mxu0 %vm585_vm2, %v6516_v40 }
  0xa0   :  { %6097 = vmatmul.mubr.msk.bf16.gmra.mrb[68].mxu0 %vm585_vm2, %v6517_v41 }
  0xa1   :  { %6100 = vmatprep.mubr.msk.bf16.mxu0 %vm585_vm2, %v6518_v42 }
  0xa8   :  { %6101 = vmatmul.mubr.msk.bf16.gmra.mrb[72].mxu0 %vm585_vm2, %v6519_v43 }
  0xa9   :  { %6104 = vmatprep.mubr.msk.bf16.mxu0 %vm585_vm2, %v6520_v44 }
  0xb0   :  { %6105 = vmatmul.mubr.msk.bf16.gmra.mrb[76].mxu0 %vm585_vm2, %v6521_v45 }
  0xb1   :  { %6108 = vmatprep.mubr.msk.bf16.mxu0 %vm585_vm2, %v6522_v46 }
  0xb8   :  { %6109 = vmatmul.mubr.msk.bf16.gmra.mrb[80].mxu0 %vm585_vm2, %v6523_v47 }
  0xb9   :  { %6112 = vmatprep.mubr.msk.bf16.mxu0 %vm585_vm2, %v6524_v48 }
  0xc0   :  { %6113 = vmatmul.mubr.msk.bf16.gmra.mrb[84].mxu0 %vm585_vm2, %v6525_v49 }
  0xc1   :  { %6116 = vmatprep.mubr.msk.bf16.mxu0 %vm585_vm2, %v6526_v50 }
  0xc8   :  { %6117 = vmatmul.mubr.msk.bf16.gmra.mrb[88].mxu0 %vm585_vm2, %v6527_v51 }
  0xc9   :  { %6120 = vmatprep.mubr.msk.bf16.mxu0 %vm585_vm2, %v6528_v52 }
  0xd0   :  { %6121 = vmatmul.mubr.msk.bf16.gmra.mrb[92].mxu0 %vm585_vm2, %v6529_v53 }
  0xd1   :  { %6124 = vmatprep.mubr.msk.bf16.mxu0 %vm585_vm2, %v6530_v54 }
  0xd8   :  { %6125 = vmatmul.mubr.msk.bf16.gmra.mrb[96].mxu0 %vm585_vm2, %v6531_v55 }
  0xd9   :  { %6128 = vmatprep.mubr.msk.bf16.mxu0 %vm585_vm2, %v6532_v56 }
  0xe0   :  { %6129 = vmatmul.mubr.msk.bf16.gmra.mrb[100].mxu0 %vm585_vm2, %v6533_v57  ;;  %v6543_v57 = vld [vmem:[%s9559_s1 + $0x1e8] sm:$0xff]  }
  0xe1   :  { %6132 = vmatprep.mubr.msk.bf16.mxu0 %vm585_vm2, %v6534_v58 }
  0xe8   :  { %6133 = vmatmul.mubr.msk.bf16.gmra.mrb[104].mxu0 %vm585_vm2, %v6535_v59 }
  0xe9   :  { %6136 = vmatprep.mubr.msk.bf16.mxu0 %vm585_vm2, %v6536_v60 }
  0xeb   :  { %v6030_v62 = vpop.f32.mrb[0].mxu0 }
  0xec   :  { %v843_v63 = vpop.f32.mrb[1].mxu0  ;;  %v852_v18 = vadd.f32 %v6030_v62, %v6957_v61  ;;  %v6544_v62 = vld [vmem:[%s9559_s1 + $0x1f0] sm:$0xff]  }
  0xed   :  { %v844_v1 = vadd.f32 %v6957_v61, %v843_v63  ;;  %v6031_v2 = vpop.f32.mrb[2].mxu0 }
  0xee   :  { %v855_v4 = vadd.f32 %v6031_v2, %v6957_v61  ;;  %v846_v5 = vpop.f32.mrb[3].mxu0 }
  0xef   :  { %v847_v11 = vadd.f32 %v6957_v61, %v846_v5 }
  0xf0   :  { %v1412_v6 = vmax.f32 %v844_v1, %v855_v4  ;;  %6137 = vmatmul.mubr.msk.bf16.gmra.mrb[108].mxu0 %vm585_vm2, %v6537_v0 }
  0xf1   :  { %6140 = vmatprep.mubr.msk.bf16.mxu0 %vm585_vm2, %v6538_v3 }
  0xf3   :  { %v6034_v7 = vpop.f32.mrb[4].mxu0 }
  0xf4   :  { %v6970_v8 = vadd.f32 %v6034_v7, %v6957_v61  ;;  %v859_v9 = vpop.f32.mrb[5].mxu0 }
  0xf5   :  { %v860_v12 = vadd.f32 %v6957_v61, %v859_v9  ;;  %v6035_v13 = vpop.f32.mrb[6].mxu0  ;;  %v7034_v9 = vstv %s7006_s2 }
  0xf6   :  { %v1478_v15 = vmax.f32 %v1412_v6, %v6970_v8  ;;  %v6982_v16 = vadd.f32 %v6035_v13, %v6957_v61  ;;  %v862_v17 = vpop.f32.mrb[7].mxu0 }
  0xf7   :  { %v1413_v19 = vmax.f32 %v847_v11, %v860_v12  ;;  %v863_v20 = vadd.f32 %v6957_v61, %v862_v17  ;;  %v6651_v12 = vmov 0  }
  0xf8   :  { %6141 = vmatmul.mubr.msk.bf16.gmra.mrb[112].mxu0 %vm585_vm2, %v6539_v10  ;;  %v1611_v23 = vrot.slane %v1478_v15, 1  ;;  %v1853_v24 = vrot.slane %v1478_v15, 2  ;;  %v7039_v13 = vrot.slane %v6651_v12, 1 }
  0xf9   :  { %v1479_v21 = vmax.f32 %v1413_v19, %v6982_v16  ;;  %v1414_v22 = vmax.f32 %v852_v18, %v863_v20  ;;  %6144 = vmatprep.mubr.msk.bf16.mxu0 %vm585_vm2, %v6540_v14 }
  0xfb   :  { %v1612_v25 = vrot.slane %v1479_v21, 1  ;;  %v1854_v26 = vrot.slane %v1479_v21, 2  ;;  %v6038_v27 = vpop.f32.mrb[8].mxu0 }
  0xfc   :  { %v6990_v28 = vadd.f32 %v6038_v27, %v6957_v61  ;;  %v875_v29 = vpop.f32.mrb[9].mxu0 }
  0xfd   :  { %v1613_v31 = vsel %vm1610_vm3, %v1611_v23, %v1612_v25  ;;  %v1855_v32 = vsel %vm803_vm1, %v1853_v24, %v1854_v26  ;;  %v876_v33 = vadd.f32 %v6957_v61, %v875_v29  ;;  %v6039_v34 = vpop.f32.mrb[10].mxu0  ;;  %v6545_v29 = vld [vmem:[%s9559_s1 + $0x1f8] sm:$0xff]  }
  0xfe   :  { %v1787_v36 = vmax.f32 %v1478_v15, %v1613_v31  ;;  %v1416_v37 = vmax.f32 %v6982_v16, %v6990_v28  ;;  %v887_v38 = vadd.f32 %v6039_v34, %v6957_v61  ;;  %v878_v39 = vpop.f32.mrb[11].mxu0  ;;  %v6546_v34 = vld [vmem:[%s9559_s1 + $0x200] sm:$0xff]  }
  0xff   :  { %v1480_v40 = vmax.f32 %v1414_v22, %v876_v33  ;;  %v879_v41 = vadd.f32 %v6957_v61, %v878_v39 }
 0x100   :  { %v2029_v42 = vmax.f32 %v1787_v36, %v1855_v32  ;;  %v1417_v43 = vmax.f32 %v876_v33, %v887_v38  ;;  %6145 = vmatmul.mubr.msk.bf16.gmra.mrb[116].mxu0 %vm585_vm2, %v6541_v30 }
 0x101   :  { %v1614_v44 = vrot.slane %v1480_v40, 1  ;;  %v1856_v45 = vrot.slane %v1480_v40, 2  ;;  %v1415_v46 = vmax.f32 %v6970_v8, %v879_v41  ;;  %6148 = vmatprep.mubr.msk.bf16.mxu0 %vm585_vm2, %v6542_v35 }
 0x102   :  { %v2117_v47 = vrot.slane %v2029_v42, 1  ;;  %v2161_v48 = vrot.slane %v2029_v42, 2  ;;  %v2205_v4 = vrot.slane %v2029_v42, 3 }
 0x103   :  { %v1615_v49 = vsel %vm1610_vm3, %v1612_v25, %v1614_v44  ;;  %v1789_v50 = vmax.f32 %v1480_v40, %v1614_v44  ;;  %v1857_v51 = vsel %vm803_vm1, %v1854_v26, %v1856_v45  ;;  %v6042_v52 = vpop.f32.mrb[12].mxu0 }
 0x104   :  { %v2558_v53 = vsel %vm2557_vm4, %v2029_v42, %v2117_v47  ;;  %v1788_v54 = vmax.f32 %v1479_v21, %v1615_v49  ;;  %v7014_v55 = vadd.f32 %v6042_v52, %v6957_v61  ;;  %v891_v56 = vpop.f32.mrb[13].mxu0 }
 0x105   :  { %v7019_v58 = vmax.f32 %v1789_v50, %v1856_v45  ;;  %v892_v59 = vadd.f32 %v6957_v61, %v891_v56  ;;  %v6043_v60 = vpop.f32.mrb[14].mxu0  ;;  %v2581_v63 = vsel %vm2580_vm5, %v2558_v53, %v2161_v48 }
 0x106   :  { %v7026_v0 = vmax.f32 %v1788_v54, %v1857_v51  ;;  %v1483_v1 = vmax.f32 %v1417_v43, %v7014_v55  ;;  %v903_v2 = vadd.f32 %v6043_v60, %v6957_v61  ;;  %v894_v3 = vpop.f32.mrb[15].mxu0  ;;  %v2604_v14 = vsel %vm2603_vm6, %v2581_v63, %v2205_v4 }
 0x107   :  { %v1481_v5 = vmax.f32 %v1415_v46, %v892_v59  ;;  %v895_v6 = vadd.f32 %v6957_v61, %v894_v3  ;;  %v2469_v11 = vrot.slane %v7019_v58, 1 }
 0x108   :  { %v2271_v7 = vrot.slane %v7026_v0, 4  ;;  %v1619_v8 = vrot.slane %v1483_v1, 1  ;;  %6149 = vmatmul.mubr.msk.bf16.gmra.mrb[120].mxu0 %vm585_vm2, %v6543_v57  ;;  %v2315_v10 = vrot.slane %v7026_v0, 5  ;;  %v1861_v16 = vrot.slane %v1483_v1, 2 }
 0x109   :  { %6152 = vmatprep.mubr.msk.bf16.mxu0 %vm585_vm2, %v6544_v62  ;;  %v1418_v17 = vmax.f32 %v892_v59, %v903_v2  ;;  %v1482_v18 = vmax.f32 %v1416_v37, %v895_v6  ;;  %v2359_v19 = vrot.slane %v7026_v0, 6  ;;  %v1616_v21 = vrot.slane %v1481_v5, 1 }
 0x10a   :  { %v1792_v15 = vmax.f32 %v1483_v1, %v1619_v8  ;;  %v2627_v23 = vsel %vm2626_vm7, %v2604_v14, %v2271_v7  ;;  %v7053_v30 = vsel %vm2557_vm4, %v7019_v58, %v2469_v11  ;;  %v1858_v31 = vrot.slane %v1481_v5, 2  ;;  %v6548_v14 = vld [vmem:[%s9559_s1 + $0x210] sm:$0xff]  }
 0x10b   :  { %v6046_v22 = vpop.f32.mrb[16].mxu0  ;;  %v1617_v25 = vrot.slane %v1482_v18, 1  ;;  %v1859_v26 = vrot.slane %v1482_v18, 2  ;;  %v2649_v35 = vsel %vm802_vm0, %v2627_v23, %v2315_v10 }
 0x10c   :  { %v2034_v24 = vmax.f32 %v1792_v15, %v1861_v16  ;;  %v7046_v27 = vadd.f32 %v6046_v22, %v6957_v61  ;;  %v907_v28 = vpop.f32.mrb[17].mxu0 }
 0x10d   :  { %v908_v32 = vadd.f32 %v6957_v61, %v907_v28  ;;  %v6047_v33 = vpop.f32.mrb[18].mxu0  ;;  %v1618_v38 = vsel %vm1610_vm3, %v1616_v21, %v1617_v25  ;;  %v1620_v39 = vsel %vm1610_vm3, %v1617_v25, %v1619_v8  ;;  %v1860_v43 = vsel %vm803_vm1, %v1858_v31, %v1859_v26 }
 0x10e   :  { %v2470_v36 = vrot.slane %v2034_v24, 1  ;;  %v2514_v37 = vrot.slane %v2034_v24, 2  ;;  %v910_v40 = vpop.f32.mrb[19].mxu0  ;;  %v1790_v41 = vmax.f32 %v1481_v5, %v1618_v38  ;;  %v1791_v42 = vmax.f32 %v1482_v18, %v1620_v39 }
 0x10f   :  { %v1862_v44 = vsel %vm803_vm1, %v1859_v26, %v1861_v16  ;;  %v1484_v46 = vmax.f32 %v1418_v17, %v7046_v27  ;;  %v1419_v47 = vmax.f32 %v895_v6, %v908_v32  ;;  %v7067_v48 = vadd.f32 %v6047_v33, %v6957_v61  ;;  %v6547_v6 = vld [vmem:[%s9559_s1 + $0x208] sm:$0xff]  }
 0x110   :  { %v2716_v45 = vsel %vm2557_vm4, %v2034_v24, %v2470_v36  ;;  %6153 = vmatmul.mubr.msk.bf16.gmra.mrb[124].mxu0 %vm585_vm2, %v6545_v29  ;;  %v2032_v49 = vmax.f32 %v1790_v41, %v1860_v43  ;;  %v7070_v50 = vmax.f32 %v1791_v42, %v1862_v44  ;;  %v911_v51 = vadd.f32 %v6957_v61, %v910_v40 }
 0x111   :  { %6156 = vmatprep.mubr.msk.bf16.mxu0 %vm585_vm2, %v6546_v34  ;;  %v2738_v52 = vsel %vm2580_vm5, %v2716_v45, %v2514_v37  ;;  %v1621_v53 = vrot.slane %v1484_v46, 1  ;;  %v1863_v54 = vrot.slane %v1484_v46, 2  ;;  %v7076_v56 = vmax.f32 %v1419_v47, %v7067_v48  ;;  %v6549_v47 = vld [vmem:[%s9559_s1 + $0x218] sm:$0xff]  }
 0x112   :  { %v2118_v59 = vrot.slane %v2032_v49, 1  ;;  %v2162_v60 = vrot.slane %v2032_v49, 2  ;;  %v2206_v62 = vrot.slane %v2032_v49, 3  ;;  %vm2762_vm8 = vcmp.ge.f32.partialorder %v2738_v52, 0.0 }
 0x113   :  { %v6050_v63 = vpop.f32.mrb[20].mxu0  ;;  %v2272_v1 = vrot.slane %v7070_v50, 4  ;;  %v2316_v2 = vrot.slane %v7070_v50, 5  ;;  %v2360_v3 = vrot.slane %v7070_v50, 6  ;;  %v1622_v4 = vrot.slane %v7076_v56, 1 }
 0x114   :  { %v923_v5 = vpop.f32.mrb[21].mxu0  ;;  %v2559_v7 = vsel %vm2557_vm4, %v2032_v49, %v2118_v59  ;;  %v1864_v8 = vrot.slane %v7076_v56, 2  ;;  %v1420_v10 = vmax.f32 %v7014_v55, %v911_v51  ;;  %v7090_v11 = vadd.f32 %v6050_v63, %v6957_v61 }
 0x115   :  { %v6051_v12 = vpop.f32.mrb[22].mxu0  ;;  %v2582_v15 = vsel %vm2580_vm5, %v2559_v7, %v2162_v60  ;;  %v1623_v16 = vsel %vm1610_vm3, %v1621_v53, %v1622_v4  ;;  %v924_v17 = vadd.f32 %v6957_v61, %v923_v5  ;;  %v2807_v29 = vmul.f32 %v7034_v9, %v2738_v52  ;;  %v6550_v53 = vld [vmem:[%s9559_s1 + $0x220] sm:$0xff]  }
 0x116   :  { %v935_v18 = vadd.f32 %v6051_v12, %v6957_v61  ;;  %v926_v21 = vpop.f32.mrb[23].mxu0  ;;  %v1793_v22 = vmax.f32 %v1484_v46, %v1623_v16  ;;  %v1865_v55 = vsel %vm803_vm1, %v1863_v54, %v1864_v8  ;;  %v1422_v23 = vmax.f32 %v7067_v48, %v7090_v11 }
 0x117   :  { %v927_v24 = vadd.f32 %v6957_v61, %v926_v21  ;;  %v1486_v25 = vmax.f32 %v1420_v10, %v924_v17  ;;  %v2605_v28 = vsel %vm2603_vm6, %v2582_v15, %v2206_v62  ;;  %v7112_v34 = vsel %vm803_vm1, %v2649_v35, %v2359_v19 }
 0x118   :  { %v1423_v26 = vmax.f32 %v924_v17, %v935_v18  ;;  %6157 = vmatmul.mubr.msk.bf16.gmra.mrb[128].mxu0 %vm585_vm2, %v6547_v6  ;;  %v2035_v31 = vmax.f32 %v1793_v22, %v1865_v55  ;;  %v2628_v33 = vsel %vm2626_vm7, %v2605_v28, %v2272_v1  ;;  %v2404_v36 = vrot.slane %v7070_v50, 7  ;;  %v6551_v28 = vld [vmem:[%s9559_s1 + $0x228] sm:$0xff]  }
 0x119   :  { %v1421_v32 = vmax.f32 %v7046_v27, %v927_v24  ;;  %6160 = vmatprep.mubr.msk.bf16.mxu0 %vm585_vm2, %v6548_v14  ;;  %v1624_v37 = vrot.slane %v1486_v25, 1  ;;  %v1866_v38 = vrot.slane %v1486_v25, 2  ;;  %v2650_v39 = vsel %vm802_vm0, %v2628_v33, %v2316_v2 }
 0x11a   :  { %v2119_v40 = vrot.slane %v2035_v31, 1  ;;  %v2163_v41 = vrot.slane %v2035_v31, 2  ;;  %v2672_v27 = vsel %vm803_vm1, %v2650_v39, %v2360_v3  ;;  %v7118_v43 = vsel %vm2762_vm8, %v2738_v52, %v2807_v29 }
 0x11b   :  { %v6054_v42 = vpop.f32.mrb[24].mxu0  ;;  %v1625_v44 = vsel %vm1610_vm3, %v1622_v4, %v1624_v37  ;;  %v1795_v45 = vmax.f32 %v1486_v25, %v1624_v37  ;;  %v1867_v19 = vsel %vm803_vm1, %v1864_v8, %v1866_v38  ;;  %v2694_v52 = vsel %vm1610_vm3, %v2672_v27, %v2404_v36 }
 0x11c   :  { %v7123_v35 = vadd.f32 %v6054_v42, %v6957_v61  ;;  %v939_v46 = vpop.f32.mrb[25].mxu0  ;;  %v2560_v48 = vsel %vm2557_vm4, %v2035_v31, %v2119_v40  ;;  %v1794_v49 = vmax.f32 %v7076_v56, %v1625_v44  ;;  %v2207_v54 = vrot.slane %v2035_v31, 3 }
 0x11d   :  { %v940_v50 = vadd.f32 %v6957_v61, %v939_v46  ;;  %v6055_v51 = vpop.f32.mrb[26].mxu0  ;;  %v2037_v59 = vmax.f32 %v1795_v45, %v1866_v38  ;;  %v2583_v1 = vsel %vm2580_vm5, %v2560_v48, %v2163_v41  ;;  %vm2761_vm10 = vcmp.ge.f32.partialorder %v2694_v52, 0.0  ;;  %v6552_v38 = vld [vmem:[%s9559_s1 + $0x230] sm:$0xff]  }
 0x11e   :  { %v1489_v60 = vmax.f32 %v1423_v26, %v7123_v35  ;;  %v951_v62 = vadd.f32 %v6055_v51, %v6957_v61  ;;  %v942_v63 = vpop.f32.mrb[27].mxu0  ;;  %v7138_v56 = vmax.f32 %v1794_v49, %v1867_v19  ;;  %v2806_v22 = vmul.f32 %v7034_v9, %v2694_v52 }
 0x11f   :  { %v1487_v2 = vmax.f32 %v1421_v32, %v940_v50  ;;  %v7141_v3 = vadd.f32 %v6957_v61, %v942_v63  ;;  %v2471_v4 = vrot.slane %v2037_v59, 1  ;;  %v2515_v5 = vrot.slane %v2037_v59, 2 }
 0x120   :  { %v1629_v6 = vrot.slane %v1489_v60, 1  ;;  %6161 = vmatmul.mubr.msk.bf16.gmra.mrb[132].mxu0 %vm585_vm2, %v6549_v47  ;;  %v2273_v7 = vrot.slane %v7138_v56, 4  ;;  %v2317_v8 = vrot.slane %v7138_v56, 5  ;;  %v2361_v10 = vrot.slane %v7138_v56, 6 }
 0x121   :  { %v1871_v11 = vrot.slane %v1489_v60, 2  ;;  %6164 = vmatprep.mubr.msk.bf16.mxu0 %vm585_vm2, %v6550_v53  ;;  %v2717_v12 = vsel %vm2557_vm4, %v2037_v59, %v2471_v4  ;;  %v1626_v15 = vrot.slane %v1487_v2, 1  ;;  %v1424_v16 = vmax.f32 %v940_v50, %v951_v62 }
 0x122   :  { %v1798_v14 = vmax.f32 %v1489_v60, %v1629_v6  ;;  %v1868_v17 = vrot.slane %v1487_v2, 2  ;;  %v1488_v18 = vmax.f32 %v1422_v23, %v7141_v3  ;;  %v2606_v55 = vsel %vm2603_vm6, %v2583_v1, %v2207_v54 }
 0x123   :  { %v6058_v21 = vpop.f32.mrb[28].mxu0  ;;  %v2405_v29 = vrot.slane %v7138_v56, 7  ;;  %v7160_v31 = vsel %vm2626_vm7, %v2606_v55, %v2273_v7  ;;  %v2850_v36 = vsel %vm2761_vm10, %v2694_v52, %v2806_v22  ;;  %v6556_v56 = vld [vmem:[%s9562_s4 + $0x3c] sm:$0xff]  }
 0x124   :  { %v2040_v24 = vmax.f32 %v1798_v14, %v1871_v11  ;;  %v7153_v25 = vadd.f32 %v6058_v21, %v6957_v61  ;;  %v955_v26 = vpop.f32.mrb[29].mxu0  ;;  %v1627_v23 = vrot.slane %v1488_v18, 1  ;;  %v1869_v32 = vrot.slane %v1488_v18, 2 }
 0x125   :  { %v956_v33 = vadd.f32 %v6957_v61, %v955_v26  ;;  %v6059_v37 = vpop.f32.mrb[30].mxu0  ;;  %v2893_v42 = vpack.c.bf16 %v7118_v43, %v2850_v36  ;;  %v7184_v43 = vsel %vm2580_vm5, %v2717_v12, %v2515_v5 }
 0x126   :  { %v2472_v39 = vrot.slane %v2040_v24, 1  ;;  %v2516_v40 = vrot.slane %v2040_v24, 2  ;;  %v7168_v41 = vmax.f32 %v1424_v16, %v7153_v25  ;;  %v958_v27 = vpop.f32.mrb[31].mxu0  ;;  %v1628_v44 = vsel %vm1610_vm3, %v1626_v15, %v1627_v23  ;;  %v6554_v16 = vld [vmem:[%s9562_s4 + $0x2c] sm:$0xff]  }
 0x127   :  { %v1630_v45 = vsel %vm1610_vm3, %v1627_v23, %v1629_v6  ;;  %v1870_v19 = vsel %vm803_vm1, %v1868_v17, %v1869_v32  ;;  %v1872_v46 = vsel %vm803_vm1, %v1869_v32, %v1871_v11  ;;  %v1796_v48 = vmax.f32 %v1487_v2, %v1628_v44  ;;  %v6553_v6 = vld [vmem:[%s9559_s1 + $0x238] sm:$0xff]   ;;  %s6652_s1 = smov 56   ;;  %6172 = vmatprep.subr.bf16.mxu1 %v6554_v16 }
 0x128   :  { %v2718_v47 = vsel %vm2557_vm4, %v2040_v24, %v2472_v39  ;;  %v1797_v49 = vmax.f32 %v1488_v18, %v1630_v45  ;;  %6165 = vmatmul.mubr.msk.bf16.gmra.mrb[136].mxu0 %vm585_vm2, %v6551_v28  ;;  %v1631_v52 = vrot.slane %v7168_v41, 1  ;;  %v1425_v53 = vmax.f32 %v7141_v3, %v956_v33  ;;  %6173 = vmatpush3.bf16.msra.mxu1 %v6554_v16 }
 0x129   :  { %v7187_v51 = vsel %vm2580_vm5, %v2718_v47, %v2516_v40  ;;  %v7193_v54 = vsel %vm7178_vm11, %v2893_v42, 0  ;;  %6168 = vmatprep.mubr.msk.bf16.mxu0 %vm585_vm2, %v6552_v38  ;;  %v2038_v59 = vmax.f32 %v1796_v48, %v1870_v19  ;;  %v1873_v62 = vrot.slane %v7168_v41, 2 }
 0x12a   :  { %v7196_v60 = vmax.f32 %v1797_v49, %v1872_v46  ;;  %v3147_v63 = vrot.slane %v7193_v54, 1  ;;  %v7202_v1 = vmul.f32 %v7034_v9, %v7187_v51  ;;  %v7205_v2 = vadd.f32 %v6059_v37, %v6957_v61 }
 0x12b   :  { %v959_v3 = vadd.f32 %v6957_v61, %v958_v27  ;;  %v2955_v4 = vshll.u32 %v7193_v54, 16  ;;  %v6062_v5 = vpop.f32.mrb[32].mxu0  ;;  %v2120_v7 = vrot.slane %v2038_v59, 1  ;;  %v2164_v11 = vrot.slane %v2038_v59, 2 }
 0x12c   :  { %v2208_v12 = vrot.slane %v2038_v59, 3  ;;  %v2953_v14 = vshrl.u32 %v7193_v54, 16  ;;  %v971_v15 = vpop.f32.mrb[33].mxu0  ;;  %v2274_v17 = vrot.slane %v7196_v60, 4  ;;  %v2318_v18 = vrot.slane %v7196_v60, 5 }
 0x12d   :  { %v2362_v21 = vrot.slane %v7196_v60, 6  ;;  %v3148_v22 = vsel %vm1610_vm3, %v3147_v63, %v7039_v13  ;;  %v6063_v55 = vpop.f32.mrb[34].mxu0  ;;  %v2561_v24 = vsel %vm2557_vm4, %v2038_v59, %v2120_v7  ;;  %v1491_v26 = vmax.f32 %v1425_v53, %v7205_v2 }
 0x12e   :  { %3183 = vrot.lane.b32.xlu1 %v3148_v22, %s6652_s1  ;;  %v1426_v28 = vmax.f32 %v7123_v35, %v959_v3  ;;  %v2957_v23 = vrot.slane %v2955_v4, 1  ;;  %v974_v32 = vpop.f32.mrb[35].mxu0  ;;  %v2584_v33 = vsel %vm2580_vm5, %v2561_v24, %v2164_v11  ;;  %v7227_v36 = vadd.f32 %v6062_v5, %v6957_v61  ;;  %v6555_v35 = vld [vmem:[%s9562_s4 + $0x34] sm:$0xff]  }
 0x12f   :  { %v972_v37 = vadd.f32 %v6957_v61, %v971_v15  ;;  %v983_v38 = vadd.f32 %v6063_v55, %v6957_v61  ;;  %v2607_v39 = vsel %vm2603_vm6, %v2584_v33, %v2208_v12  ;;  %v1632_v40 = vrot.slane %v1491_v26, 1  ;;  %6174 = vmatprep.subr.bf16.mxu1 %v6555_v35 }
 0x130   :  { %v1874_v42 = vrot.slane %v1491_v26, 2  ;;  %v2958_v27 = vor.u32 %v2957_v23, %v2953_v14  ;;  %6169 = vmatmul.mubr.msk.bf16.gmra.mrb[140].mxu0 %vm585_vm2, %v6553_v6  ;;  %v2630_v44 = vsel %vm2626_vm7, %v2607_v39, %v2274_v17  ;;  %v1428_v45 = vmax.f32 %v7205_v2, %v7227_v36  ;;  %6175 = vmatpush3.bf16.msra.mxu1 %v6555_v35 }
 0x131   :  { %v1492_v19 = vmax.f32 %v1426_v28, %v972_v37  ;;  %v1429_v46 = vmax.f32 %v972_v37, %v983_v38  ;;  %v7240_v47 = vsel %vm802_vm0, %v2630_v44, %v2318_v18  ;;  %v1633_v48 = vsel %vm1610_vm3, %v1631_v52, %v1632_v40  ;;  %6176 = vmatprep.subr.bf16.mxu1 %v6556_v56 }
 0x132   :  { %v1875_v49 = vsel %vm803_vm1, %v1873_v62, %v1874_v42  ;;  %v2959_v53 = vsel %vm2939_vm12, %v2958_v27, %v7039_v13  ;;  %v1799_v59 = vmax.f32 %v7168_v41, %v1633_v48  ;;  %v975_v4 = vadd.f32 %v6957_v61, %v974_v32 }
 0x133   :  { %3090 = vrot.lane.b32.xlu0 %v2959_v53, %s6653_s21  ;;  %v1634_v63 = vrot.slane %v1492_v19, 1  ;;  %v1876_v3 = vrot.slane %v1492_v19, 2  ;;  %v6066_v5 = vpop.f32.mrb[36].mxu0  ;;  %v2651_v52 = vsel %vm802_vm0, %v7160_v31, %v2317_v8  ;;  %vm2764_vm13 = vcmp.ge.f32.partialorder %v7184_v43, 0.0 }
 0x134   :  { %v2809_v62 = vmul.f32 %v7034_v9, %v7184_v43  ;;  %v7257_v41 = vadd.f32 %v6066_v5, %v6957_v61  ;;  %v987_v6 = vpop.f32.mrb[37].mxu0  ;;  %v2041_v7 = vmax.f32 %v1799_v59, %v1875_v49  ;;  %v2406_v16 = vrot.slane %v7196_v60, 7  ;;  %6177 = vmatpush3.bf16.msra.mxu1 %v6556_v56 }
 0x135   :  { %v1635_v11 = vsel %vm1610_vm3, %v1632_v40, %v1634_v63  ;;  %v1801_v12 = vmax.f32 %v1492_v19, %v1634_v63  ;;  %v1877_v14 = vsel %vm803_vm1, %v1874_v42, %v1876_v3  ;;  %v6067_v15 = vpop.f32.mrb[38].mxu0  ;;  %v1427_v8 = vmax.f32 %v7153_v25, %v975_v4 }
 0x136   :  { %v1800_v17 = vmax.f32 %v1491_v26, %v1635_v11  ;;  %v2673_v31 = vsel %vm803_vm1, %v2651_v52, %v2361_v10  ;;  %v990_v18 = vpop.f32.mrb[39].mxu0  ;;  %v2121_v22 = vrot.slane %v2041_v7, 1  ;;  %v2165_v55 = vrot.slane %v2041_v7, 2 }
 0x137   :  { %v2043_v24 = vmax.f32 %v1801_v12, %v1876_v3  ;;  %v2853_v28 = vsel %vm2764_vm13, %v7184_v43, %v2809_v62  ;;  %v2695_v26 = vsel %vm1610_vm3, %v2673_v31, %v2405_v29  ;;  %v7275_v25 = vmax.f32 %v1429_v46, %v7257_v41  ;;  %v6557_v29 = vld [vmem:[%s9562_s4 + $0x44] sm:$0xff]  }
 0x138   :  { %v7269_v23 = vmax.f32 %v1800_v17, %v1877_v14  ;;  %v988_v32 = vadd.f32 %v6957_v61, %v987_v6  ;;  %v2209_v10 = vrot.slane %v2041_v7, 3  ;;  %v2562_v33 = vsel %vm2557_vm4, %v2041_v7, %v2121_v22  ;;  %6178 = vmatprep.subr.bf16.mxu1 %v6557_v29  ;;  %v6558_v14 = vld [vmem:[%s9562_s4 + $0x4c] sm:$0xff]  }
 0x139   :  { %v2473_v37 = vrot.slane %v2043_v24, 1  ;;  %v2517_v38 = vrot.slane %v2043_v24, 2  ;;  %v2585_v39 = vsel %vm2580_vm5, %v2562_v33, %v2165_v55  ;;  %vm2763_vm14 = vcmp.ge.f32.partialorder %v2695_v26, 0.0  ;;  %6179 = vmatpush3.bf16.msra.mxu1 %v6557_v29  ;;  %v6559_v29 = vld [vmem:[%s9562_s4 + $0x54] ss:$0 sps:$4 sm:$0x33]  }
 0x13a   :  { %v2275_v43 = vrot.slane %v7269_v23, 4  ;;  %v2319_v40 = vrot.slane %v7269_v23, 5  ;;  %v7289_v42 = vsel %vm2603_vm6, %v2585_v39, %v2209_v10  ;;  %v2363_v27 = vrot.slane %v7269_v23, 6  ;;  %6180 = vmatprep.subr.bf16.mxu1 %v6558_v14 }
 0x13b   :  { %v2719_v35 = vsel %vm2557_vm4, %v2043_v24, %v2473_v37  ;;  %v2808_v44 = vmul.f32 %v7034_v9, %v2695_v26  ;;  %v6070_v19 = vpop.f32.mrb[40].mxu0  ;;  %v2407_v46 = vrot.slane %v7269_v23, 7  ;;  %v1639_v49 = vrot.slane %v7275_v25, 1 }
 0x13c   :  { %v7296_v48 = vsel %vm2580_vm5, %v2719_v35, %v2517_v38  ;;  %v1493_v53 = vmax.f32 %v1427_v8, %v988_v32  ;;  %v1003_v59 = vpop.f32.mrb[41].mxu0  ;;  %v1881_v3 = vrot.slane %v7275_v25, 2  ;;  %v999_v4 = vadd.f32 %v6067_v15, %v6957_v61 }
 0x13d   :  { %v2852_v63 = vsel %vm2763_vm14, %v2695_v26, %v2808_v44  ;;  %v7302_v5 = vadd.f32 %v6957_v61, %v990_v18  ;;  %v6071_v52 = vpop.f32.mrb[42].mxu0  ;;  %v7306_v62 = vmul.f32 %v7034_v9, %v7296_v48  ;;  %v1804_v7 = vmax.f32 %v7275_v25, %v1639_v49  ;;  %6181 = vmatpush3.bf16.msra.mxu1 %v6558_v14 }
 0x13e   :  { %v2894_v6 = vpack.c.bf16 %v2853_v28, %v2852_v63  ;;  %v1636_v11 = vrot.slane %v1493_v53, 1  ;;  %v1006_v12 = vpop.f32.mrb[43].mxu0  ;;  %v1878_v15 = vrot.slane %v1493_v53, 2  ;;  %v1430_v17 = vmax.f32 %v988_v32, %v999_v4  ;;  %6468 = vmatprep.subr.msk.bf16.mxu1 %vm2580_vm5, %v6559_v29 }
 0x13f   :  { %v1494_v8 = vmax.f32 %v1428_v45, %v7302_v5  ;;  %v7317_v31 = vadd.f32 %v6070_v19, %v6957_v61  ;;  %v2046_v22 = vmax.f32 %v1804_v7, %v1881_v3  ;;  %v1004_v55 = vadd.f32 %v6957_v61, %v1003_v59 }
 0x140   :  { %v7321_v18 = vsel %vm7178_vm11, %v2894_v6, 0  ;;  %v7325_v24 = vadd.f32 %v6957_v61, %v1006_v12  ;;  %v7348_v7 = vadd.f32 %v6071_v52, %v6957_v61  ;;  %vm2766_vm15 = vcmp.ge.f32.partialorder %v7187_v51, 0.0 }
 0x141   :  { %v3149_v28 = vrot.slane %v7321_v18, 1  ;;  %v2961_v26 = vshrl.u32 %v7321_v18, 16  ;;  %v2963_v2 = vshll.u32 %v7321_v18, 16  ;;  %v1637_v36 = vrot.slane %v1494_v8, 1 }
 0x142   :  { %v2474_v45 = vrot.slane %v2046_v22, 1  ;;  %v2518_v25 = vrot.slane %v2046_v22, 2  ;;  %v1879_v32 = vrot.slane %v1494_v8, 2  ;;  %v7331_v10 = vmax.f32 %v1430_v17, %v7317_v31 }
 0x143   :  { %v3150_v33 = vsel %vm1610_vm3, %v3149_v28, %v7039_v13  ;;  %v2965_v37 = vrot.slane %v2963_v2, 1  ;;  %v1638_v38 = vsel %vm1610_vm3, %v1636_v11, %v1637_v36  ;;  %v1640_v39 = vsel %vm1610_vm3, %v1637_v36, %v1639_v49  ;;  %v6074_v56 = vpop.f32.mrb[44].mxu0 }
 0x144   :  { %3185 = vrot.lane.b32.xlu1 %v3150_v33, %s6652_s1  ;;  %v2720_v35 = vsel %vm2557_vm4, %v2046_v22, %v2474_v45  ;;  %v1802_v44 = vmax.f32 %v1493_v53, %v1638_v38  ;;  %v1803_v19 = vmax.f32 %v1494_v8, %v1640_v39  ;;  %v1880_v59 = vsel %vm803_vm1, %v1878_v15, %v1879_v32  ;;  %v1019_v63 = vpop.f32.mrb[45].mxu0 }
 0x145   :  { %v7344_v4 = vsel %vm2580_vm5, %v2720_v35, %v2518_v25  ;;  %v2966_v6 = vor.u32 %v2965_v37, %v2961_v26  ;;  %v1882_v49 = vsel %vm803_vm1, %v1879_v32, %v1881_v3  ;;  %v6075_v11 = vpop.f32.mrb[46].mxu0  ;;  %v1641_v15 = vrot.slane %v7331_v10, 1 }
 0x146   :  { %v7352_v12 = vmul.f32 %v7034_v9, %v7344_v4  ;;  %v2044_v53 = vmax.f32 %v1802_v44, %v1880_v59  ;;  %v7354_v17 = vmax.f32 %v1803_v19, %v1882_v49  ;;  %v1022_v8 = vpop.f32.mrb[47].mxu0  ;;  %v1431_v52 = vmax.f32 %v7302_v5, %v1004_v55 }
 0x147   :  { %v2967_v3 = vsel %vm2939_vm12, %v2966_v6, %v7039_v13  ;;  %v1432_v14 = vmax.f32 %v7257_v41, %v7325_v24  ;;  %v2674_v22 = vsel %vm803_vm1, %v7240_v47, %v2362_v21  ;;  %v1883_v36 = vrot.slane %v7331_v10, 2 }
 0x148   :  { %3092 = vrot.lane.b32.xlu0 %v2967_v3, %s6653_s21  ;;  %v2122_v28 = vrot.slane %v2044_v53, 1  ;;  %v2166_v26 = vrot.slane %v2044_v53, 2  ;;  %v2210_v2 = vrot.slane %v2044_v53, 3  ;;  %v2276_v45 = vrot.slane %v7354_v17, 4 }
 0x149   :  { %v2320_v25 = vrot.slane %v7354_v17, 5  ;;  %v2364_v5 = vrot.slane %v7354_v17, 6  ;;  %v1497_v41 = vmax.f32 %v1431_v52, %v7348_v7  ;;  %v2696_v21 = vsel %vm1610_vm3, %v2674_v22, %v2406_v16 }
 0x14a   :  { %v2563_v55 = vsel %vm2557_vm4, %v2044_v53, %v2122_v28  ;;  %v7379_v47 = vadd.f32 %v6074_v56, %v6957_v61  ;;  %vm2765_vm2 = vcmp.ge.f32.partialorder %v2696_v21, 0.0  ;;  %v2810_v39 = vmul.f32 %v7034_v9, %v2696_v21 }
 0x14b   :  { %v2586_v24 = vsel %vm2580_vm5, %v2563_v55, %v2166_v26  ;;  %v1642_v32 = vrot.slane %v1497_v41, 1  ;;  %v1884_v33 = vrot.slane %v1497_v41, 2  ;;  %v6078_v37 = vpop.f32.mrb[48].mxu0  ;;  %v2855_v60 = vsel %vm2766_vm15, %v7187_v51, %v7202_v1 }
 0x14c   :  { %v2609_v38 = vsel %vm2603_vm6, %v2586_v24, %v2210_v2  ;;  %v1434_v16 = vmax.f32 %v7348_v7, %v7379_v47  ;;  %v7388_v29 = vpop.f32.mrb[49].mxu0  ;;  %v1020_v19 = vadd.f32 %v6957_v61, %v1019_v63  ;;  %v2854_v1 = vsel %vm2765_vm2, %v2696_v21, %v2810_v39 }
 0x14d   :  { %v2632_v56 = vsel %vm2626_vm7, %v2609_v38, %v2276_v45  ;;  %v1643_v35 = vsel %vm1610_vm3, %v1641_v15, %v1642_v32  ;;  %v1885_v44 = vsel %vm803_vm1, %v1883_v36, %v1884_v33  ;;  %v7394_v59 = vpop.f32.mrb[50].mxu0  ;;  %v1031_v49 = vadd.f32 %v6075_v11, %v6957_v61 }
 0x14e   :  { %v7397_v6 = vsel %vm802_vm0, %v2632_v56, %v2320_v25  ;;  %v1805_v51 = vmax.f32 %v7331_v10, %v1643_v35  ;;  %v1038_v53 = vpop.f32.mrb[51].mxu0  ;;  %v2408_v3 = vrot.slane %v7354_v17, 7  ;;  %v2895_v52 = vpack.c.bf16 %v2855_v60, %v2854_v1 }
 0x14f   :  { %v1498_v22 = vmax.f32 %v1432_v14, %v1020_v19  ;;  %v1023_v15 = vadd.f32 %v6957_v61, %v1022_v8  ;;  %v1435_v26 = vmax.f32 %v1020_v19, %v1031_v49  ;;  %v7404_v63 = vadd.f32 %v6078_v37, %v6957_v61 }
 0x150   :  { %v2047_v28 = vmax.f32 %v1805_v51, %v1885_v44  ;;  %v2631_v10 = vsel %vm2626_vm7, %v7289_v42, %v2275_v43  ;;  %v7412_v11 = vsel %vm7178_vm11, %v2895_v52, 0  ;;  %vm2768_vm8 = vcmp.ge.f32.partialorder %v7296_v48, 0.0 }
 0x151   :  { %v1644_v2 = vrot.slane %v1498_v22, 1  ;;  %v1886_v36 = vrot.slane %v1498_v22, 2  ;;  %v1433_v14 = vmax.f32 %v7317_v31, %v1023_v15  ;;  %v2969_v55 = vshrl.u32 %v7412_v11, 16 }
 0x152   :  { %v2123_v45 = vrot.slane %v2047_v28, 1  ;;  %v2167_v8 = vrot.slane %v2047_v28, 2  ;;  %v2211_v25 = vrot.slane %v2047_v28, 3  ;;  %v2971_v21 = vshll.u32 %v7412_v11, 16 }
 0x153   :  { %v1645_v24 = vsel %vm1610_vm3, %v1642_v32, %v1644_v2  ;;  %v1807_v37 = vmax.f32 %v1498_v22, %v1644_v2  ;;  %v1887_v43 = vsel %vm803_vm1, %v1884_v33, %v1886_v36  ;;  %v6082_v42 = vpop.f32.mrb[52].mxu0  ;;  %v3151_v60 = vrot.slane %v7412_v11, 1 }
 0x154   :  { %v2564_v38 = vsel %vm2557_vm4, %v2047_v28, %v2123_v45  ;;  %v1806_v39 = vmax.f32 %v1497_v41, %v1645_v24  ;;  %v7422_v31 = vmax.f32 %v1435_v26, %v7404_v63  ;;  %v1051_v56 = vpop.f32.mrb[53].mxu0  ;;  %v2973_v44 = vrot.slane %v2971_v21, 1 }
 0x155   :  { %v2587_v35 = vsel %vm2580_vm5, %v2564_v38, %v2167_v8  ;;  %v2049_v19 = vmax.f32 %v1807_v37, %v1886_v36  ;;  %v2653_v32 = vsel %vm802_vm0, %v2631_v10, %v2319_v40  ;;  %v6083_v51 = vpop.f32.mrb[54].mxu0  ;;  %v3152_v28 = vsel %vm1610_vm3, %v3151_v60, %v7039_v13 }
 0x156   :  { %v7429_v33 = vsel %vm2603_vm6, %v2587_v35, %v2211_v25  ;;  %v7431_v1 = vmax.f32 %v1806_v39, %v1887_v43  ;;  %v1649_v41 = vrot.slane %v7422_v31, 1  ;;  %v1054_v49 = vpop.f32.mrb[55].mxu0  ;;  %v2974_v52 = vor.u32 %v2973_v44, %v2969_v55 }
 0x157   :  { %v2475_v22 = vrot.slane %v2049_v19, 1  ;;  %v2519_v15 = vrot.slane %v2049_v19, 2  ;;  %v1891_v2 = vrot.slane %v7422_v31, 2  ;;  %v2675_v25 = vsel %vm803_vm1, %v2653_v32, %v2363_v27 }
 0x158   :  { %v2277_v26 = vrot.slane %v7431_v1, 4  ;;  %v2321_v40 = vrot.slane %v7431_v1, 5  ;;  %v2365_v10 = vrot.slane %v7431_v1, 6  ;;  %v2975_v36 = vsel %vm2939_vm12, %v2974_v52, %v7039_v13 }
 0x159   :  { %v2721_v45 = vsel %vm2557_vm4, %v2049_v19, %v2475_v22  ;;  %v1810_v8 = vmax.f32 %v7422_v31, %v1649_v41  ;;  %3094 = vrot.lane.b32.xlu0 %v2975_v36, %s6653_s21  ;;  %v2409_v55 = vrot.slane %v7431_v1, 7  ;;  %v2697_v24 = vsel %vm1610_vm3, %v2675_v25, %v2407_v46 }
 0x15a   :  { %v7451_v21 = vsel %vm2580_vm5, %v2721_v45, %v2519_v15  ;;  %v1036_v37 = vadd.f32 %v6957_v61, %v7388_v29  ;;  %vm2767_vm9 = vcmp.ge.f32.partialorder %v2697_v24, 0.0  ;;  %v2812_v38 = vmul.f32 %v7034_v9, %v2697_v24  ;;  %v7471_v29 = vld [vmem:[%s9561_s3] ss:$0 sm:$0xff] }
 0x15b   :  { %v2052_v43 = vmax.f32 %v1810_v8, %v1891_v2  ;;  %v2857_v27 = vsel %vm2768_vm8, %v7296_v48, %v7306_v62  ;;  %v7463_v39 = vpop.f32.mrb[56].mxu0  ;;  %v1047_v23 = vadd.f32 %v7394_v59, %v6957_v61  ;;  %v1039_v46 = vadd.f32 %v6957_v61, %v1038_v53 }
 0x15c   :  { %v1499_v60 = vmax.f32 %v1433_v14, %v1036_v37  ;;  %v7474_v31 = vadd.f32 %v7471_v29, %v6082_v42  ;;  %v7476_v35 = vpop.f32.mrb[57].mxu0  ;;  %v2856_v62 = vsel %vm2767_vm9, %v2697_v24, %v2812_v38  ;;  %v1052_v14 = vadd.f32 %v7471_v29, %v1051_v56 }
 0x15d   :  { %v2476_v44 = vrot.slane %v2052_v43, 1  ;;  %v2520_v48 = vrot.slane %v2052_v43, 2  ;;  %v7479_v19 = vpop.f32.mrb[58].mxu0  ;;  %v7483_v61 = vmul.f32 %v7034_v9, %v7451_v21  ;;  %3187 = vrot.lane.b32.xlu0 %v3152_v28, %s6652_s1  ;;  %v2896_v59 = vpack.c.bf16 %v2857_v27, %v2856_v62 }
 0x15e   :  { %v1646_v53 = vrot.slane %v1499_v60, 1  ;;  %v1436_v32 = vmax.f32 %v1036_v37, %v1047_v23  ;;  %v7486_v42 = vpop.f32.mrb[59].mxu0  ;;  %v1500_v22 = vmax.f32 %v1434_v16, %v1039_v46  ;;  %v1437_v56 = vmax.f32 %v1039_v46, %v1052_v14 }
 0x15f   :  { %v2722_v52 = vsel %vm2557_vm4, %v2052_v43, %v2476_v44  ;;  %v7493_v15 = vadd.f32 %v7471_v29, %v6083_v51  ;;  %v7500_v28 = vsel %vm7178_vm11, %v2896_v59, 0  ;;  %v1888_v45 = vrot.slane %v1499_v60, 2 }
 0x160   :  { %v7496_v36 = vsel %vm2580_vm5, %v2722_v52, %v2520_v48  ;;  %v1502_v8 = vmax.f32 %v1436_v32, %v7474_v31  ;;  %v2979_v7 = vshll.u32 %v7500_v28, 16  ;;  %v1647_v47 = vrot.slane %v1500_v22, 1 }
 0x161   :  { %v7505_v25 = vmul.f32 %v7034_v9, %v7496_v36  ;;  %v1055_v16 = vadd.f32 %v7471_v29, %v1054_v49  ;;  %v2977_v51 = vshrl.u32 %v7500_v28, 16  ;;  %v1889_v24 = vrot.slane %v1500_v22, 2 }
 0x162   :  { %v3153_v37 = vrot.slane %v7500_v28, 1  ;;  %v1651_v43 = vrot.slane %v1502_v8, 1  ;;  %v2981_v38 = vrot.slane %v2979_v7, 1  ;;  %v1648_v27 = vsel %vm1610_vm3, %v1646_v53, %v1647_v47 }
 0x163   :  { %v1650_v23 = vsel %vm1610_vm3, %v1647_v47, %v1649_v41  ;;  %v7514_v46 = vmax.f32 %v1437_v56, %v7493_v15  ;;  %v6090_v44 = vpop.f32.mrb[60].mxu0  ;;  %v1808_v48 = vmax.f32 %v1499_v60, %v1648_v27  ;;  %v1890_v14 = vsel %vm803_vm1, %v1888_v45, %v1889_v24 }
 0x164   :  { %v1809_v62 = vmax.f32 %v1500_v22, %v1650_v23  ;;  %v1892_v49 = vsel %vm803_vm1, %v1889_v24, %v1891_v2  ;;  %v7518_v59 = vpop.f32.mrb[61].mxu0  ;;  %v2982_v32 = vor.u32 %v2981_v38, %v2977_v51  ;;  %v1893_v52 = vrot.slane %v1502_v8, 2 }
 0x165   :  { %v1652_v7 = vrot.slane %v7514_v46, 1  ;;  %v1894_v53 = vrot.slane %v7514_v46, 2  ;;  %v7522_v20 = vpop.f32.mrb[62].mxu0  ;;  %v2050_v41 = vmax.f32 %v1808_v48, %v1890_v14  ;;  %v1438_v60 = vmax.f32 %v7404_v63, %v1055_v16 }
 0x166   :  { %v7524_v56 = vmax.f32 %v1809_v62, %v1892_v49  ;;  %v2676_v2 = vsel %vm803_vm1, %v7397_v6, %v2364_v5  ;;  %v7531_v22 = vpop.f32.mrb[63].mxu0  ;;  %v2983_v45 = vsel %vm2939_vm12, %v2982_v32, %v7039_v13  ;;  %v3154_v5 = vsel %vm1610_vm3, %v3153_v37, %v7039_v13 }
 0x167   :  { %v1653_v47 = vsel %vm1610_vm3, %v1651_v43, %v1652_v7  ;;  %v1895_v51 = vsel %vm803_vm1, %v1893_v52, %v1894_v53  ;;  %v2698_v24 = vsel %vm1610_vm3, %v2676_v2, %v2408_v3  ;;  %3096 = vrot.lane.b32.xlu1 %v2983_v45, %s6653_s21  ;;  %v2124_v63 = vrot.slane %v2050_v41, 1 }
 0x168   :  { %v2168_v16 = vrot.slane %v2050_v41, 2  ;;  %v2212_v38 = vrot.slane %v2050_v41, 3  ;;  %v2278_v6 = vrot.slane %v7524_v56, 4  ;;  %v2322_v27 = vrot.slane %v7524_v56, 5 }
 0x169   :  { %v2366_v43 = vrot.slane %v7524_v56, 6  ;;  %v1811_v23 = vmax.f32 %v1502_v8, %v1653_v47  ;;  %v2565_v48 = vsel %vm2557_vm4, %v2050_v41, %v2124_v63  ;;  %vm2769_vm10 = vcmp.ge.f32.partialorder %v2698_v24, 0.0 }
 0x16a   :  { %vm2770_vm13 = vcmp.ge.f32.partialorder %v7344_v4, 0.0  ;;  %v2814_v17 = vmul.f32 %v7034_v9, %v2698_v24  ;;  %v2588_v3 = vsel %vm2580_vm5, %v2565_v48, %v2168_v16  ;;  %v7554_v14 = vadd.f32 %v7471_v29, %v7463_v39 }
 0x16b   :  { %v2053_v62 = vmax.f32 %v1811_v23, %v1895_v51  ;;  %v2859_v37 = vsel %vm2770_vm13, %v7344_v4, %v7352_v12  ;;  %v7556_v49 = vpop.f32.mrb[64].mxu0  ;;  %v2611_v8 = vsel %vm2603_vm6, %v2588_v3, %v2212_v38  ;;  %3189 = vrot.lane.b32.xlu1 %v3154_v5, %s6652_s1  ;;  %v1068_v52 = vadd.f32 %v7471_v29, %v7476_v35 }
 0x16c   :  { %v2858_v32 = vsel %vm2769_vm10, %v2698_v24, %v2814_v17  ;;  %v1079_v41 = vadd.f32 %v7471_v29, %v7479_v19  ;;  %v7564_v2 = vpop.f32.mrb[65].mxu0  ;;  %v2634_v4 = vsel %vm2626_vm7, %v2611_v8, %v2278_v6  ;;  %v1440_v24 = vmax.f32 %v7493_v15, %v7554_v14 }
 0x16d   :  { %v2125_v12 = vrot.slane %v2053_v62, 1  ;;  %v2169_v39 = vrot.slane %v2053_v62, 2  ;;  %v2213_v45 = vrot.slane %v2053_v62, 3  ;;  %v7567_v47 = vpop.f32.mrb[66].mxu0  ;;  %v7570_v51 = vsel %vm802_vm0, %v2634_v4, %v2322_v27 }
 0x16e   :  { %v2897_v63 = vpack.c.bf16 %v2859_v37, %v2858_v32  ;;  %v1504_v35 = vmax.f32 %v1438_v60, %v1068_v52  ;;  %v7574_v16 = vpop.f32.mrb[67].mxu0  ;;  %v1441_v38 = vmax.f32 %v1068_v52, %v1079_v41  ;;  %v1071_v5 = vadd.f32 %v7471_v29, %v7486_v42 }
 0x16f   :  { %v2566_v19 = vsel %vm2557_vm4, %v2053_v62, %v2125_v12  ;;  %v7580_v6 = vadd.f32 %v7471_v29, %v6090_v44  ;;  %v2410_v60 = vrot.slane %v7524_v56, 7  ;;  %vm2772_vm14 = vcmp.ge.f32.partialorder %v7451_v21, 0.0 }
 0x170   :  { %v2589_v23 = vsel %vm2580_vm5, %v2566_v19, %v2169_v39  ;;  %v7585_v27 = vsel %vm7178_vm11, %v2897_v63, 0  ;;  %v1654_v48 = vrot.slane %v1504_v35, 1  ;;  %v1896_v17 = vrot.slane %v1504_v35, 2 }
 0x171   :  { %v7589_v3 = vsel %vm2603_vm6, %v2589_v23, %v2213_v45  ;;  %v2987_v62 = vshll.u32 %v7585_v27, 16  ;;  %v3155_v42 = vrot.slane %v7585_v27, 1  ;;  %v1439_v32 = vmax.f32 %v7474_v31, %v1071_v5 }
 0x172   :  { %v1655_v44 = vsel %vm1610_vm3, %v1652_v7, %v1654_v48  ;;  %v1813_v37 = vmax.f32 %v1504_v35, %v1654_v48  ;;  %v1897_v8 = vsel %vm803_vm1, %v1894_v53, %v1896_v17  ;;  %v2985_v52 = vshrl.u32 %v7585_v27, 16 }
 0x173   :  { %v2989_v41 = vrot.slane %v2987_v62, 1  ;;  %v1812_v4 = vmax.f32 %v7514_v46, %v1655_v44  ;;  %v7599_v12 = vmax.f32 %v1441_v38, %v7580_v6  ;;  %v6098_v39 = vpop.f32.mrb[68].mxu0  ;;  %v3156_v63 = vsel %vm1610_vm3, %v3155_v42, %v7039_v13 }
 0x174   :  { %v2055_v45 = vmax.f32 %v1813_v37, %v1896_v17  ;;  %v2633_v7 = vsel %vm2626_vm7, %v7429_v33, %v2277_v26  ;;  %v7608_v31 = vpop.f32.mrb[69].mxu0  ;;  %v1084_v19 = vadd.f32 %v7471_v29, %v7518_v59  ;;  %v2861_v59 = vsel %vm2772_vm14, %v7451_v21, %v7483_v61 }
 0x175   :  { %v2990_v53 = vor.u32 %v2989_v41, %v2985_v52  ;;  %v7610_v35 = vmax.f32 %v1812_v4, %v1897_v8  ;;  %v1659_v46 = vrot.slane %v7599_v12, 1  ;;  %v6099_v38 = vpop.f32.mrb[70].mxu0  ;;  %v1901_v48 = vrot.slane %v7599_v12, 2 }
 0x176   :  { %v2477_v5 = vrot.slane %v2055_v45, 1  ;;  %v2521_v23 = vrot.slane %v2055_v45, 2  ;;  %v2655_v33 = vsel %vm802_vm0, %v2633_v7, %v2321_v40  ;;  %v1118_v26 = vpop.f32.mrb[71].mxu0  ;;  %v1505_v21 = vmax.f32 %v1439_v32, %v1084_v19 }
 0x177   :  { %v2991_v17 = vsel %vm2939_vm12, %v2990_v53, %v7039_v13  ;;  %v2279_v62 = vrot.slane %v7610_v35, 4  ;;  %v2323_v42 = vrot.slane %v7610_v35, 5  ;;  %v2367_v44 = vrot.slane %v7610_v35, 6 }
 0x178   :  { %3098 = vrot.lane.b32.xlu0 %v2991_v17, %s6653_s21  ;;  %v2723_v37 = vsel %vm2557_vm4, %v2055_v45, %v2477_v5  ;;  %v1816_v8 = vmax.f32 %v7599_v12, %v1659_v46  ;;  %v2677_v40 = vsel %vm803_vm1, %v2655_v33, %v2365_v10  ;;  %v1095_v61 = vadd.f32 %v7471_v29, %v7522_v20 }
 0x179   :  { %v7633_v52 = vsel %vm2580_vm5, %v2723_v37, %v2521_v23  ;;  %v2699_v41 = vsel %vm1610_vm3, %v2677_v40, %v2409_v55  ;;  %v2411_v4 = vrot.slane %v7610_v35, 7  ;;  %v1656_v45 = vrot.slane %v1505_v21, 1 }
 0x17a   :  { %v2058_v39 = vmax.f32 %v1816_v8, %v1901_v48  ;;  %vm2771_vm15 = vcmp.ge.f32.partialorder %v2699_v41, 0.0  ;;  %v2816_v12 = vmul.f32 %v7034_v9, %v2699_v41  ;;  %v7644_v10 = vmul.f32 %v7034_v9, %v7633_v52 }
 0x17b   :  { %v1442_v7 = vmax.f32 %v1084_v19, %v1095_v61  ;;  %v1087_v1 = vadd.f32 %v7471_v29, %v7531_v22  ;;  %v7648_v55 = vpop.f32.mrb[72].mxu0  ;;  %v1108_v38 = vadd.f32 %v7471_v29, %v7556_v49  ;;  %v1898_v33 = vrot.slane %v1505_v21, 2 }
 0x17c   :  { %3191 = vrot.lane.b32.xlu0 %v3156_v63, %s6652_s1  ;;  %v2478_v20 = vrot.slane %v2058_v39, 1  ;;  %v2522_v32 = vrot.slane %v2058_v39, 2  ;;  %v2860_v53 = vsel %vm2771_vm15, %v2699_v41, %v2816_v12  ;;  %v7653_v5 = vpop.f32.mrb[73].mxu0  ;;  %v1100_v22 = vadd.f32 %v7471_v29, %v7564_v2 }
 0x17d   :  { %v2898_v23 = vpack.c.bf16 %v2861_v59, %v2860_v53  ;;  %v1506_v19 = vmax.f32 %v1440_v24, %v1087_v1  ;;  %v7660_v26 = vpop.f32.mrb[74].mxu0  ;;  %v7663_v17 = vmax.f32 %v1442_v7, %v1108_v38  ;;  %v1103_v49 = vadd.f32 %v7471_v29, %v7574_v16 }
 0x17e   :  { %v2724_v63 = vsel %vm2557_vm4, %v2058_v39, %v2478_v20  ;;  %v2678_v59 = vsel %vm803_vm1, %v7570_v51, %v2366_v43  ;;  %v7671_v37 = vpop.f32.mrb[75].mxu0  ;;  %v1111_v43 = vadd.f32 %v7471_v29, %v7567_v47  ;;  %vm2774_vm8 = vcmp.ge.f32.partialorder %v7496_v36, 0.0 }
 0x17f   :  { %v7674_v15 = vsel %vm2580_vm5, %v2724_v63, %v2522_v32  ;;  %v7678_v14 = vsel %vm7178_vm11, %v2898_v23, 0  ;;  %v1657_v2 = vrot.slane %v1506_v19, 1  ;;  %v1899_v24 = vrot.slane %v1506_v19, 2 }
 0x180   :  { %v7682_v8 = vmul.f32 %v7034_v9, %v7674_v15  ;;  %v2995_v16 = vshll.u32 %v7678_v14, 16  ;;  %v3157_v40 = vrot.slane %v7678_v14, 1  ;;  %v2993_v12 = vshrl.u32 %v7678_v14, 16 }
 0x181   :  { %v1658_v51 = vsel %vm1610_vm3, %v1656_v45, %v1657_v2  ;;  %v1660_v41 = vsel %vm1610_vm3, %v1657_v2, %v1659_v46  ;;  %v1900_v61 = vsel %vm803_vm1, %v1898_v33, %v1899_v24  ;;  %v1902_v39 = vsel %vm803_vm1, %v1899_v24, %v1901_v48 }
 0x182   :  { %v2997_v7 = vrot.slane %v2995_v16, 1  ;;  %v1814_v20 = vmax.f32 %v1505_v21, %v1658_v51  ;;  %v1815_v32 = vmax.f32 %v1506_v19, %v1660_v41  ;;  %v3158_v53 = vsel %vm1610_vm3, %v3157_v40, %v7039_v13 }
 0x183   :  { %v1661_v38 = vrot.slane %v7663_v17, 1  ;;  %v1443_v23 = vmax.f32 %v1087_v1, %v1100_v22  ;;  %v1444_v47 = vmax.f32 %v7580_v6, %v1103_v49  ;;  %v7697_v45 = vpop.f32.mrb[76].mxu0  ;;  %v2700_v48 = vsel %vm1610_vm3, %v2678_v59, %v2410_v60 }
 0x184   :  { %v2998_v46 = vor.u32 %v2997_v7, %v2993_v12  ;;  %v2056_v63 = vmax.f32 %v1814_v20, %v1900_v61  ;;  %v7699_v33 = vmax.f32 %v1815_v32, %v1902_v39  ;;  %v7704_v21 = vpop.f32.mrb[77].mxu0  ;;  %v1903_v19 = vrot.slane %v7663_v17, 2 }
 0x185   :  { %v7707_v2 = vmax.f32 %v1443_v23, %v1111_v43  ;;  %vm2773_vm2 = vcmp.ge.f32.partialorder %v2700_v48, 0.0  ;;  %v2818_v1 = vmul.f32 %v7034_v9, %v2700_v48  ;;  %v7710_v6 = vpop.f32.mrb[78].mxu0  ;;  %v2863_v7 = vsel %vm2774_vm8, %v7496_v36, %v7505_v25 }
 0x186   :  { %v2999_v22 = vsel %vm2939_vm12, %v2998_v46, %v7039_v13  ;;  %v2126_v49 = vrot.slane %v2056_v63, 1  ;;  %v2170_v24 = vrot.slane %v2056_v63, 2  ;;  %v7715_v56 = vpop.f32.mrb[79].mxu0  ;;  %v2214_v60 = vrot.slane %v2056_v63, 3 }
 0x187   :  { %3100 = vrot.lane.b32.xlu1 %v2999_v22, %s6653_s21  ;;  %v2280_v59 = vrot.slane %v7699_v33, 4  ;;  %v2324_v16 = vrot.slane %v7699_v33, 5  ;;  %v2368_v40 = vrot.slane %v7699_v33, 6  ;;  %v1662_v51 = vrot.slane %v7707_v2, 1 }
 0x188   :  { %v2567_v43 = vsel %vm2557_vm4, %v2056_v63, %v2126_v49  ;;  %v1904_v41 = vrot.slane %v7707_v2, 2  ;;  %v2862_v61 = vsel %vm2773_vm2, %v2700_v48, %v2818_v1  ;;  %v2412_v39 = vrot.slane %v7699_v33, 7 }
 0x189   :  { %v2590_v12 = vsel %vm2580_vm5, %v2567_v43, %v2170_v24  ;;  %v1116_v20 = vadd.f32 %v7471_v29, %v7608_v31  ;;  %v1663_v23 = vsel %vm1610_vm3, %v1661_v38, %v1662_v51  ;;  %v2899_v63 = vpack.c.bf16 %v2863_v7, %v2862_v61 }
 0x18a   :  { %v2613_v32 = vsel %vm2603_vm6, %v2590_v12, %v2214_v60  ;;  %v1905_v46 = vsel %vm803_vm1, %v1903_v19, %v1904_v41  ;;  %v1817_v48 = vmax.f32 %v7663_v17, %v1663_v23  ;;  %v2635_v36 = vsel %vm2626_vm7, %v7589_v3, %v2279_v62 }
 0x18b   :  { %v2636_v22 = vsel %vm2626_vm7, %v2613_v32, %v2280_v59  ;;  %3193 = vrot.lane.b32.xlu1 %v3158_v53, %s6652_s1  ;;  %v1510_v1 = vmax.f32 %v1444_v47, %v1116_v20  ;;  %v7741_v25 = vpop.f32.mrb[80].mxu0  ;;  %v7746_v38 = vsel %vm7178_vm11, %v2899_v63, 0  ;;  %v2657_v53 = vsel %vm802_vm0, %v2635_v36, %v2323_v42 }
 0x18c   :  { %v2658_v31 = vsel %vm802_vm0, %v2636_v22, %v2324_v16  ;;  %vm2776_vm9 = vcmp.ge.f32.partialorder %v7633_v52, 0.0  ;;  %v7752_v17 = vpop.f32.mrb[81].mxu0  ;;  %v7754_v47 = vmax.f32 %v1817_v48, %v1905_v46  ;;  %v3003_v3 = vshll.u32 %v7746_v38, 16 }
 0x18d   :  { %v1664_v62 = vrot.slane %v1510_v1, 1  ;;  %v7759_v19 = vadd.f32 %v7471_v29, %v7648_v55  ;;  %v7761_v49 = vpop.f32.mrb[82].mxu0  ;;  %v3001_v24 = vshrl.u32 %v7746_v38, 16  ;;  %v1906_v60 = vrot.slane %v1510_v1, 2 }
 0x18e   :  { %9596 = vst [vmem:[#allocation5_spill] sm:$0xff] %v7754_v47  ;;  %v3159_v42 = vrot.slane %v7746_v38, 1  ;;  %v2679_v59 = vsel %vm803_vm1, %v2657_v53, %v2367_v44  ;;  %v7768_v16 = vpop.f32.mrb[83].mxu0  ;;  %v2127_v43 = vrot.slane %v7754_v47, 1  ;;  %v2171_v61 = vrot.slane %v7754_v47, 2 }
 0x18f   :  { %v3005_v12 = vrot.slane %v3003_v3, 1  ;;  %v2865_v55 = vsel %vm2776_vm9, %v7633_v52, %v7644_v10  ;;  %v1665_v20 = vsel %vm1610_vm3, %v1662_v51, %v1664_v62  ;;  %v1819_v32 = vmax.f32 %v1510_v1, %v1664_v62 }
 0x190   :  { %v1907_v23 = vsel %vm803_vm1, %v1904_v41, %v1906_v60  ;;  %v2568_v44 = vsel %vm2557_vm4, %v7754_v47, %v2127_v43  ;;  %v1818_v63 = vmax.f32 %v7707_v2, %v1665_v20  ;;  %v2701_v22 = vsel %vm1610_vm3, %v2679_v59, %v2411_v4 }
 0x191   :  { %v3006_v46 = vor.u32 %v3005_v12, %v3001_v24  ;;  %v7783_v48 = vmax.f32 %v1819_v32, %v1906_v60  ;;  %v3160_v52 = vsel %vm1610_vm3, %v3159_v42, %v7039_v13  ;;  %vm2775_vm10 = vcmp.ge.f32.partialorder %v2701_v22, 0.0 }
 0x192   :  { %v2820_v10 = vmul.f32 %v7034_v9, %v2701_v22  ;;  %v7790_v41 = vmax.f32 %v1818_v63, %v1907_v23  ;;  %v1129_v2 = vadd.f32 %v7471_v29, %v7653_v5  ;;  %v1140_v35 = vadd.f32 %v7471_v29, %v7660_v26 }
 0x193   :  { %9597 = vst [vmem:[#allocation6_spill] sm:$0xff] %v7783_v48  ;;  %v3007_v51 = vsel %vm2939_vm12, %v3006_v46, %v7039_v13  ;;  %v7796_v4 = vpop.f32.mrb[84].mxu0  ;;  %v7799_v1 = vsel %vm2580_vm5, %v2568_v44, %v2171_v61  ;;  %v2479_v36 = vrot.slane %v7783_v48, 1  ;;  %v1132_v26 = vadd.f32 %v7471_v29, %v7671_v37 }
 0x194   :  { %9598 = vst [vmem:[#allocation7_spill] sm:$0xff] %v7790_v41  ;;  %9599 = vst [vmem:[#allocation8_spill] sm:$0xff] %v7799_v1  ;;  %3102 = vrot.lane.b32.xlu0 %v3007_v51, %s6653_s21  ;;  %v2864_v3 = vsel %vm2775_vm10, %v2701_v22, %v2820_v10  ;;  %v7804_v62 = vpop.f32.mrb[85].mxu0  ;;  %v1445_v43 = vmax.f32 %v1129_v2, %v1140_v35  ;;  %v7815_v61 = vadd.f32 %v7471_v29, %v7697_v45  ;;  %vm3217_vm15 = vcmask 228352  }
 0x195   :  { %v2900_v60 = vpack.c.bf16 %v2865_v55, %v2864_v3  ;;  %v7810_v42 = vpop.f32.mrb[86].mxu0  ;;  %v1145_v12 = vadd.f32 %v7471_v29, %v7704_v21  ;;  %v7827_v37 = vadd.f32 %v7471_v29, %v7710_v6  ;;  %v1148_v32 = vadd.f32 %v7471_v29, %v7715_v56 }
 0x196   :  { %v7819_v20 = vpop.f32.mrb[87].mxu0  ;;  %v2680_v45 = vsel %vm803_vm1, %v2658_v31, %v2368_v40  ;;  %v7836_v21 = vsel %vm2557_vm4, %v7783_v48, %v2479_v36  ;;  %v1511_v6 = vmax.f32 %v1445_v43, %v7815_v61  ;;  %vm2778_vm13 = vcmp.ge.f32.partialorder %v7674_v15, 0.0 }
 0x197   :  { %v7823_v55 = vsel %vm7178_vm11, %v2900_v60, 0  ;;  %9600 = vst [vmem:[#allocation9_spill] sm:$0xff] %v7836_v21  ;;  %v1446_v46 = vmax.f32 %v1132_v26, %v1145_v12  ;;  %v1447_v63 = vmax.f32 %v7759_v19, %v1148_v32  ;;  %v2702_v56 = vsel %vm1610_vm3, %v2680_v45, %v2412_v39 }
 0x198   :  { %3195 = vrot.lane.b32.xlu0 %v3160_v52, %s6652_s1  ;;  %v3009_v23 = vshrl.u32 %v7823_v55, 16  ;;  %v3011_v44 = vshll.u32 %v7823_v55, 16  ;;  %v3161_v31 = vrot.slane %v7823_v55, 1  ;;  %v1666_v22 = vrot.slane %v1511_v6, 1 }
 0x199   :  { %v1908_v52 = vrot.slane %v1511_v6, 2  ;;  %v1512_v10 = vmax.f32 %v1446_v46, %v7827_v37  ;;  %vm2777_vm14 = vcmp.ge.f32.partialorder %v2702_v56, 0.0  ;;  %v2822_v51 = vmul.f32 %v7034_v9, %v2702_v56 }
 0x19a   :  { %v3013_v40 = vrot.slane %v3011_v44, 1  ;;  %v2867_v2 = vsel %vm2778_vm13, %v7674_v15, %v7682_v8  ;;  %v7856_v39 = vadd.f32 %v7471_v29, %v7741_v25  ;;  %v1161_v35 = vadd.f32 %v7471_v29, %v7752_v17 }
 0x19b   :  { %v7852_v19 = vpop.f32.mrb[88].mxu0  ;;  %v1172_v36 = vadd.f32 %v7471_v29, %v7761_v49  ;;  %v1667_v60 = vrot.slane %v1512_v10, 1  ;;  %v1909_v26 = vrot.slane %v1512_v10, 2  ;;  %v2866_v43 = vsel %vm2777_vm14, %v2702_v56, %v2822_v51 }
 0x19c   :  { %v3014_v33 = vor.u32 %v3013_v40, %v3009_v23  ;;  %v7862_v3 = vpop.f32.mrb[89].mxu0  ;;  %v1164_v15 = vadd.f32 %v7471_v29, %v7768_v16  ;;  %v2901_v12 = vpack.c.bf16 %v2867_v2, %v2866_v43  ;;  %v1449_v17 = vmax.f32 %v7827_v37, %v7856_v39 }
 0x19d   :  { %v7866_v8 = vpop.f32.mrb[90].mxu0  ;;  %v1513_v32 = vmax.f32 %v1447_v63, %v1161_v35  ;;  %v1668_v49 = vsel %vm1610_vm3, %v1666_v22, %v1667_v60  ;;  %v1910_v23 = vsel %vm803_vm1, %v1908_v52, %v1909_v26  ;;  %v1450_v44 = vmax.f32 %v1161_v35, %v1172_v36 }
 0x19e   :  { %v3015_v25 = vsel %vm2939_vm12, %v3014_v33, %v7039_v13  ;;  %v7872_v45 = vpop.f32.mrb[91].mxu0  ;;  %v1448_v16 = vmax.f32 %v7815_v61, %v1164_v15  ;;  %v1820_v46 = vmax.f32 %v1511_v6, %v1668_v49  ;;  %v7880_v56 = vsel %vm7178_vm11, %v2901_v12, 0 }
 0x19f   :  { %3104 = vrot.lane.b32.xlu1 %v3015_v25, %s6653_s21  ;;  %v1669_v40 = vrot.slane %v1513_v32, 1  ;;  %v1911_v51 = vrot.slane %v1513_v32, 2  ;;  %v3162_v37 = vsel %vm1610_vm3, %v3161_v31, %v7039_v13  ;;  %v3305_v63 = vshll.u32 %v7880_v56, 16 }
 0x1a0   :  { %v3324_v2 = vrot.slane %v7880_v56, 1  ;;  %v7888_v22 = vadd.f32 %v7471_v29, %v7796_v4  ;;  %v7890_v52 = vmax.f32 %v1820_v46, %v1910_v23  ;;  %v3303_v39 = vshrl.u32 %v7880_v56, 16 }
 0x1a1   :  { %v1670_v61 = vsel %vm1610_vm3, %v1667_v60, %v1669_v40  ;;  %v1822_v6 = vmax.f32 %v1513_v32, %v1669_v40  ;;  %v1912_v33 = vsel %vm803_vm1, %v1909_v26, %v1911_v51  ;;  %v3307_v31 = vrot.slane %v3305_v63, 1 }
 0x1a2   :  { %9601 = vst [vmem:[#allocation10_spill] sm:$0xff] %v7890_v52  ;;  %v1821_v35 = vmax.f32 %v1512_v10, %v1670_v61  ;;  %v7897_v36 = vmax.f32 %v1450_v44, %v7888_v22  ;;  %v2128_v4 = vrot.slane %v7890_v52, 1  ;;  %v2172_v15 = vrot.slane %v7890_v52, 2 }
 0x1a3   :  { %3197 = vrot.lane.b32.xlu1 %v3162_v37, %s6652_s1  ;;  %v6122_v43 = vpop.f32.mrb[92].mxu0  ;;  %v7901_v25 = vmax.f32 %v1822_v6, %v1911_v51  ;;  %v3325_v60 = vsel %vm1610_vm3, %v3324_v2, %v7039_v13  ;;  %v3308_v32 = vor.u32 %v3307_v31, %v3303_v39  ;;  %v1177_v51 = vadd.f32 %v7471_v29, %v7804_v62 }
 0x1a4   :  { %v7905_v26 = vpop.f32.mrb[93].mxu0  ;;  %v7908_v49 = vmax.f32 %v1821_v35, %v1912_v33  ;;  %v1674_v10 = vrot.slane %v7897_v36, 1  ;;  %v2569_v44 = vsel %vm2557_vm4, %v7890_v52, %v2128_v4  ;;  %v1916_v40 = vrot.slane %v7897_v36, 2 }
 0x1a5   :  { %9602 = vst [vmem:[#allocation11_spill] sm:$0xff] %v7901_v25  ;;  %v7911_v23 = vpop.f32.mrb[94].mxu0  ;;  %v2480_v46 = vrot.slane %v7901_v25, 1  ;;  %v7922_v63 = vsel %vm2580_vm5, %v2569_v44, %v2172_v15  ;;  %v3309_v2 = vsel %vm2939_vm12, %v3308_v32, %v7039_v13  ;;  %v3091_v33 = vpop.permute.xlu0 %3090  ;;  %v1514_v35 = vmax.f32 %v1448_v16, %v1177_v51 }
 0x1a6   :  { %v7919_v37 = vpop.f32.mrb[95].mxu0  ;;  %9603 = vst [vmem:[#allocation12_spill] sm:$0xff] %v7922_v63  ;;  %3318 = vrot.lane.b32.xlu0 %v3309_v2, %s6653_s21  ;;  %v1825_v62 = vmax.f32 %v7897_v36, %v1674_v10  ;;  %v1188_v4 = vadd.f32 %v7471_v29, %v7810_v42  ;;  %v1180_v15 = vadd.f32 %v7471_v29, %v7819_v20  ;;  %vm3254_vm2 = vcmask 457728  }
 0x1a7   :  { %v7938_v32 = vadd.f32 %v7471_v29, %v7852_v19  ;;  %v1671_v2 = vrot.slane %v1514_v35, 1  ;;  %v1913_v59 = vrot.slane %v1514_v35, 2  ;;  %v3221_v5 = vsel %vm3217_vm15, %v7193_v54, %v3091_v33  ;;  %v3184_v54 = vpop.permute.xlu1 %3183 }
 0x1a8   :  { %v2067_v44 = vmax.f32 %v1825_v62, %v1916_v40  ;;  %v1451_v24 = vmax.f32 %v1177_v51, %v1188_v4  ;;  %v1515_v36 = vmax.f32 %v1449_v17, %v1180_v15  ;;  %v1193_v16 = vadd.f32 %v7471_v29, %v7862_v3 }
 0x1a9   :  { %v7946_v42 = vadd.f32 %v7471_v29, %v7866_v8  ;;  %vm3385_vm8 = vcmask 687104   ;;  %v7954_v8 = vsel %vm3254_vm2, %v3221_v5, %v3184_v54  ;;  %v7959_v4 = vadd.f32 %v7471_v29, %v6122_v43 }
 0x1aa   :  { %3328 = vrot.lane.b32.xlu0 %v3325_v60, %s6652_s1  ;;  %v2481_v19 = vrot.slane %v2067_v44, 1  ;;  %v2525_v53 = vrot.slane %v2067_v44, 2  ;;  %v1672_v7 = vrot.slane %v1515_v36, 1  ;;  %v1914_v31 = vrot.slane %v1515_v36, 2  ;;  %9604 = vst [vmem:[#allocation13_spill] sm:$0xff] %v7954_v8  ;;  %6184 = vmatprep.mubr.msk.bf16.mxu1 %vm3385_vm8, %v7954_v8 }
 0x1ab   :  { %v6126_v20 = vpop.f32.mrb[96].mxu0  ;;  %v1517_v17 = vmax.f32 %v1451_v24, %v7938_v32  ;;  %v1452_v51 = vmax.f32 %v1180_v15, %v1193_v16  ;;  %v1196_v60 = vadd.f32 %v7471_v29, %v7872_v45  ;;  %v7973_v5 = vsel %vm2557_vm4, %v7901_v25, %v2480_v46 }
 0x1ac   :  { %v1224_v62 = vpop.f32.mrb[97].mxu0  ;;  %v2727_v3 = vsel %vm2557_vm4, %v2067_v44, %v2481_v19  ;;  %v1673_v24 = vsel %vm1610_vm3, %v1671_v2, %v1672_v7  ;;  %v1675_v15 = vsel %vm1610_vm3, %v1672_v7, %v1674_v10  ;;  %v1915_v44 = vsel %vm803_vm1, %v1913_v59, %v1914_v31  ;;  %9605 = vst [vmem:[#allocation14_spill] sm:$0xff] %v7973_v5 }
 0x1ad   :  { %v7950_v33 = vpop.f32.mrb[98].mxu0  ;;  %v7964_v61 = vsel %vm2580_vm5, %v2727_v3, %v2525_v53  ;;  %v1823_v45 = vmax.f32 %v1514_v35, %v1673_v24  ;;  %v1824_v43 = vmax.f32 %v1515_v36, %v1675_v15  ;;  %v1917_v16 = vsel %vm803_vm1, %v1914_v31, %v1916_v40 }
 0x1ae   :  { %v7961_v39 = vpop.f32.mrb[99].mxu0  ;;  %v7978_v53 = vmul.f32 %v7034_v9, %v7964_v61  ;;  %v1676_v2 = vrot.slane %v1517_v17, 1  ;;  %v7981_v7 = vmax.f32 %v1452_v51, %v7946_v42  ;;  %v1453_v59 = vmax.f32 %v7888_v22, %v1196_v60  ;;  %v6633_v22 = vld [vmem:[%s9562_s4 + $0x54] ss:$0 sps:$4 sm:$0x33]  }
 0x1af   :  { %v2065_v10 = vmax.f32 %v1823_v45, %v1915_v44  ;;  %v7984_v19 = vmax.f32 %v1824_v43, %v1917_v16  ;;  %v1209_v35 = vadd.f32 %v7471_v29, %v7905_v26  ;;  %v1220_v36 = vadd.f32 %v7471_v29, %v7911_v23 }
 0x1b0   :  { %v1677_v40 = vrot.slane %v7981_v7, 1  ;;  %v1919_v31 = vrot.slane %v7981_v7, 2  ;;  %v3423_v54 = vsel %vm2580_vm5, %v6633_v22, 0  ;;  %v1918_v15 = vrot.slane %v1517_v17, 2 }
 0x1b1   :  { %v2129_v3 = vrot.slane %v2065_v10, 1  ;;  %v2173_v60 = vrot.slane %v2065_v10, 2  ;;  %v2217_v24 = vrot.slane %v2065_v10, 3  ;;  %6183 = vmatpush3.bf16.msra.mxu1 %v3423_v54  ;;  %v2283_v44 = vrot.slane %v7984_v19, 4 }
 0x1b2   :  { %v2327_v45 = vrot.slane %v7984_v19, 5  ;;  %v1678_v43 = vsel %vm1610_vm3, %v1676_v2, %v1677_v40  ;;  %v1920_v12 = vsel %vm803_vm1, %v1918_v15, %v1919_v31  ;;  %v1519_v57 = vmax.f32 %v1453_v59, %v1209_v35 }
 0x1b3   :  { %v7998_v51 = vpop.f32.mrb[100].mxu0  ;;  %v2570_v22 = vsel %vm2557_vm4, %v2065_v10, %v2129_v3  ;;  %v1826_v6 = vmax.f32 %v1517_v17, %v1678_v43  ;;  %v1456_v8 = vmax.f32 %v1209_v35, %v1220_v36  ;;  %v1212_v21 = vadd.f32 %v7471_v29, %v7919_v37 }
 0x1b4   :  { %v8000_v26 = vpop.f32.mrb[101].mxu0  ;;  %v2593_v54 = vsel %vm2580_vm5, %v2570_v22, %v2173_v60  ;;  %v8014_v48 = vadd.f32 %v7471_v29, %v6126_v20  ;;  %v1679_v1 = vrot.slane %v1519_v57, 1  ;;  %v1921_v10 = vrot.slane %v1519_v57, 2 }
 0x1b5   :  { %v6131_v16 = vpop.f32.mrb[102].mxu0  ;;  %v2616_v2 = vsel %vm2603_vm6, %v2593_v54, %v2217_v24  ;;  %v2068_v23 = vmax.f32 %v1826_v6, %v1920_v12  ;;  %v1454_v59 = vmax.f32 %v7938_v32, %v1212_v21  ;;  %v1225_v35 = vadd.f32 %v7471_v29, %v1224_v62 }
 0x1b6   :  { %v8008_v46 = vpop.f32.mrb[103].mxu0  ;;  %v2639_v17 = vsel %vm2626_vm7, %v2616_v2, %v2283_v44  ;;  %v8020_v3 = vmax.f32 %v1456_v8, %v8014_v48  ;;  %v2415_v36 = vrot.slane %v7984_v19, 7  ;;  %v3186_v24 = vpop.permute.xlu1 %3185  ;;  %v1680_v12 = vsel %vm1610_vm3, %v1677_v40, %v1679_v1 }
 0x1b7   :  { %v2661_v37 = vsel %vm802_vm0, %v2639_v17, %v2327_v45  ;;  %v2130_v20 = vrot.slane %v2068_v23, 1  ;;  %v2174_v60 = vrot.slane %v2068_v23, 2  ;;  %v1828_v6 = vmax.f32 %v1519_v57, %v1679_v1 }
 0x1b8   :  { %v1922_v44 = vsel %vm803_vm1, %v1919_v31, %v1921_v10  ;;  %v1827_v8 = vmax.f32 %v7981_v7, %v1680_v12  ;;  %v1684_v43 = vrot.slane %v8020_v3, 1  ;;  %v2218_v40 = vrot.slane %v2068_v23, 3 }
 0x1b9   :  { %v2571_v62 = vsel %vm2557_vm4, %v2068_v23, %v2130_v20  ;;  %v2070_v1 = vmax.f32 %v1828_v6, %v1921_v10  ;;  %v1926_v2 = vrot.slane %v8020_v3, 2  ;;  %v1236_v17 = vadd.f32 %v7471_v29, %v7950_v33 }
 0x1ba   :  { %v3093_v15 = vpop.permute.xlu0 %3092  ;;  %v2594_v57 = vsel %vm2580_vm5, %v2571_v62, %v2174_v60  ;;  %v8044_v54 = vmax.f32 %v1827_v8, %v1922_v44  ;;  %v1831_v7 = vmax.f32 %v8020_v3, %v1684_v43  ;;  %v1228_v33 = vadd.f32 %v7471_v29, %v7961_v39 }
 0x1bb   :  { %v3223_v21 = vsel %vm3217_vm15, %v7321_v18, %v3093_v15  ;;  %v8029_v32 = vpop.f32.mrb[104].mxu0  ;;  %v1520_v18 = vmax.f32 %v1454_v59, %v1225_v35  ;;  %v8053_v23 = vsel %vm2603_vm6, %v2594_v57, %v2218_v40  ;;  %v2482_v10 = vrot.slane %v2070_v1, 1 }
 0x1bc   :  { %v8034_v45 = vsel %vm3254_vm2, %v3223_v21, %v3186_v24  ;;  %v8037_v22 = vpop.f32.mrb[105].mxu0  ;;  %v2526_v60 = vrot.slane %v2070_v1, 2  ;;  %v2073_v44 = vmax.f32 %v1831_v7, %v1926_v2  ;;  %v1457_v21 = vmax.f32 %v1225_v35, %v1236_v17 }
 0x1bd   :  { %9606 = vst [vmem:[#allocation15_spill] sm:$0xff] %v8034_v45  ;;  %6185 = vmatmul.mubr.msk.bf16.vlgmr.msra.gmra.mrb[0].mxu1 %vm3385_vm8, %v8034_v45  ;;  %v8042_v31 = vpop.f32.mrb[106].mxu0  ;;  %v1681_v15 = vrot.slane %v1520_v18, 1  ;;  %v1923_v6 = vrot.slane %v1520_v18, 2  ;;  %v2728_v3 = vsel %vm2557_vm4, %v2070_v1, %v2482_v10  ;;  %v8064_v8 = vadd.f32 %v7471_v29, %v7998_v51 }
 0x1be   :  { %v8050_v20 = vpop.f32.mrb[107].mxu0  ;;  %v1241_v40 = vadd.f32 %v7471_v29, %v8000_v26  ;;  %v8069_v57 = vadd.f32 %v7471_v29, %v6131_v16  ;;  %v8072_v12 = vsel %vm2580_vm5, %v2728_v3, %v2526_v60  ;;  %v2483_v1 = vrot.slane %v2073_v44, 1 }
 0x1bf   :  { %v2527_v35 = vrot.slane %v2073_v44, 2  ;;  %v9607_v39 = vmax.f32 %v7946_v42, %v7959_v4  ;;  %v1523_v51 = vmax.f32 %v1457_v21, %v8064_v8  ;;  %v8082_v26 = vadd.f32 %v7471_v29, %v8008_v46 }
 0x1c0   :  { %v1458_v10 = vmax.f32 %v1228_v33, %v1241_v40  ;;  %v9608_v16 = vrot.slane %v7984_v19, 6  ;;  %v2729_v62 = vsel %vm2557_vm4, %v2073_v44, %v2483_v1  ;;  %v8095_v21 = vmul.f32 %v7034_v9, %v8072_v12 }
 0x1c1   :  { %v1521_v7 = vmax.f32 %v9607_v39, %v1228_v33  ;;  %v8098_v29 = vsel %vm2580_vm5, %v2729_v62, %v2527_v35  ;;  %v1686_v19 = vrot.slane %v1523_v51, 1  ;;  %v1928_v40 = vrot.slane %v1523_v51, 2 }
 0x1c2   :  { %v2683_v60 = vsel %vm803_vm1, %v2661_v37, %v9608_v16  ;;  %v8101_v46 = vmax.f32 %v1458_v10, %v8069_v57  ;;  %v8112_v35 = vmul.f32 %v7034_v9, %v8098_v29  ;;  %vm2784_vm9 = vcmp.ge.f32.partialorder %v7964_v61, 0.0 }
 0x1c3   :  { %v8077_v17 = vpop.f32.mrb[108].mxu0  ;;  %v1682_v24 = vrot.slane %v1521_v7, 1  ;;  %v1924_v42 = vrot.slane %v1521_v7, 2  ;;  %v2705_v4 = vsel %vm1610_vm3, %v2683_v60, %v2415_v36  ;;  %vm2786_vm13 = vcmp.ge.f32.partialorder %v8072_v12, 0.0 }
 0x1c4   :  { %v8087_v3 = vpop.f32.mrb[109].mxu0  ;;  %v1687_v62 = vrot.slane %v8101_v46, 1  ;;  %v1929_v10 = vrot.slane %v8101_v46, 2  ;;  %vm2783_vm10 = vcmp.ge.f32.partialorder %v2705_v4, 0.0 }
 0x1c5   :  { %v8091_v39 = vpop.f32.mrb[110].mxu0  ;;  %v1683_v44 = vsel %vm1610_vm3, %v1681_v15, %v1682_v24  ;;  %v1685_v33 = vsel %vm1610_vm3, %v1682_v24, %v1684_v43  ;;  %v1925_v36 = vsel %vm803_vm1, %v1923_v6, %v1924_v42  ;;  %v1927_v60 = vsel %vm803_vm1, %v1924_v42, %v1926_v2  ;;  %v8126_v42 = vld [vmem:[%s9561_s3] ss:$0 sm:$0xff] }
 0x1c6   :  { %v8103_v37 = vpop.f32.mrb[111].mxu0  ;;  %v1829_v1 = vmax.f32 %v1520_v18, %v1683_v44  ;;  %v1830_v16 = vmax.f32 %v1521_v7, %v1685_v33  ;;  %v1459_v15 = vmax.f32 %v8014_v48, %v8082_v26  ;;  %v1688_v18 = vsel %vm1610_vm3, %v1686_v19, %v1687_v62 }
 0x1c7   :  { %v2828_v2 = vmul.f32 %v7034_v9, %v2705_v4  ;;  %v1832_v6 = vmax.f32 %v1523_v51, %v1688_v18  ;;  %v1930_v7 = vsel %vm803_vm1, %v1928_v40, %v1929_v10  ;;  %v8130_v48 = vadd.f32 %v8126_v42, %v8029_v32 }
 0x1c8   :  { %v2071_v43 = vmax.f32 %v1829_v1, %v1925_v36  ;;  %v8118_v24 = vmax.f32 %v1830_v16, %v1927_v60  ;;  %v2873_v51 = vsel %vm2784_vm9, %v7964_v61, %v7978_v53  ;;  %v1257_v32 = vadd.f32 %v8126_v42, %v8037_v22 }
 0x1c9   :  { %v2074_v45 = vmax.f32 %v1832_v6, %v1930_v7  ;;  %v2872_v47 = vsel %vm2783_vm10, %v2705_v4, %v2828_v2  ;;  %v1461_v61 = vmax.f32 %v8069_v57, %v8130_v48  ;;  %v1268_v4 = vadd.f32 %v8126_v42, %v8042_v31 }
 0x1ca   :  { %v2131_v44 = vrot.slane %v2071_v43, 1  ;;  %v2175_v33 = vrot.slane %v2071_v43, 2  ;;  %v2219_v19 = vrot.slane %v2071_v43, 3  ;;  %v2285_v1 = vrot.slane %v8118_v24, 4 }
 0x1cb   :  { %v8132_v26 = vpop.f32.mrb[112].mxu0  ;;  %v3095_v36 = vpop.permute.xlu0 %3094  ;;  %v2329_v16 = vrot.slane %v8118_v24, 5  ;;  %v2904_v60 = vpack.c.bf16 %v2873_v51, %v2872_v47  ;;  %v2176_v6 = vrot.slane %v2074_v45, 2  ;;  %v1525_v47 = vmax.f32 %v1459_v15, %v1257_v32 }
 0x1cc   :  { %v8136_v40 = vpop.f32.mrb[113].mxu0  ;;  %v2572_v59 = vsel %vm2557_vm4, %v2071_v43, %v2131_v44  ;;  %v3225_v5 = vsel %vm3217_vm15, %v7412_v11, %v3095_v36  ;;  %v2132_v43 = vrot.slane %v2074_v45, 1  ;;  %vm2788_vm9 = vcmp.ge.f32.partialorder %v8098_v29, 0.0 }
 0x1cd   :  { %v8142_v18 = vpop.f32.mrb[114].mxu0  ;;  %v2595_v41 = vsel %vm2580_vm5, %v2572_v59, %v2175_v33  ;;  %v8164_v11 = vsel %vm7178_vm11, %v2904_v60, 0  ;;  %v1689_v31 = vrot.slane %v1525_v47, 1 }
 0x1ce   :  { %v8148_v53 = vpop.f32.mrb[115].mxu0  ;;  %v2618_v25 = vsel %vm2603_vm6, %v2595_v41, %v2219_v19  ;;  %9610 = vst [vmem:[#allocation17_spill] sm:$0xff] %v8164_v11  ;;  %v2220_v41 = vrot.slane %v2074_v45, 3  ;;  %v2573_v59 = vsel %vm2557_vm4, %v2074_v45, %v2132_v43  ;;  %v3027_v33 = vshll.u32 %v8164_v11, 16 }
 0x1cf   :  { %v3188_v7 = vpop.permute.xlu0 %3187  ;;  %v2641_v2 = vsel %vm2626_vm7, %v2618_v25, %v2285_v1  ;;  %v2596_v25 = vsel %vm2580_vm5, %v2573_v59, %v2176_v6  ;;  %v1931_v19 = vrot.slane %v1525_v47, 2  ;;  %v3165_v51 = vrot.slane %v8164_v11, 1 }
 0x1d0   :  { %v8160_v44 = vsel %vm3254_vm2, %v3225_v5, %v3188_v7  ;;  %v8167_v22 = vsel %vm802_vm0, %v2641_v2, %v2329_v16  ;;  %v3025_v5 = vshrl.u32 %v8164_v11, 16  ;;  %v3029_v15 = vrot.slane %v3027_v33, 1 }
 0x1d1   :  { %9609 = vst [vmem:[#allocation16_spill] sm:$0xff] %v8160_v44  ;;  %6188 = vmatprep.mubr.msk.bf16.mxu1 %vm3385_vm8, %v8160_v44  ;;  %v1462_v1 = vmax.f32 %v1257_v32, %v1268_v4  ;;  %v1260_v45 = vadd.f32 %v8126_v42, %v8050_v20  ;;  %v8183_v60 = vsel %vm2603_vm6, %v2596_v25, %v2220_v41  ;;  %v9611_v25 = vrot.slane %v8044_v54, 4 }
 0x1d2   :  { %v1690_v43 = vsel %vm1610_vm3, %v1687_v62, %v1689_v31  ;;  %v1834_v6 = vmax.f32 %v1525_v47, %v1689_v31  ;;  %v1932_v7 = vsel %vm803_vm1, %v1929_v10, %v1931_v19  ;;  %v3030_v59 = vor.u32 %v3029_v15, %v3025_v5 }
 0x1d3   :  { %v8175_v36 = vpop.f32.mrb[116].mxu0  ;;  %v1833_v33 = vmax.f32 %v8101_v46, %v1690_v43  ;;  %v1460_v32 = vmax.f32 %v8064_v8, %v1260_v45  ;;  %v8193_v20 = vadd.f32 %v8126_v42, %v8077_v17  ;;  %v2640_v62 = vsel %vm2626_vm7, %v8053_v23, %v9611_v25 }
 0x1d4   :  { %v8180_v16 = vpop.f32.mrb[117].mxu0  ;;  %v2076_v41 = vmax.f32 %v1834_v6, %v1931_v19  ;;  %v1273_v10 = vadd.f32 %v8126_v42, %v8087_v3  ;;  %v3031_v8 = vsel %vm2939_vm12, %v3030_v59, %v7039_v13  ;;  %v9612_v47 = vrot.slane %v8044_v54, 5 }
 0x1d5   :  { %v8187_v2 = vpop.f32.mrb[118].mxu0  ;;  %v8206_v46 = vmax.f32 %v1833_v33, %v1932_v7  ;;  %v8209_v17 = vmax.f32 %v1462_v1, %v8193_v20  ;;  %3108 = vrot.lane.b32.xlu1 %v3031_v8, %s6653_s21  ;;  %v3166_v19 = vsel %vm1610_vm3, %v3165_v51, %v7039_v13  ;;  %v9613_v3 = vrot.slane %v8044_v54, 6 }
 0x1d6   :  { %v8195_v4 = vpop.f32.mrb[119].mxu0  ;;  %v2662_v5 = vsel %vm802_vm0, %v2640_v62, %v9612_v47  ;;  %v2484_v23 = vrot.slane %v2076_v41, 1  ;;  %v2528_v31 = vrot.slane %v2076_v41, 2  ;;  %v2875_v7 = vsel %vm2786_vm13, %v8072_v12, %v8095_v21 }
 0x1d7   :  { %v2684_v15 = vsel %vm803_vm1, %v2662_v5, %v9613_v3  ;;  %v1694_v25 = vrot.slane %v8209_v17, 1  ;;  %v9614_v47 = vrot.slane %v8044_v54, 7  ;;  %v1526_v3 = vmax.f32 %v1460_v32, %v1273_v10 }
 0x1d8   :  { %v2730_v33 = vsel %vm2557_vm4, %v2076_v41, %v2484_v23  ;;  %v1284_v12 = vadd.f32 %v8126_v42, %v8091_v39  ;;  %v1936_v41 = vrot.slane %v8209_v17, 2  ;;  %v8261_v59 = vadd.f32 %v8126_v42, %v8132_v26 }
 0x1d9   :  { %v3097_v6 = vpop.permute.xlu1 %3096  ;;  %v8233_v8 = vsel %vm2580_vm5, %v2730_v33, %v2528_v31  ;;  %v2706_v5 = vsel %vm1610_vm3, %v2684_v15, %v9614_v47  ;;  %3201 = vrot.lane.b32.xlu1 %v3166_v19, %s6652_s1  ;;  %v1691_v15 = vrot.slane %v1526_v3, 1  ;;  %v1933_v1 = vrot.slane %v1526_v3, 2 }
 0x1da   :  { %v3227_v51 = vsel %vm3217_vm15, %v7500_v28, %v3097_v6  ;;  %v1837_v28 = vmax.f32 %v8209_v17, %v1694_v25  ;;  %vm2785_vm14 = vcmp.ge.f32.partialorder %v2706_v5, 0.0  ;;  %v2830_v23 = vmul.f32 %v7034_v9, %v2706_v5 }
 0x1db   :  { %v8230_v62 = vpop.f32.mrb[120].mxu0  ;;  %v8250_v54 = vmul.f32 %v7034_v9, %v8233_v8  ;;  %v1463_v39 = vmax.f32 %v1273_v10, %v1284_v12  ;;  %v1276_v6 = vadd.f32 %v8126_v42, %v8103_v37  ;;  %v1289_v10 = vadd.f32 %v8126_v42, %v8136_v40 }
 0x1dc   :  { %v8240_v21 = vpop.f32.mrb[121].mxu0  ;;  %v2079_v17 = vmax.f32 %v1837_v28, %v1936_v41  ;;  %v2874_v47 = vsel %vm2785_vm14, %v2706_v5, %v2830_v23  ;;  %v8275_v26 = vadd.f32 %v8126_v42, %v8142_v18  ;;  %vm2790_vm14 = vcmp.ge.f32.partialorder %v8233_v8, 0.0 }
 0x1dd   :  { %v8246_v31 = vpop.f32.mrb[122].mxu0  ;;  %v3190_v32 = vpop.permute.xlu1 %3189  ;;  %v2905_v43 = vpack.c.bf16 %v2875_v7, %v2874_v47  ;;  %v1527_v37 = vmax.f32 %v1461_v61, %v1276_v6  ;;  %v8271_v5 = vmax.f32 %v1463_v39, %v8261_v59  ;;  %v1464_v57 = vmax.f32 %v1276_v6, %v1289_v10 }
 0x1de   :  { %v8254_v19 = vpop.f32.mrb[123].mxu0  ;;  %v8257_v33 = vsel %vm3254_vm2, %v3227_v51, %v3190_v32  ;;  %v2485_v51 = vrot.slane %v2079_v17, 1  ;;  %v2529_v12 = vrot.slane %v2079_v17, 2  ;;  %v8286_v32 = vadd.f32 %v8126_v42, %v8148_v53 }
 0x1df   :  { %9615 = vst [vmem:[#allocation18_spill] sm:$0xff] %v8257_v33  ;;  %6189 = vmatmul.mubr.msk.bf16.gmra.mrb[4].mxu1 %vm3385_vm8, %v8257_v33  ;;  %v8279_v7 = vsel %vm7178_vm11, %v2905_v43, 0  ;;  %v1692_v28 = vrot.slane %v1527_v37, 1  ;;  %v1934_v23 = vrot.slane %v1527_v37, 2 }
 0x1e0   :  { %9616 = vst [vmem:[#allocation19_spill] sm:$0xff] %v8279_v7  ;;  %v2731_v48 = vsel %vm2557_vm4, %v2079_v17, %v2485_v51  ;;  %v3035_v40 = vshll.u32 %v8279_v7, 16  ;;  %v3167_v61 = vrot.slane %v8279_v7, 1  ;;  %v3033_v10 = vshrl.u32 %v8279_v7, 16 }
 0x1e1   :  { %v8291_v18 = vsel %vm2580_vm5, %v2731_v48, %v2529_v12  ;;  %v1693_v43 = vsel %vm1610_vm3, %v1691_v15, %v1692_v28  ;;  %v1695_v47 = vsel %vm1610_vm3, %v1692_v28, %v1694_v25  ;;  %v1935_v6 = vsel %vm803_vm1, %v1933_v1, %v1934_v23 }
 0x1e2   :  { %v3037_v51 = vrot.slane %v3035_v40, 1  ;;  %v1835_v45 = vmax.f32 %v1526_v3, %v1693_v43  ;;  %v1836_v33 = vmax.f32 %v1527_v37, %v1695_v47  ;;  %v8303_v44 = vmul.f32 %v7034_v9, %v8291_v18 }
 0x1e3   :  { %v8288_v39 = vpop.f32.mrb[124].mxu0  ;;  %v1937_v12 = vsel %vm803_vm1, %v1934_v23, %v1936_v41  ;;  %v3168_v25 = vsel %vm1610_vm3, %v3167_v61, %v7039_v13  ;;  %v1696_v1 = vrot.slane %v8271_v5, 1  ;;  %v8314_v3 = vmax.f32 %v1464_v57, %v8275_v26 }
 0x1e4   :  { %v8296_v17 = vpop.f32.mrb[125].mxu0  ;;  %v3038_v28 = vor.u32 %v3037_v51, %v3033_v10  ;;  %v2077_v48 = vmax.f32 %v1835_v45, %v1935_v6  ;;  %v8311_v40 = vmax.f32 %v1836_v33, %v1937_v12  ;;  %v1938_v37 = vrot.slane %v8271_v5, 2 }
 0x1e5   :  { %v8299_v53 = vpop.f32.mrb[126].mxu0  ;;  %v1465_v43 = vmax.f32 %v8193_v20, %v8286_v32  ;;  %v9617_v41 = vrot.slane %v8118_v24, 6  ;;  %v8325_v61 = vadd.f32 %v8126_v42, %v8175_v36  ;;  %v1697_v51 = vrot.slane %v8314_v3, 1 }
 0x1e6   :  { %v8309_v15 = vpop.f32.mrb[127].mxu0  ;;  %v3039_v45 = vsel %vm2939_vm12, %v3038_v28, %v7039_v13  ;;  %v2133_v33 = vrot.slane %v2077_v48, 1  ;;  %v2177_v57 = vrot.slane %v2077_v48, 2  ;;  %v2221_v47 = vrot.slane %v2077_v48, 3 }
 0x1e7   :  { %v2685_v23 = vsel %vm803_vm1, %v8167_v22, %v9617_v41  ;;  %3110 = vrot.lane.b32.xlu0 %v3039_v45, %s6653_s21  ;;  %v2287_v20 = vrot.slane %v8311_v40, 4  ;;  %v2331_v32 = vrot.slane %v8311_v40, 5  ;;  %v1939_v12 = vrot.slane %v8314_v3, 2 }
 0x1e8   :  { %v2574_v36 = vsel %vm2557_vm4, %v2077_v48, %v2133_v33  ;;  %v9618_v45 = vrot.slane %v8118_v24, 7  ;;  %v2877_v22 = vsel %vm2788_vm9, %v8098_v29, %v8112_v35  ;;  %vm2792_vm9 = vcmp.ge.f32.partialorder %v8291_v18, 0.0 }
 0x1e9   :  { %v2597_v41 = vsel %vm2580_vm5, %v2574_v36, %v2177_v57  ;;  %v1940_v11 = vsel %vm803_vm1, %v1938_v37, %v1939_v12  ;;  %v1305_v36 = vadd.f32 %v8126_v42, %v8180_v16 }
 0x1ea   :  { %v3099_v6 = vpop.permute.xlu0 %3098  ;;  %v2707_v7 = vsel %vm1610_vm3, %v2685_v23, %v9618_v45 }
 0x1eb   :  { %v3229_v10 = vsel %vm3217_vm15, %v7585_v27, %v3099_v6  ;;  %v8339_v28 = vpop.f32.mrb[128].mxu0  ;;  %v2620_v27 = vsel %vm2603_vm6, %v2597_v41, %v2221_v47  ;;  %v1698_v6 = vsel %vm1610_vm3, %v1696_v1, %v1697_v51  ;;  %vm2787_vm10 = vcmp.ge.f32.partialorder %v2707_v7, 0.0  ;;  %3203 = vrot.lane.b32.xlu0 %v3168_v25, %s6652_s1 }
 0x1ec   :  { %v8349_v33 = vpop.f32.mrb[129].mxu0  ;;  %v2643_v24 = vsel %vm2626_vm7, %v2620_v27, %v2287_v20  ;;  %v1838_v29 = vmax.f32 %v8271_v5, %v1698_v6  ;;  %v2832_v23 = vmul.f32 %v7034_v9, %v2707_v7  ;;  %v1316_v20 = vadd.f32 %v8126_v42, %v8187_v2 }
 0x1ed   :  { %v8354_v57 = vpop.f32.mrb[130].mxu0  ;;  %v8365_v1 = vsel %vm802_vm0, %v2643_v24, %v2331_v32  ;;  %v8374_v5 = vadd.f32 %v8126_v42, %v8195_v4  ;;  %v1531_v16 = vmax.f32 %v1465_v43, %v1305_v36  ;;  %v8380_v32 = vadd.f32 %v8126_v42, %v8230_v62 }
 0x1ee   :  { %v3192_v35 = vpop.permute.xlu0 %3191  ;;  %v8362_v47 = vpop.f32.mrb[131].mxu0  ;;  %v2080_v25 = vmax.f32 %v1838_v29, %v1940_v11  ;;  %v2876_v41 = vsel %vm2787_vm10, %v2707_v7, %v2832_v23  ;;  %v9620_v2 = vrot.slane %v8206_v46, 4  ;;  %v9622_v29 = vrot.slane %v8206_v46, 5 }
 0x1ef   :  { %v8368_v37 = vsel %vm3254_vm2, %v3229_v10, %v3192_v35  ;;  %v2906_v45 = vpack.c.bf16 %v2877_v22, %v2876_v41  ;;  %v1468_v10 = vmax.f32 %v1305_v36, %v1316_v20  ;;  %v1699_v24 = vrot.slane %v1531_v16, 1 }
 0x1f0   :  { %9619 = vst [vmem:[#allocation20_spill] sm:$0xff] %v8368_v37  ;;  %6192 = vmatprep.mubr.msk.bf16.mxu1 %vm3385_vm8, %v8368_v37  ;;  %v2642_v4 = vsel %vm2626_vm7, %v8183_v60, %v9620_v2  ;;  %v2134_v7 = vrot.slane %v2080_v25, 1  ;;  %v2178_v6 = vrot.slane %v2080_v25, 2  ;;  %v1941_v62 = vrot.slane %v1531_v16, 2  ;;  %v6560_v60 = vld [vmem:[%s9562_s4] sm:$0xff]  }
 0x1f1   :  { %v8391_v43 = vsel %vm7178_vm11, %v2906_v45, 0  ;;  %v8394_v22 = vmax.f32 %v1468_v10, %v8380_v32  ;;  %v2664_v35 = vsel %vm802_vm0, %v2642_v4, %v9622_v29  ;;  %v2222_v36 = vrot.slane %v2080_v25, 3  ;;  %6220 = vmatprep.subr.bf16.mxu1 %v6560_v60 }
 0x1f2   :  { %9621 = vst [vmem:[#allocation21_spill] sm:$0xff] %v8391_v43  ;;  %v2575_v20 = vsel %vm2557_vm4, %v2080_v25, %v2134_v7  ;;  %v3043_v41 = vshll.u32 %v8391_v43, 16  ;;  %v1700_v45 = vsel %vm1610_vm3, %v1697_v51, %v1699_v24  ;;  %v1840_v4 = vmax.f32 %v1531_v16, %v1699_v24  ;;  %6221 = vmatpush3.bf16.msra.mxu1 %v6560_v60 }
 0x1f3   :  { %v8399_v23 = vpop.f32.mrb[132].mxu0  ;;  %v2598_v10 = vsel %vm2580_vm5, %v2575_v20, %v2178_v6  ;;  %v1839_v11 = vmax.f32 %v8314_v3, %v1700_v45  ;;  %v1942_v29 = vsel %vm803_vm1, %v1939_v12, %v1941_v62  ;;  %v3041_v27 = vshrl.u32 %v8391_v43, 16 }
 0x1f4   :  { %v8407_v2 = vpop.f32.mrb[133].mxu0  ;;  %v3045_v37 = vrot.slane %v3043_v41, 1  ;;  %v3169_v25 = vrot.slane %v8391_v43, 1  ;;  %v9589_v7 = vrot.slane %v8394_v22, 1  ;;  %v8420_v6 = vsel %vm2603_vm6, %v2598_v10, %v2222_v36 }
 0x1f5   :  { %v8412_v48 = vpop.f32.mrb[134].mxu0  ;;  %v8422_v3 = vmax.f32 %v1839_v11, %v1942_v29  ;;  %v2082_v16 = vmax.f32 %v1840_v4, %v1941_v62  ;;  %v9623_v12 = vrot.slane %v8206_v46, 6  ;;  %v9588_v45 = vrot.slane %v8394_v22, 2 }
 0x1f6   :  { %v8417_v51 = vpop.f32.mrb[135].mxu0  ;;  %v3046_v20 = vor.u32 %v3045_v37, %v3041_v27  ;;  %v1843_v41 = vmax.f32 %v8394_v22, %v9589_v7  ;;  %v9624_v43 = vrot.slane %v8206_v46, 7 }
 0x1f7   :  { %v2686_v24 = vsel %vm803_vm1, %v2664_v35, %v9623_v12  ;;  %v3170_v35 = vsel %vm1610_vm3, %v3169_v25, %v7039_v13  ;;  %v2486_v10 = vrot.slane %v2082_v16, 1  ;;  %v2530_v4 = vrot.slane %v2082_v16, 2 }
 0x1f8   :  { %v2708_v60 = vsel %vm1610_vm3, %v2686_v24, %v9624_v43  ;;  %v3047_v27 = vsel %vm2939_vm12, %v3046_v20, %v7039_v13  ;;  %v2085_v43 = vmax.f32 %v1843_v41, %v9588_v45  ;;  %v2879_v24 = vsel %vm2790_vm14, %v8233_v8, %v8250_v54 }
 0x1f9   :  { %v3101_v37 = vpop.permute.xlu1 %3100  ;;  %3112 = vrot.lane.b32.xlu1 %v3047_v27, %s6653_s21  ;;  %vm2789_vm13 = vcmp.ge.f32.partialorder %v2708_v60, 0.0  ;;  %v2834_v29 = vmul.f32 %v7034_v9, %v2708_v60  ;;  %v2732_v12 = vsel %vm2557_vm4, %v2082_v16, %v2486_v10  ;;  %v1332_v20 = vadd.f32 %v8126_v42, %v8246_v31 }
 0x1fa   :  { %v3231_v46 = vsel %vm3217_vm15, %v7678_v14, %v3101_v37  ;;  %v1321_v14 = vadd.f32 %v8126_v42, %v8240_v21  ;;  %v8460_v41 = vsel %vm2580_vm5, %v2732_v12, %v2530_v4  ;;  %v2487_v62 = vrot.slane %v2085_v43, 1 }
 0x1fb   :  { %v8448_v25 = vpop.f32.mrb[136].mxu0  ;;  %v2531_v11 = vrot.slane %v2085_v43, 2  ;;  %v2878_v36 = vsel %vm2789_vm13, %v2708_v60, %v2834_v29  ;;  %v8466_v8 = vmul.f32 %v7034_v9, %v8460_v41  ;;  %v9626_v31 = vmax.f32 %v8261_v59, %v8374_v5 }
 0x1fc   :  { %v8457_v37 = vpop.f32.mrb[137].mxu0  ;;  %v2907_v54 = vpack.c.bf16 %v2879_v24, %v2878_v36  ;;  %v2733_v60 = vsel %vm2557_vm4, %v2085_v43, %v2487_v62  ;;  %v1469_v29 = vmax.f32 %v1321_v14, %v1332_v20  ;;  %v6561_v62 = vld [vmem:[%s9562_s4 + $0x8] sm:$0xff]   ;;  %v8505_v20 = vadd.f32 %v8126_v42, %v8288_v39 }
 0x1fd   :  { %v3194_v27 = vpop.permute.xlu1 %3193  ;;  %v8462_v45 = vpop.f32.mrb[138].mxu0  ;;  %v1532_v16 = vmax.f32 %v9626_v31, %v1321_v14  ;;  %3205 = vrot.lane.b32.xlu1 %v3170_v35, %s6652_s1  ;;  %v8484_v36 = vsel %vm2580_vm5, %v2733_v60, %v2531_v11  ;;  %v9628_v11 = vmax.f32 %v8275_v26, %v8325_v61  ;;  %6222 = vmatprep.subr.bf16.mxu1 %v6561_v62  ;;  %vm2794_vm13 = vcmp.ge.f32.partialorder %v8460_v41, 0.0 }
 0x1fe   :  { %v8469_v21 = vsel %vm3254_vm2, %v3231_v46, %v3194_v27  ;;  %v8474_v10 = vpop.f32.mrb[139].mxu0  ;;  %v1324_v46 = vadd.f32 %v8126_v42, %v8254_v19  ;;  %v8488_v59 = vsel %vm7178_vm11, %v2907_v54, 0  ;;  %v8495_v35 = vmul.f32 %v7034_v9, %v8484_v36  ;;  %6223 = vmatpush3.bf16.msra.mxu1 %v6561_v62 }
 0x1ff   :  { %9625 = vst [vmem:[#allocation22_spill] sm:$0xff] %v8469_v21  ;;  %6193 = vmatmul.mubr.msk.bf16.gmra.mrb[8].mxu1 %vm3385_vm8, %v8469_v21  ;;  %9627 = vst [vmem:[#allocation23_spill] sm:$0xff] %v8488_v59  ;;  %v1701_v5 = vrot.slane %v1532_v16, 1  ;;  %v1943_v12 = vrot.slane %v1532_v16, 2  ;;  %v3049_v43 = vshrl.u32 %v8488_v59, 16  ;;  %v3051_v19 = vshll.u32 %v8488_v59, 16 }
 0x200   :  { %v1533_v24 = vmax.f32 %v9628_v11, %v1324_v46  ;;  %v3171_v14 = vrot.slane %v8488_v59, 1  ;;  %v1337_v27 = vadd.f32 %v8126_v42, %v8296_v17  ;;  %v8511_v54 = vadd.f32 %v8126_v42, %v8299_v53 }
 0x201   :  { %v3053_v31 = vrot.slane %v3051_v19, 1  ;;  %v8516_v61 = vadd.f32 %v8126_v42, %v8309_v15  ;;  %v1535_v17 = vmax.f32 %v1469_v29, %v8505_v20  ;;  %v9629_v53 = vrot.slane %v8311_v40, 6 }
 0x202   :  { %v1702_v60 = vrot.slane %v1533_v24, 1  ;;  %v1944_v26 = vrot.slane %v1533_v24, 2  ;;  %v3172_v39 = vsel %vm1610_vm3, %v3171_v14, %v7039_v13  ;;  %v1470_v4 = vmax.f32 %v1324_v46, %v1337_v27 }
 0x203   :  { %v6170_v11 = vpop.f32.mrb[140].mxu0  ;;  %v2687_v7 = vsel %vm803_vm1, %v8365_v1, %v9629_v53  ;;  %v3054_v21 = vor.u32 %v3053_v31, %v3049_v43  ;;  %v9630_v15 = vrot.slane %v8394_v22, 1  ;;  %v9631_v46 = vrot.slane %v8394_v22, 2 }
 0x204   :  { %v8525_v19 = vpop.f32.mrb[141].mxu0  ;;  %v1703_v59 = vsel %vm1610_vm3, %v1701_v5, %v1702_v60  ;;  %v1945_v11 = vsel %vm803_vm1, %v1943_v12, %v1944_v26  ;;  %v1706_v1 = vrot.slane %v1535_v17, 1  ;;  %v1948_v31 = vrot.slane %v1535_v17, 2 }
 0x205   :  { %v1705_v62 = vsel %vm1610_vm3, %v1702_v60, %v9630_v15  ;;  %v6171_v14 = vpop.f32.mrb[142].mxu0  ;;  %v1841_v63 = vmax.f32 %v1532_v16, %v1703_v59  ;;  %v1947_v27 = vsel %vm803_vm1, %v1944_v26, %v9631_v46  ;;  %v3055_v43 = vsel %vm2939_vm12, %v3054_v21, %v7039_v13 }
 0x206   :  { %v1842_v29 = vmax.f32 %v1533_v24, %v1705_v62  ;;  %v3103_v52 = vpop.permute.xlu0 %3102  ;;  %v1403_v53 = vpop.f32.mrb[143].mxu0  ;;  %v8540_v60 = vmax.f32 %v1470_v4, %v8511_v54  ;;  %3114 = vrot.lane.b32.xlu0 %v3055_v43, %s6653_s21  ;;  %v1471_v22 = vmax.f32 %v8380_v32, %v8516_v61  ;;  %v9632_v12 = vrot.slane %v8311_v40, 7 }
 0x207   :  { %v3233_v5 = vsel %vm3217_vm15, %v7746_v38, %v3103_v52  ;;  %v2083_v16 = vmax.f32 %v1841_v63, %v1945_v11  ;;  %v2881_v43 = vsel %vm2792_vm9, %v8291_v18, %v8303_v44  ;;  %v1364_v18 = vadd.f32 %v8126_v42, %v8354_v57 }
 0x208   :  { %v8543_v59 = vmax.f32 %v1842_v29, %v1947_v27  ;;  %v2709_v24 = vsel %vm1610_vm3, %v2687_v7, %v9632_v12  ;;  %v1707_v21 = vrot.slane %v8540_v60, 1  ;;  %v1949_v38 = vrot.slane %v8540_v60, 2 }
 0x209   :  { %vm2791_vm10 = vcmp.ge.f32.partialorder %v2709_v24, 0.0  ;;  %v2836_v52 = vmul.f32 %v7034_v9, %v2709_v24  ;;  %v2135_v4 = vrot.slane %v2083_v16, 1  ;;  %v2179_v26 = vrot.slane %v2083_v16, 2 }
 0x20a   :  { %v2223_v15 = vrot.slane %v2083_v16, 3  ;;  %v2289_v63 = vrot.slane %v8543_v59, 4  ;;  %v3196_v62 = vpop.permute.xlu0 %3195  ;;  %v2333_v11 = vrot.slane %v8543_v59, 5  ;;  %v2377_v32 = vrot.slane %v8543_v59, 6  ;;  %3207 = vrot.lane.b32.xlu0 %v3172_v39, %s6652_s1 }
 0x20b   :  { %v2421_v40 = vrot.slane %v8543_v59, 7  ;;  %v1708_v7 = vsel %vm1610_vm3, %v1706_v1, %v1707_v21  ;;  %v2576_v61 = vsel %vm2557_vm4, %v2083_v16, %v2135_v4  ;;  %v1950_v29 = vsel %vm803_vm1, %v1948_v31, %v1949_v38 }
 0x20c   :  { %v1844_v14 = vmax.f32 %v1535_v17, %v1708_v7  ;;  %v8562_v46 = vsel %vm3254_vm2, %v3233_v5, %v3196_v62  ;;  %v2599_v27 = vsel %vm2580_vm5, %v2576_v61, %v2179_v26  ;;  %v2880_v53 = vsel %vm2791_vm10, %v2709_v24, %v2836_v52 }
 0x20d   :  { %6196 = vmatprep.mubr.msk.bf16.mxu1 %vm3385_vm8, %v8562_v46  ;;  %v8574_v39 = vadd.f32 %v8126_v42, %v8339_v28  ;;  %v2622_v17 = vsel %vm2603_vm6, %v2599_v27, %v2223_v15  ;;  %v2908_v5 = vpack.c.bf16 %v2881_v43, %v2880_v53  ;;  %v1353_v31 = vadd.f32 %v8126_v42, %v8349_v33 }
 0x20e   :  { %v8577_v1 = vmax.f32 %v1844_v14, %v1950_v29  ;;  %v2645_v16 = vsel %vm2626_vm7, %v2622_v17, %v2289_v63  ;;  %v1356_v28 = vadd.f32 %v8126_v42, %v8362_v47  ;;  %v6562_v47 = vld [vmem:[%s9562_s4 + $0x10] sm:$0xff]   ;;  %v8616_v43 = vadd.f32 %v8126_v42, %v8399_v23 }
 0x20f   :  { %v1473_v44 = vmax.f32 %v8511_v54, %v8574_v39  ;;  %v8589_v12 = vsel %vm802_vm0, %v2645_v16, %v2333_v11  ;;  %v8596_v4 = vsel %vm7178_vm11, %v2908_v5, 0  ;;  %v1537_v26 = vmax.f32 %v1471_v22, %v1353_v31  ;;  %6224 = vmatprep.subr.bf16.mxu1 %v6562_v47 }
 0x210   :  { %v2136_v24 = vrot.slane %v8577_v1, 1  ;;  %v2180_v52 = vrot.slane %v8577_v1, 2  ;;  %v2224_v33 = vrot.slane %v8577_v1, 3  ;;  %v1474_v15 = vmax.f32 %v1353_v31, %v1364_v18  ;;  %6225 = vmatpush3.bf16.msra.mxu1 %v6562_v47 }
 0x211   :  { %v3105_v63 = vpop.permute.xlu1 %3104  ;;  %v1472_v57 = vmax.f32 %v8505_v20, %v1356_v28  ;;  %v3057_v11 = vshrl.u32 %v8596_v4, 16  ;;  %v3059_v7 = vshll.u32 %v8596_v4, 16  ;;  %v3173_v61 = vrot.slane %v8596_v4, 1 }
 0x212   :  { %v2577_v62 = vsel %vm2557_vm4, %v8577_v1, %v2136_v24  ;;  %v1709_v22 = vrot.slane %v1537_v26, 1  ;;  %v1951_v29 = vrot.slane %v1537_v26, 2  ;;  %v3235_v20 = vsel %vm3217_vm15, %v7823_v55, %v3105_v63 }
 0x213   :  { %v8608_v14 = vsel %vm2580_vm5, %v2577_v62, %v2180_v52  ;;  %v3061_v27 = vrot.slane %v3059_v7, 1  ;;  %v3174_v53 = vsel %vm1610_vm3, %v3173_v61, %v7039_v13  ;;  %v9633_v17 = vrot.slane %v8422_v3, 4 }
 0x214   :  { %v1710_v31 = vsel %vm1610_vm3, %v1707_v21, %v1709_v22  ;;  %v1846_v16 = vmax.f32 %v1537_v26, %v1709_v22  ;;  %v1952_v55 = vsel %vm803_vm1, %v1949_v38, %v1951_v29  ;;  %v9634_v28 = vrot.slane %v8422_v3, 5 }
 0x215   :  { %v2644_v5 = vsel %vm2626_vm7, %v8420_v6, %v9633_v17  ;;  %v3198_v18 = vpop.permute.xlu1 %3197  ;;  %v3062_v52 = vor.u32 %v3061_v27, %v3057_v11  ;;  %v1845_v23 = vmax.f32 %v8540_v60, %v1710_v31  ;;  %v8632_v62 = vmax.f32 %v1474_v15, %v8616_v43 }
 0x216   :  { %v2666_v24 = vsel %vm802_vm0, %v2644_v5, %v9634_v28  ;;  %v8629_v63 = vsel %vm3254_vm2, %v3235_v20, %v3198_v18  ;;  %v8634_v6 = vmax.f32 %v1846_v16, %v1951_v29  ;;  %v9635_v21 = vrot.slane %v8422_v3, 6 }
 0x217   :  { %6197 = vmatmul.mubr.msk.bf16.gmra.mrb[12].mxu1 %vm3385_vm8, %v8629_v63  ;;  %v1369_v60 = vadd.f32 %v8126_v42, %v8407_v2  ;;  %v3063_v26 = vsel %vm2939_vm12, %v3062_v52, %v7039_v13  ;;  %v8646_v47 = vmax.f32 %v1845_v23, %v1952_v55  ;;  %v1714_v15 = vrot.slane %v8632_v62, 1 }
 0x218   :  { %v2688_v38 = vsel %vm803_vm1, %v2666_v24, %v9635_v21  ;;  %v1956_v11 = vrot.slane %v8632_v62, 2  ;;  %3116 = vrot.lane.b32.xlu1 %v3063_v26, %s6653_s21  ;;  %v2488_v7 = vrot.slane %v8634_v6, 1  ;;  %v2532_v61 = vrot.slane %v8634_v6, 2  ;;  %v3319_v31 = vpop.permute.xlu0 %3318 }
 0x219   :  { %v9636_v22 = vrot.slane %v8422_v3, 7  ;;  %v2883_v2 = vsel %vm2794_vm13, %v8460_v41, %v8466_v8  ;;  %v2290_v20 = vrot.slane %v8646_v47, 4  ;;  %v2334_v27 = vrot.slane %v8646_v47, 5 }
 0x21a   :  { %v2378_v17 = vrot.slane %v8646_v47, 6  ;;  %v1849_v5 = vmax.f32 %v8632_v62, %v1714_v15  ;;  %v8664_v16 = vsel %vm2557_vm4, %v8634_v6, %v2488_v7  ;;  %v1538_v55 = vmax.f32 %v1472_v57, %v1369_v60 }
 0x21b   :  { %v2710_v29 = vsel %vm1610_vm3, %v2688_v38, %v9636_v22  ;;  %v1380_v41 = vadd.f32 %v8126_v42, %v8412_v48  ;;  %v1372_v8 = vadd.f32 %v8126_v42, %v8417_v51  ;;  %v3333_v28 = vsel %vm3217_vm15, %v7880_v56, %v3319_v31 }
 0x21c   :  { %vm2793_vm14 = vcmp.ge.f32.partialorder %v2710_v29, 0.0  ;;  %v2838_v3 = vmul.f32 %v7034_v9, %v2710_v29  ;;  %v8667_v18 = vmax.f32 %v1849_v5, %v1956_v11  ;;  %3209 = vrot.lane.b32.xlu1 %v3174_v53, %s6652_s1  ;;  %v1711_v52 = vrot.slane %v1538_v55, 1  ;;  %v3329_v26 = vpop.permute.xlu0 %3328 }
 0x21d   :  { %v1953_v23 = vrot.slane %v1538_v55, 2  ;;  %v1393_v62 = vadd.f32 %v8126_v42, %v8448_v25  ;;  %v1475_v48 = vmax.f32 %v1369_v60, %v1380_v41  ;;  %v1539_v51 = vmax.f32 %v1473_v44, %v1372_v8 }
 0x21e   :  { %v2882_v24 = vsel %vm2793_vm14, %v2710_v29, %v2838_v3  ;;  %v2489_v57 = vrot.slane %v8667_v18, 1  ;;  %v1385_v56 = vadd.f32 %v8126_v42, %v8457_v37  ;;  %v1396_v53 = vadd.f32 %v8126_v42, %v8462_v45  ;;  %v6563_v37 = vld [vmem:[%s9562_s4 + $0x18] sm:$0xff]  }
 0x21f   :  { %v2909_v38 = vpack.c.bf16 %v2883_v2, %v2882_v24  ;;  %v1388_v25 = vadd.f32 %v8126_v42, %v8474_v10  ;;  %v1541_v22 = vmax.f32 %v1475_v48, %v1393_v62  ;;  %v8698_v54 = vsel %vm3254_vm2, %v3333_v28, %v3329_v26  ;;  %6226 = vmatprep.subr.bf16.mxu1 %v6563_v37 }
 0x220   :  { %v8691_v7 = vsel %vm2557_vm4, %v8667_v18, %v2489_v57  ;;  %v1712_v39 = vrot.slane %v1539_v51, 1  ;;  %v1954_v44 = vrot.slane %v1539_v51, 2  ;;  %6200 = vmatprep.mubr.msk.bf16.mxu1 %vm3385_vm8, %v8698_v54  ;;  %v1476_v31 = vmax.f32 %v1372_v8, %v1385_v56  ;;  %6227 = vmatpush3.bf16.msra.mxu1 %v6563_v37 }
 0x221   :  { %v8695_v60 = vsel %vm7178_vm11, %v2909_v38, 0  ;;  %v1716_v2 = vrot.slane %v1541_v22, 1  ;;  %v1958_v5 = vrot.slane %v1541_v22, 2  ;;  %v1477_v8 = vmax.f32 %v8616_v43, %v1388_v25 }
 0x222   :  { %v3065_v45 = vshrl.u32 %v8695_v60, 16  ;;  %v3067_v10 = vshll.u32 %v8695_v60, 16  ;;  %v3175_v29 = vrot.slane %v8695_v60, 1  ;;  %v1713_v41 = vsel %vm1610_vm3, %v1711_v52, %v1712_v39 }
 0x223   :  { %v1715_v28 = vsel %vm1610_vm3, %v1712_v39, %v1714_v15  ;;  %v1955_v24 = vsel %vm803_vm1, %v1953_v23, %v1954_v44  ;;  %v1847_v62 = vmax.f32 %v1538_v55, %v1713_v41  ;;  %v1957_v38 = vsel %vm803_vm1, %v1954_v44, %v1956_v11 }
 0x224   :  { %v3069_v3 = vrot.slane %v3067_v10, 1  ;;  %v1848_v57 = vmax.f32 %v1539_v51, %v1715_v28  ;;  %v3176_v48 = vsel %vm1610_vm3, %v3175_v29, %v7039_v13  ;;  %v8714_v21 = vmax.f32 %v1476_v31, %v1396_v53 }
 0x225   :  { %v2689_v15 = vsel %vm803_vm1, %v8589_v12, %v2377_v32  ;;  %v2089_v52 = vmax.f32 %v1847_v62, %v1955_v24  ;;  %vm2796_vm9 = vcmp.ge.f32.partialorder %v8484_v36, 0.0  ;;  %v2422_v41 = vrot.slane %v8646_v47, 7  ;;  %v6564_v47 = vld [vmem:[%s9562_s4 + $0x20] sm:$0xff]  }
 0x226   :  { %v3070_v26 = vor.u32 %v3069_v3, %v3065_v45  ;;  %v8721_v23 = vmax.f32 %v1848_v57, %v1957_v38  ;;  %v2711_v11 = vsel %vm1610_vm3, %v2689_v15, %v2421_v40  ;;  %v1717_v51 = vrot.slane %v8714_v21, 1  ;;  %6228 = vmatprep.subr.bf16.mxu1 %v6564_v47 }
 0x227   :  { %v1959_v43 = vrot.slane %v8714_v21, 2  ;;  %vm2795_vm10 = vcmp.ge.f32.partialorder %v2711_v11, 0.0  ;;  %v2137_v32 = vrot.slane %v2089_v52, 1  ;;  %v2181_v12 = vrot.slane %v2089_v52, 2  ;;  %6229 = vmatpush3.bf16.msra.mxu1 %v6564_v47  ;;  %v9645_v47 = vld [vmem:[#allocation14_spill] sm:$0xff] }
 0x228   :  { %v3071_v55 = vsel %vm2939_vm12, %v3070_v26, %v7039_v13  ;;  %v2225_v56 = vrot.slane %v2089_v52, 3  ;;  %v2291_v53 = vrot.slane %v8721_v23, 4  ;;  %v2335_v59 = vrot.slane %v8721_v23, 5 }
 0x229   :  { %3118 = vrot.lane.b32.xlu0 %v3071_v55, %s6653_s21  ;;  %v2379_v40 = vrot.slane %v8721_v23, 6  ;;  %v2423_v25 = vrot.slane %v8721_v23, 7  ;;  %v1718_v37 = vsel %vm1610_vm3, %v1716_v2, %v1717_v51  ;;  %v2578_v45 = vsel %vm2557_vm4, %v2089_v52, %v2137_v32 }
 0x22a   :  { %v1850_v10 = vmax.f32 %v1541_v22, %v1718_v37  ;;  %v1960_v39 = vsel %vm803_vm1, %v1958_v5, %v1959_v43  ;;  %v2840_v44 = vmul.f32 %v7034_v9, %v2711_v11  ;;  %v2601_v29 = vsel %vm2580_vm5, %v2578_v45, %v2181_v12 }
 0x22b   :  { %v2885_v31 = vsel %vm2796_vm9, %v8484_v36, %v8495_v35  ;;  %v1401_v3 = vadd.f32 %v8126_v42, %v8525_v19  ;;  %v2624_v2 = vsel %vm2603_vm6, %v2601_v29, %v2225_v56  ;;  %v2623_v28 = vsel %vm2603_vm6, %v8608_v14, %v2224_v33 }
 0x22c   :  { %v8750_v22 = vmax.f32 %v1850_v10, %v1960_v39  ;;  %v2884_v5 = vsel %vm2795_vm10, %v2711_v11, %v2840_v44  ;;  %v2647_v36 = vsel %vm2626_vm7, %v2624_v2, %v2291_v53  ;;  %v2646_v42 = vsel %vm2626_vm7, %v2623_v28, %v2290_v20  ;;  %v8824_v28 = vld [vmem:[%s9562_s4 + $0x28] ss:$0 sps:$4 sm:$0x33]  }
 0x22d   :  { %3211 = vrot.lane.b32.xlu0 %v3176_v48, %s6652_s1  ;;  %v2910_v35 = vpack.c.bf16 %v2885_v31, %v2884_v5  ;;  %v1543_v24 = vmax.f32 %v1477_v8, %v1401_v3  ;;  %v2668_v1 = vsel %vm802_vm0, %v2646_v42, %v2334_v27  ;;  %v2669_v6 = vsel %vm802_vm0, %v2647_v36, %v2335_v59 }
 0x22e   :  { %v2138_v19 = vrot.slane %v8750_v22, 1  ;;  %v2182_v62 = vrot.slane %v8750_v22, 2  ;;  %v2226_v57 = vrot.slane %v8750_v22, 3  ;;  %v2690_v20 = vsel %vm803_vm1, %v2668_v1, %v2378_v17  ;;  %6469 = vmatprep.subr.msk.bf16.mxu1 %vm2580_vm5, %v8824_v28 }
 0x22f   :  { %v8769_v33 = vsel %vm7178_vm11, %v2910_v35, 0  ;;  %v1719_v14 = vrot.slane %v1543_v24, 1  ;;  %v1961_v38 = vrot.slane %v1543_v24, 2  ;;  %v2712_v56 = vsel %vm1610_vm3, %v2690_v20, %v2422_v41 }
 0x230   :  { %v2579_v48 = vsel %vm2557_vm4, %v8750_v22, %v2138_v19  ;;  %v3073_v26 = vshrl.u32 %v8769_v33, 16  ;;  %v3075_v8 = vshll.u32 %v8769_v33, 16  ;;  %v3177_v15 = vrot.slane %v8769_v33, 1 }
 0x231   :  { %v8780_v27 = vsel %vm2580_vm5, %v2579_v48, %v2182_v62  ;;  %v1720_v52 = vsel %vm1610_vm3, %v1717_v51, %v1719_v14  ;;  %v1852_v11 = vmax.f32 %v1543_v24, %v1719_v14  ;;  %v1962_v55 = vsel %vm803_vm1, %v1959_v43, %v1961_v38 }
 0x232   :  { %v3077_v17 = vrot.slane %v3075_v8, 1  ;;  %v1851_v32 = vmax.f32 %v8714_v21, %v1720_v52  ;;  %v3178_v12 = vsel %vm1610_vm3, %v3177_v15, %v7039_v13  ;;  %v2756_v51 = vsel %vm2580_vm5, %v8664_v16, %v2532_v61  ;;  %v9642_v15 = vld [vmem:[#allocation12_spill] sm:$0xff] }
 0x233   :  { %v8791_v53 = vmax.f32 %v1852_v11, %v1961_v38  ;;  %vm2797_vm13 = vcmp.ge.f32.partialorder %v2712_v56, 0.0  ;;  %v2842_v43 = vmul.f32 %v7034_v9, %v2712_v56  ;;  %vm2798_vm14 = vcmp.ge.f32.partialorder %v2756_v51, 0.0  ;;  %v9643_v11 = vld [vmem:[#allocation11_spill] sm:$0xff] }
 0x234   :  { %v3078_v37 = vor.u32 %v3077_v17, %v3073_v26  ;;  %v8798_v45 = vmax.f32 %v1851_v32, %v1962_v55  ;;  %v2843_v21 = vmul.f32 %v7034_v9, %v2756_v51  ;;  %v2691_v59 = vsel %vm803_vm1, %v2669_v6, %v2379_v40  ;;  %v9640_v26 = vld [vmem:[#allocation10_spill] sm:$0xff] }
 0x235   :  { %v2490_v10 = vrot.slane %v8791_v53, 1  ;;  %v2534_v39 = vrot.slane %v8791_v53, 2  ;;  %v2886_v44 = vsel %vm2797_vm13, %v2712_v56, %v2842_v43  ;;  %v9637_v2 = vrot.slane %v8667_v18, 2 }
 0x236   :  { %v3079_v61 = vsel %vm2939_vm12, %v3078_v37, %v7039_v13  ;;  %v2292_v16 = vrot.slane %v8798_v45, 4  ;;  %v2336_v29 = vrot.slane %v8798_v45, 5  ;;  %v2380_v31 = vrot.slane %v8798_v45, 6 }
 0x237   :  { %3120 = vrot.lane.b32.xlu1 %v3079_v61, %s6653_s21  ;;  %v8812_v3 = vsel %vm2557_vm4, %v8791_v53, %v2490_v10  ;;  %v2887_v41 = vsel %vm2798_vm14, %v2756_v51, %v2843_v21  ;;  %v2757_v5 = vsel %vm2580_vm5, %v8691_v7, %v9637_v2  ;;  %v2713_v35 = vsel %vm1610_vm3, %v2691_v59, %v2423_v25 }
 0x238   :  { %v2911_v36 = vpack.c.bf16 %v2887_v41, %v2886_v44  ;;  %vm2800_vm9 = vcmp.ge.f32.partialorder %v2757_v5, 0.0  ;;  %v2845_v24 = vmul.f32 %v7034_v9, %v2757_v5  ;;  %vm2799_vm10 = vcmp.ge.f32.partialorder %v2713_v35, 0.0 }
 0x239   :  { %v2844_v40 = vmul.f32 %v7034_v9, %v2713_v35  ;;  %v9638_v18 = vrot.slane %v7026_v0, 7  ;;  %v9639_v42 = vrot.slane %v7019_v58, 2  ;;  %v2414_v38 = vrot.slane %v7908_v49, 7 }
 0x23a   :  { %v8843_v23 = vsel %vm7178_vm11, %v2911_v36, 0  ;;  %v2889_v25 = vsel %vm2800_vm9, %v2757_v5, %v2845_v24  ;;  %v9641_v8 = vrot.slane %v9640_v26, 3  ;;  %v9644_v55 = vrot.slane %v9643_v11, 2 }
 0x23b   :  { %v2693_v7 = vsel %vm1610_vm3, %v7112_v34, %v9638_v18  ;;  %v2737_v19 = vsel %vm2580_vm5, %v7053_v30, %v9639_v42  ;;  %3213 = vrot.lane.b32.xlu1 %v3178_v12, %s6652_s1  ;;  %v3179_v0 = vrot.slane %v8843_v23, 1  ;;  %v3081_v34 = vshrl.u32 %v8843_v23, 16  ;;  %v9649_v42 = vld [vmem:[#allocation7_spill] sm:$0xff] }
 0x23c   :  { %vm2759_vm13 = vcmp.ge.f32.partialorder %v2693_v7, 0.0  ;;  %vm2760_vm14 = vcmp.ge.f32.partialorder %v2737_v19, 0.0  ;;  %v3083_v58 = vshll.u32 %v8843_v23, 16  ;;  %v2888_v62 = vsel %vm2799_vm10, %v2713_v35, %v2844_v40 }
 0x23d   :  { %v2912_v30 = vpack.c.bf16 %v2889_v25, %v2888_v62  ;;  %v2804_v1 = vmul.f32 %v7034_v9, %v2693_v7  ;;  %v2805_v14 = vmul.f32 %v7034_v9, %v2737_v19  ;;  %v3180_v20 = vsel %vm1610_vm3, %v3179_v0, %v7039_v13  ;;  %v9650_v62 = vld [vmem:[#allocation5_spill] sm:$0xff] }
 0x23e   :  { %v3085_v48 = vrot.slane %v3083_v58, 1  ;;  %v2615_v52 = vsel %vm2603_vm6, %v9642_v15, %v9641_v8  ;;  %v2748_v17 = vsel %vm2580_vm5, %v9645_v47, %v9644_v55  ;;  %v9646_v51 = vrot.slane %v7908_v49, 4 }
 0x23f   :  { %v8864_v32 = vsel %vm7178_vm11, %v2912_v30, 0  ;;  %v2848_v12 = vsel %vm2759_vm13, %v2693_v7, %v2804_v1  ;;  %v2849_v56 = vsel %vm2760_vm14, %v2737_v19, %v2805_v14  ;;  %3215 = vrot.lane.b32.xlu1 %v3180_v20, %s6652_s1  ;;  %v9647_v61 = vrot.slane %v7908_v49, 5  ;;  %v9652_v1 = vld [vmem:[#allocation8_spill] sm:$0xff] }
 0x240   :  { %v2638_v43 = vsel %vm2626_vm7, %v2615_v52, %v9646_v51  ;;  %v3086_v37 = vor.u32 %v3085_v48, %v3081_v34  ;;  %v3326_v21 = vrot.slane %v8864_v32, 1  ;;  %v3311_v10 = vshrl.u32 %v8864_v32, 16  ;;  %v9655_v48 = vld [vmem:[#allocation9_spill] sm:$0xff] }
 0x241   :  { %v3313_v44 = vshll.u32 %v8864_v32, 16  ;;  %v2892_v6 = vpack.c.bf16 %v2849_v56, %v2848_v12  ;;  %v2660_v41 = vsel %vm802_vm0, %v2638_v43, %v9647_v61  ;;  %vm2782_vm9 = vcmp.ge.f32.partialorder %v2748_v17, 0.0 }
 0x242   :  { %v2827_v59 = vmul.f32 %v7034_v9, %v2748_v17  ;;  %v3087_v2 = vsel %vm2939_vm12, %v3086_v37, %v7039_v13  ;;  %v3327_v5 = vsel %vm1610_vm3, %v3326_v21, %v7039_v13  ;;  %v9648_v35 = vrot.slane %v7908_v49, 6 }
 0x243   :  { %v3315_v36 = vrot.slane %v3313_v44, 1  ;;  %3122 = vrot.lane.b32.xlu0 %v3087_v2, %s6653_s21  ;;  %v8889_v40 = vsel %vm7178_vm11, %v2892_v6, 0  ;;  %v2413_v19 = vrot.slane %v9649_v42, 7  ;;  %3330 = vrot.lane.b32.xlu1 %v3327_v5, %s6652_s1  ;;  %v9651_v30 = vrot.slane %v9650_v62, 3 }
 0x244   :  { %v2682_v24 = vsel %vm803_vm1, %v2660_v41, %v9648_v35  ;;  %v2871_v7 = vsel %vm2782_vm9, %v2748_v17, %v2827_v59  ;;  %v3144_v0 = vrot.slane %v8889_v40, 1  ;;  %v2941_v34 = vshrl.u32 %v8889_v40, 16 }
 0x245   :  { %v2704_v18 = vsel %vm1610_vm3, %v2682_v24, %v2414_v38  ;;  %v3316_v25 = vor.u32 %v3315_v36, %v3311_v10  ;;  %v2943_v58 = vshll.u32 %v8889_v40, 16  ;;  %v2614_v14 = vsel %vm2603_vm6, %v9652_v1, %v9651_v30  ;;  %v9653_v38 = vld [vmem:[#allocation6_spill] sm:$0xff] }
 0x246   :  { %vm2781_vm10 = vcmp.ge.f32.partialorder %v2704_v18, 0.0  ;;  %v2826_v49 = vmul.f32 %v7034_v9, %v2704_v18  ;;  %v9654_v20 = vrot.slane %v9653_v38, 2  ;;  %v3146_v15 = vsel %vm1610_vm3, %v3144_v0, %v7039_v13 }
 0x247   :  { %v3317_v8 = vsel %vm2939_vm12, %v3316_v25, %v7039_v13  ;;  %v9656_v11 = vrot.slane %v9649_v42, 4  ;;  %v2945_v17 = vrot.slane %v2943_v58, 1  ;;  %v9657_v12 = vrot.slane %v9649_v42, 5  ;;  %3181 = vrot.lane.b32.xlu1 %v3146_v15, %s6652_s1  ;;  %v8959_v25 = vld [vmem:[%s9562_s4 + $0x58] sm:$0xff]   ;;  %v9659_v58 = vld [vmem:[#allocation17_spill] sm:$0xff] }
 0x248   :  { %v2747_v26 = vsel %vm2580_vm5, %v9655_v48, %v9654_v20  ;;  %v2870_v52 = vsel %vm2781_vm10, %v2704_v18, %v2826_v49  ;;  %3320 = vrot.lane.b32.xlu0 %v3317_v8, %s6653_s21  ;;  %v9658_v51 = vrot.slane %v9649_v42, 6  ;;  %v2424_v21 = vrot.slane %v8798_v45, 7 }
 0x249   :  { %v2637_v55 = vsel %vm2626_vm7, %v2614_v14, %v9656_v11  ;;  %v2903_v47 = vpack.c.bf16 %v2871_v7, %v2870_v52  ;;  %vm2780_vm13 = vcmp.ge.f32.partialorder %v2747_v26, 0.0  ;;  %v2825_v37 = vmul.f32 %v7034_v9, %v2747_v26  ;;  %v3109_v7 = vpop.permute.xlu1 %3108 }
 0x24a   :  { %v2659_v56 = vsel %vm802_vm0, %v2637_v55, %v9657_v12  ;;  %v2625_v10 = vsel %vm2603_vm6, %v8780_v27, %v2226_v57  ;;  %v2946_v6 = vor.u32 %v2945_v17, %v2941_v34  ;;  %v2758_v18 = vsel %vm2580_vm5, %v8812_v3, %v2534_v39 }
 0x24b   :  { %v2681_v43 = vsel %vm803_vm1, %v2659_v56, %v9658_v51  ;;  %v8929_v44 = vsel %vm7178_vm11, %v2903_v47, 0  ;;  %v2648_v41 = vsel %vm2626_vm7, %v2625_v10, %v2292_v16  ;;  %v2869_v22 = vsel %vm2780_vm13, %v2747_v26, %v2825_v37  ;;  %v9660_v51 = vld [vmem:[#allocation19_spill] sm:$0xff] }
 0x24c   :  { %v2703_v61 = vsel %vm1610_vm3, %v2681_v43, %v2413_v19  ;;  %v3163_v59 = vrot.slane %v8929_v44, 1  ;;  %v2951_v57 = vsel %vm2939_vm12, %v2946_v6, %v7039_v13  ;;  %v3017_v27 = vshrl.u32 %v8929_v44, 16  ;;  %v9661_v6 = vld [vmem:[#allocation21_spill] sm:$0xff] }
 0x24d   :  { %vm2779_vm14 = vcmp.ge.f32.partialorder %v2703_v61, 0.0  ;;  %v2824_v2 = vmul.f32 %v7034_v9, %v2703_v61  ;;  %v3019_v5 = vshll.u32 %v8929_v44, 16  ;;  %v2670_v36 = vsel %vm802_vm0, %v2648_v41, %v2336_v29  ;;  %3088 = vrot.lane.b32.xlu0 %v2951_v57, %s6653_s21  ;;  %v3202_v30 = vpop.permute.xlu1 %3201 }
 0x24e   :  { %v3164_v16 = vsel %vm1610_vm3, %v3163_v59, %v7039_v13  ;;  %v2692_v24 = vsel %vm803_vm1, %v2670_v36, %v2380_v31  ;;  %vm2802_vm0 = vcmp.ge.f32.partialorder %v2758_v18, 0.0  ;;  %v2847_v53 = vmul.f32 %v7034_v9, %v2758_v18 }
 0x24f   :  { %v2868_v35 = vsel %vm2779_vm14, %v2703_v61, %v2824_v2  ;;  %3199 = vrot.lane.b32.xlu1 %v3164_v16, %s6652_s1  ;;  %v3021_v29 = vrot.slane %v3019_v5, 1  ;;  %v2714_v19 = vsel %vm1610_vm3, %v2692_v24, %v2424_v21  ;;  %v3640_v3 = vsel %vm2580_vm5, %v8824_v28, 0  ;;  %v9662_v2 = vld [vmem:[#allocation23_spill] sm:$0xff] }
 0x250   :  { %v2902_v42 = vpack.c.bf16 %v2869_v22, %v2868_v35  ;;  %vm2801_vm7 = vcmp.ge.f32.partialorder %v2714_v19, 0.0  ;;  %v2846_v45 = vmul.f32 %v7034_v9, %v2714_v19  ;;  %v2891_v34 = vsel %vm2802_vm0, %v2758_v18, %v2847_v53  ;;  %6231 = vmatpush3.bf16.msra.mxu1 %v3640_v3 }
 0x251   :  { %v3022_v31 = vor.u32 %v3021_v29, %v3017_v27  ;;  %v3239_v62 = vsel %vm3217_vm15, %v9659_v58, %v3109_v7  ;;  %6268 = vmatprep.subr.bf16.mxu1 %v8959_v25 }
 0x252   :  { %v8965_v39 = vsel %vm7178_vm11, %v2902_v42, 0  ;;  %v2890_v49 = vsel %vm2801_vm7, %v2714_v19, %v2846_v45  ;;  %v8976_v38 = vsel %vm3254_vm2, %v3239_v62, %v3202_v30  ;;  %vm4834_vm7 = vcmask 1041409  }
 0x253   :  { %v3841_v0 = vrot.slane %v8965_v39, 1  ;;  %v3023_v9 = vsel %vm2939_vm12, %v3022_v31, %v7039_v13  ;;  %v2913_v1 = vpack.c.bf16 %v2891_v34, %v2890_v49  ;;  %v3822_v14 = vshll.u32 %v8965_v39, 16  ;;  %6201 = vmatmul.mubr.msk.bf16.gmra.mrb[16].mxu1 %vm3385_vm8, %v8976_v38 }
 0x254   :  { %3106 = vrot.lane.b32.xlu0 %v3023_v9, %s6653_s21  ;;  %v3820_v48 = vshrl.u32 %v8965_v39, 16  ;;  %v6567_v9 = vld [vmem:[%s9562_s4 + $0x60] sm:$0xff]  }
 0x255   :  { %v3842_v28 = vsel %vm1610_vm3, %v3841_v0, %v7039_v13  ;;  %v8987_v20 = vsel %vm7178_vm11, %v2913_v1, 0  ;;  %v3824_v26 = vrot.slane %v3822_v14, 1  ;;  %v9664_v1 = vld [vmem:[#allocation15_spill] sm:$0xff] }
 0x256   :  { %3845 = vrot.lane.b32.xlu1 %v3842_v28, %s6652_s1  ;;  %v3843_v8 = vrot.slane %v8987_v20, 1  ;;  %v3830_v15 = vshll.u32 %v8987_v20, 16  ;;  %v3828_v55 = vshrl.u32 %v8987_v20, 16  ;;  %v6569_v14 = vld [vmem:[%s9562_s4 + $0x70] sm:$0xff]   ;;  %v9665_v28 = vld [vmem:[#allocation16_spill] sm:$0xff] }
 0x257   :  { %v3825_v52 = vor.u32 %v3824_v26, %v3820_v48  ;;  %v9666_v48 = vld [vmem:[#allocation18_spill] sm:$0xff]  ;;  %v6571_v26 = vld [vmem:[%s9562_s4 + $0x80] ss:$0 sps:$4 sm:$0x33]  }
 0x258   :  { %v3844_v11 = vsel %vm1610_vm3, %v3843_v8, %v7039_v13  ;;  %v3832_v47 = vrot.slane %v3830_v15, 1  ;;  %v9667_v8 = vld [vmem:[#allocation20_spill] sm:$0xff]  ;;  %v9668_v15 = vld [vmem:[#allocation22_spill] sm:$0xff] }
 0x259   :  { %v3826_v50 = vsel %vm2939_vm12, %v3825_v52, %v7039_v13  ;;  %v3111_v56 = vpop.permute.xlu0 %3110  ;;  %v3907_v52 = vsel %vm2580_vm5, %v6571_v26, 0 }
 0x25a   :  { %3847 = vrot.lane.b32.xlu1 %v3844_v11, %s6652_s1  ;;  %3835 = vrot.lane.b32.xlu0 %v3826_v50, %s6653_s21  ;;  %v3833_v17 = vor.u32 %v3832_v47, %v3828_v55  ;;  %v3241_v43 = vsel %vm3217_vm15, %v9660_v51, %v3111_v56  ;;  %v6572_v56 = vld [vmem:[%s9564_s6 + $0x30] sm:$0xff]   ;;  %v6654_v51 = vmov 0.0  }
 0x25c   :  { %v3834_v12 = vsel %vm2939_vm12, %v3833_v17, %v7039_v13 }
 0x25d   :  { %v3204_v37 = vpop.permute.xlu0 %3203 }
 0x25e   :  { %3837 = vrot.lane.b32.xlu0 %v3834_v12, %s6653_s21  ;;  %v9005_v21 = vsel %vm3254_vm2, %v3241_v43, %v3204_v37  ;;  %v6573_v43 = vld [vmem:[%s9564_s6 + $0x38] sm:$0xff]   ;;  %v9172_v37 = vld [vmem:[%s9563_s5] ss:$0 sm:$0xff]  ;;  %s5448_s5 = sld [smem:[#allocation2 + $0x1]]  ;;  %s6656_s21 = smov 48  }
 0x25f   :  { %6204 = vmatprep.mubr.msk.bf16.mxu1 %vm3385_vm8, %v9005_v21 }
 0x26b   :  { %v3113_v10 = vpop.permute.xlu1 %3112 }
 0x26c   :  { %v3243_v61 = vsel %vm3217_vm15, %v9661_v6, %v3113_v10 }
 0x26f   :  { %v3206_v41 = vpop.permute.xlu1 %3205 }
 0x270   :  { %v9012_v13 = vsel %vm3254_vm2, %v3243_v61, %v3206_v41 }
 0x271   :  { %6205 = vmatmul.mubr.msk.bf16.gmra.mrb[20].mxu1 %vm3385_vm8, %v9012_v13 }
 0x278   :  { %v3115_v59 = vpop.permute.xlu0 %3114 }
 0x279   :  { %v3245_v22 = vsel %vm3217_vm15, %v9662_v2, %v3115_v59 }
 0x27c   :  { %v3208_v57 = vpop.permute.xlu0 %3207 }
 0x27d   :  { %v9019_v27 = vsel %vm3254_vm2, %v3245_v22, %v3208_v57 }
 0x27e   :  { %6208 = vmatprep.mubr.msk.bf16.mxu1 %vm3385_vm8, %v9019_v27 }
 0x28a   :  { %v3117_v5 = vpop.permute.xlu1 %3116 }
 0x28b   :  { %v3247_v36 = vsel %vm3217_vm15, %v8596_v4, %v3117_v5 }
 0x28e   :  { %v3210_v16 = vpop.permute.xlu1 %3209 }
 0x28f   :  { %v9026_v35 = vsel %vm3254_vm2, %v3247_v36, %v3210_v16 }
 0x290   :  { %6209 = vmatmul.mubr.msk.bf16.gmra.mrb[24].mxu1 %vm3385_vm8, %v9026_v35 }
 0x29b   :  { %v3119_v24 = vpop.permute.xlu0 %3118 }
 0x29c   :  { %v3249_v18 = vsel %vm3217_vm15, %v8695_v60, %v3119_v24 }
 0x29f   :  { %v3212_v7 = vpop.permute.xlu0 %3211 }
 0x2a0   :  { %v9033_v42 = vsel %vm3254_vm2, %v3249_v18, %v3212_v7 }
 0x2a1   :  { %6212 = vmatprep.mubr.msk.bf16.mxu1 %vm3385_vm8, %v9033_v42 }
 0x2a9   :  { %v3121_v29 = vpop.permute.xlu1 %3120 }
 0x2aa   :  { %v3251_v4 = vsel %vm3217_vm15, %v8769_v33, %v3121_v29 }
 0x2ad   :  { %v3214_v19 = vpop.permute.xlu1 %3213 }
 0x2ae   :  { %v9040_v45 = vsel %vm3254_vm2, %v3251_v4, %v3214_v19 }
 0x2af   :  { %6213 = vmatmul.mubr.msk.bf16.gmra.mrb[28].mxu1 %vm3385_vm8, %v9040_v45 }
 0x2b1   :  { %v3216_v53 = vpop.permute.xlu1 %3215 }
 0x2b5   :  { %v3123_v60 = vpop.permute.xlu0 %3122  ;;  %v3331_v0 = vpop.permute.xlu1 %3330 }
 0x2b6   :  { %v3253_v31 = vsel %vm3217_vm15, %v8843_v23, %v3123_v60 }
 0x2b7   :  { %v9047_v3 = vsel %vm3254_vm2, %v3253_v31, %v3216_v53 }
 0x2b8   :  { %6216 = vmatprep.mubr.msk.bf16.mxu1 %vm3385_vm8, %v9047_v3 }
 0x2b9   :  { %v3182_v62 = vpop.permute.xlu1 %3181 }
 0x2ba   :  { %v3321_v33 = vpop.permute.xlu0 %3320 }
 0x2bb   :  { %v3335_v49 = vsel %vm3217_vm15, %v8864_v32, %v3321_v33  ;;  %v9663_v32 = vld [vmem:[#allocation13_spill] sm:$0xff] }
 0x2bc   :  { %v9054_v34 = vsel %vm3254_vm2, %v3335_v49, %v3331_v0 }
 0x2bd   :  { %6217 = vmatmul.mubr.msk.bf16.gmra.mrb[32].mxu1 %vm3385_vm8, %v9054_v34 }
 0x2bf   :  { %v3089_v58 = vpop.permute.xlu0 %3088 }
 0x2c0   :  { %v3219_v23 = vsel %vm3217_vm15, %v8889_v40, %v3089_v58  ;;  %v6568_v40 = vld [vmem:[%s9562_s4 + $0x68] sm:$0xff]  }
 0x2c1   :  { %v3256_v30 = vsel %vm3254_vm2, %v3219_v23, %v3182_v62  ;;  %v3200_v47 = vpop.permute.xlu1 %3199 }
 0x2c2   :  { %6232 = vmatprep.mubr.msk.bf16.mxu1 %vm3385_vm8, %v3256_v30 }
 0x2c5   :  { %6233 = vmatmul.mubr.msk.bf16.vlgmr.msra.gmra.mrb[0].mxu1 %vm3385_vm8, %v9663_v32 }
 0x2c6   :  { %6269 = vmatpush3.bf16.msra.mxu1 %v8959_v25  ;;  %6236 = vmatprep.mubr.msk.bf16.mxu1 %vm3385_vm8, %v9664_v1  ;;  %v6570_v25 = vld [vmem:[%s9562_s4 + $0x78] sm:$0xff]   ;;  %v3107_v11 = vpop.permute.xlu0 %3106 }
 0x2c7   :  { %6270 = vmatprep.subr.bf16.mxu1 %v6567_v9  ;;  %v3237_v55 = vsel %vm3217_vm15, %v8929_v44, %v3107_v11 }
 0x2c8   :  { %v3274_v50 = vsel %vm3254_vm2, %v3237_v55, %v3200_v47  ;;  %v3846_v17 = vpop.permute.xlu1 %3845 }
 0x2ca   :  { %6271 = vmatpush3.bf16.msra.mxu1 %v6567_v9 }
 0x2cb   :  { %6272 = vmatprep.subr.bf16.mxu1 %v6568_v40 }
 0x2cc   :  { %v3836_v44 = vpop.permute.xlu0 %3835 }
 0x2cd   :  { %6237 = vmatmul.mubr.msk.bf16.gmra.mrb[4].mxu1 %vm3385_vm8, %v9665_v28 }
 0x2ce   :  { %6240 = vmatprep.mubr.msk.bf16.mxu1 %vm3385_vm8, %v9666_v48  ;;  %6273 = vmatpush3.bf16.msra.mxu1 %v6568_v40 }
 0x2cf   :  { %6274 = vmatprep.subr.bf16.mxu1 %v6569_v14 }
 0x2d2   :  { %6275 = vmatpush3.bf16.msra.mxu1 %v6569_v14 }
 0x2d3   :  { %6276 = vmatprep.subr.bf16.mxu1 %v6570_v25 }
 0x2d5   :  { %6241 = vmatmul.mubr.msk.bf16.gmra.mrb[8].mxu1 %vm3385_vm8, %v9667_v8 }
 0x2d6   :  { %6244 = vmatprep.mubr.msk.bf16.mxu1 %vm3385_vm8, %v9668_v15  ;;  %6277 = vmatpush3.bf16.msra.mxu1 %v6570_v25 }
 0x2d7   :  { %6470 = vmatprep.subr.msk.bf16.mxu1 %vm2580_vm5, %v6571_v26 }
 0x2da   :  { %6279 = vmatpush3.bf16.msra.mxu1 %v3907_v52 }
 0x2db   :  { %6316 = vmatprep.subr.bf16.mxu1 %v6654_v51 }
 0x2dd   :  { %6245 = vmatmul.mubr.msk.bf16.gmra.mrb[12].mxu1 %vm3385_vm8, %v8562_v46 }
 0x2de   :  { %6248 = vmatprep.mubr.msk.bf16.mxu1 %vm3385_vm8, %v8629_v63 }
 0x2e5   :  { %6249 = vmatmul.mubr.msk.bf16.gmra.mrb[16].mxu1 %vm3385_vm8, %v3274_v50 }
 0x2e6   :  { %6252 = vmatprep.mubr.msk.bf16.mxu1 %vm3385_vm8, %v8976_v38  ;;  %v3850_v38 = vsel %vm3217_vm15, %v8965_v39, %v3836_v44 }
 0x2e7   :  { %v3854_v12 = vsel %vm3254_vm2, %v3850_v38, %v3846_v17 }
 0x2ed   :  { %6253 = vmatmul.mubr.msk.bf16.gmra.mrb[20].mxu1 %vm3385_vm8, %v9005_v21 }
 0x2ee   :  { %6256 = vmatprep.mubr.msk.bf16.mxu1 %vm3385_vm8, %v9012_v13 }
 0x2f5   :  { %6257 = vmatmul.mubr.msk.bf16.gmra.mrb[24].mxu1 %vm3385_vm8, %v9019_v27 }
 0x2f6   :  { %6260 = vmatprep.mubr.msk.bf16.mxu1 %vm3385_vm8, %v9026_v35 }
 0x2fd   :  { %6261 = vmatmul.mubr.msk.bf16.gmra.mrb[28].mxu1 %vm3385_vm8, %v9033_v42 }
 0x2fe   :  { %6264 = vmatprep.mubr.msk.bf16.mxu1 %vm3385_vm8, %v9040_v45 }
 0x305   :  { %6265 = vmatmul.mubr.msk.bf16.gmra.mrb[32].mxu1 %vm3385_vm8, %v9047_v3 }
 0x306   :  { %6280 = vmatprep.mubr.msk.bf16.mxu1 %vm3385_vm8, %v9664_v1 }
 0x30d   :  { %6281 = vmatmul.mubr.msk.bf16.vlgmr.msra.gmra.mrb[0].mxu1 %vm3385_vm8, %v9665_v28 }
 0x30e   :  { %6284 = vmatprep.mubr.msk.bf16.mxu1 %vm3385_vm8, %v9666_v48  ;;  %6317 = vmatpush3.bf16.msra.mxu1 %v6572_v56 }
 0x30f   :  { %6318 = vmatprep.subr.bf16.mxu1 %v6654_v51 }
 0x312   :  { %6319 = vmatpush3.bf16.msra.mxu1 %v6573_v43 }
 0x313   :  { %6320 = vmatprep.subr.bf16.mxu1 %v6654_v51 }
 0x315   :  { %6285 = vmatmul.mubr.msk.bf16.gmra.mrb[4].mxu1 %vm3385_vm8, %v9667_v8 }
 0x316   :  { %6288 = vmatprep.mubr.msk.bf16.mxu1 %vm3385_vm8, %v9668_v15 }
 0x31d   :  { %6289 = vmatmul.mubr.msk.bf16.gmra.mrb[8].mxu1 %vm3385_vm8, %v8562_v46  ;;  %v3838_v46 = vpop.permute.xlu0 %3837 }
 0x31e   :  { %6292 = vmatprep.mubr.msk.bf16.mxu1 %vm3385_vm8, %v8629_v63  ;;  %v3852_v63 = vsel %vm3217_vm15, %v8987_v20, %v3838_v46  ;;  %v6574_v20 = vld [vmem:[%s9564_s6 + $0x40] sm:$0xff]   ;;  %vm6655_vm15 = vmmov 0  }
 0x31f   :  { %6321 = vmatpush3.bf16.msra.mxu1 %v6574_v20 }
 0x320   :  { %6322 = vmatprep.subr.bf16.mxu1 %v6654_v51 }
 0x325   :  { %6293 = vmatmul.mubr.msk.bf16.gmra.mrb[12].mxu1 %vm3385_vm8, %v8698_v54  ;;  %v3848_v54 = vpop.permute.xlu1 %3847 }
 0x326   :  { %6296 = vmatprep.mubr.msk.bf16.mxu1 %vm3385_vm8, %v3854_v12  ;;  %v3856_v39 = vsel %vm3254_vm2, %v3852_v63, %v3848_v54 }
 0x32d   :  { %6297 = vmatmul.mubr.msk.bf16.gmra.mrb[16].mxu1 %vm3385_vm8, %v9005_v21 }
 0x32e   :  { %6300 = vmatprep.mubr.msk.bf16.mxu1 %vm3385_vm8, %v9012_v13 }
 0x335   :  { %6301 = vmatmul.mubr.msk.bf16.gmra.mrb[20].mxu1 %vm3385_vm8, %v9019_v27 }
 0x336   :  { %6304 = vmatprep.mubr.msk.bf16.mxu1 %vm3385_vm8, %v9026_v35 }
 0x33d   :  { %6305 = vmatmul.mubr.msk.bf16.gmra.mrb[24].mxu1 %vm3385_vm8, %v9033_v42 }
 0x33e   :  { %6308 = vmatprep.mubr.msk.bf16.mxu1 %vm3385_vm8, %v9040_v45 }
 0x345   :  { %6309 = vmatmul.mubr.msk.bf16.gmra.mrb[28].mxu1 %vm3385_vm8, %v9047_v3 }
 0x346   :  { %6312 = vmatprep.mubr.msk.bf16.mxu1 %vm3385_vm8, %v9054_v34 }
 0x34d   :  { %6313 = vmatmul.mubr.msk.bf16.gmra.mrb[32].mxu1 %vm3385_vm8, %v3856_v39 }
 0x34e   :  { %6328 = vmatprep.mubr.msk.bf16.mxu1 %vm6655_vm15, %v6654_v51 }
 0x3e0   :  { %v6282_v21 = vpop.f32.mrb[0].mxu1 }
 0x3e1   :  { %v4131_v10 = vadd.f32 %v6282_v21, %v9172_v37  ;;  %v3943_v6 = vpop.f32.mrb[1].mxu1 }
 0x3e2   :  { %v4129_v61 = vadd.f32 %v9172_v37, %v3943_v6  ;;  %v6283_v41 = vpop.f32.mrb[2].mxu1 }
 0x3e3   :  { %v4132_v13 = vadd.f32 %v6283_v41, %v9172_v37  ;;  %v3946_v59 = vpop.f32.mrb[3].mxu1 }
 0x3e4   :  { %v4165_v2 = vmax.f32 %v4129_v61, %v4131_v10  ;;  %v4130_v22 = vadd.f32 %v9172_v37, %v3946_v59 }
 0x3e6   :  { %v4166_v57 = vmax.f32 %v4130_v22, %v4132_v13 }
 0x3e8   :  { %v6286_v27 = vpop.f32.mrb[4].mxu1 }
 0x3e9   :  { %v4135_v5 = vadd.f32 %v6286_v27, %v9172_v37  ;;  %v3959_v36 = vpop.f32.mrb[5].mxu1 }
 0x3ea   :  { %v4133_v16 = vadd.f32 %v9172_v37, %v3959_v36  ;;  %v6287_v35 = vpop.f32.mrb[6].mxu1 }
 0x3eb   :  { %v4136_v24 = vadd.f32 %v6287_v35, %v9172_v37  ;;  %v3962_v18 = vpop.f32.mrb[7].mxu1 }
 0x3ec   :  { %v4167_v7 = vmax.f32 %v4133_v16, %v4135_v5  ;;  %v4181_v42 = vmax.f32 %v4165_v2, %v4133_v16  ;;  %v4134_v29 = vadd.f32 %v9172_v37, %v3962_v18 }
 0x3ee   :  { %v4168_v4 = vmax.f32 %v4134_v29, %v4136_v24  ;;  %v4182_v19 = vmax.f32 %v4166_v57, %v4134_v29  ;;  %v4213_v45 = vrot.slane %v4181_v42, 1  ;;  %v4253_v53 = vrot.slane %v4181_v42, 2 }
 0x3f0   :  { %v4214_v60 = vrot.slane %v4182_v19, 1  ;;  %v4254_v31 = vrot.slane %v4182_v19, 2  ;;  %v6290_v3 = vpop.f32.mrb[8].mxu1 }
 0x3f1   :  { %v4139_v0 = vadd.f32 %v6290_v3, %v9172_v37  ;;  %v3975_v33 = vpop.f32.mrb[9].mxu1  ;;  %v6576_v3 = vld [vmem:[%s9564_s6 + $0x50] sm:$0xff]  }
 0x3f2   :  { %v4215_v49 = vsel %vm1610_vm3, %v4213_v45, %v4214_v60  ;;  %v4255_v34 = vsel %vm803_vm1, %v4253_v53, %v4254_v31  ;;  %v4137_v58 = vadd.f32 %v9172_v37, %v3975_v33  ;;  %v6291_v62 = vpop.f32.mrb[10].mxu1  ;;  %v6575_v45 = vld [vmem:[%s9564_s6 + $0x48] sm:$0xff]  }
 0x3f3   :  { %v4245_v23 = vmax.f32 %v4181_v42, %v4215_v49  ;;  %v4140_v30 = vadd.f32 %v6291_v62, %v9172_v37  ;;  %v3978_v9 = vpop.f32.mrb[11].mxu1  ;;  %v9202_v42 = vstv %s5448_s5  ;;  %6323 = vmatpush3.bf16.msra.mxu1 %v6575_v45 }
 0x3f4   :  { %v4169_v32 = vmax.f32 %v4137_v58, %v4139_v0  ;;  %v4183_v1 = vmax.f32 %v4167_v7, %v4137_v58  ;;  %v4138_v40 = vadd.f32 %v9172_v37, %v3978_v9  ;;  %6324 = vmatprep.subr.bf16.mxu1 %v6654_v51 }
 0x3f5   :  { %v9188_v14 = vmax.f32 %v4245_v23, %v4255_v34 }
 0x3f6   :  { %v4170_v28 = vmax.f32 %v4138_v40, %v4140_v30  ;;  %v4184_v48 = vmax.f32 %v4168_v4, %v4138_v40  ;;  %v4216_v25 = vrot.slane %v4183_v1, 1  ;;  %v4256_v26 = vrot.slane %v4183_v1, 2 }
 0x3f7   :  { %v4301_v0 = vrot.slane %v9188_v14, 1  ;;  %6325 = vmatpush3.bf16.msra.mxu1 %v6576_v3 }
 0x3f8   :  { %v4217_v8 = vrot.slane %v4184_v48, 1  ;;  %v4257_v15 = vrot.slane %v4184_v48, 2  ;;  %v6294_v52 = vpop.f32.mrb[12].mxu1  ;;  %6326 = vmatprep.subr.bf16.mxu1 %v6654_v51 }
 0x3f9   :  { %v4143_v11 = vadd.f32 %v6294_v52, %v9172_v37  ;;  %v3991_v55 = vpop.f32.mrb[13].mxu1 }
 0x3fa   :  { %v4218_v47 = vsel %vm1610_vm3, %v4216_v25, %v4217_v8  ;;  %v4258_v50 = vsel %vm803_vm1, %v4256_v26, %v4257_v15  ;;  %v4141_v44 = vadd.f32 %v9172_v37, %v3991_v55  ;;  %v6295_v38 = vpop.f32.mrb[14].mxu1 }
 0x3fb   :  { %v4246_v17 = vmax.f32 %v4183_v1, %v4218_v47  ;;  %v4144_v12 = vadd.f32 %v6295_v38, %v9172_v37  ;;  %v3994_v46 = vpop.f32.mrb[15].mxu1 }
 0x3fc   :  { %v4171_v63 = vmax.f32 %v4141_v44, %v4143_v11  ;;  %v4185_v54 = vmax.f32 %v4169_v32, %v4141_v44  ;;  %v4142_v39 = vadd.f32 %v9172_v37, %v3994_v46 }
 0x3fd   :  { %v4286_v56 = vmax.f32 %v4246_v17, %v4258_v50 }
 0x3fe   :  { %v4172_v43 = vmax.f32 %v4142_v39, %v4144_v12  ;;  %v4186_v20 = vmax.f32 %v4170_v28, %v4142_v39  ;;  %v4219_v6 = vrot.slane %v4185_v54, 1  ;;  %v4259_v61 = vrot.slane %v4185_v54, 2 }
 0x3ff   :  { %v4302_v21 = vrot.slane %v4286_v56, 1  ;;  %v4318_v10 = vrot.slane %v4286_v56, 2  ;;  %v4334_v22 = vrot.slane %v4286_v56, 3 }
 0x400   :  { %v4220_v41 = vrot.slane %v4186_v20, 1  ;;  %v4260_v13 = vrot.slane %v4186_v20, 2  ;;  %v6298_v59 = vpop.f32.mrb[16].mxu1 }
 0x401   :  { %v4007_v2 = vpop.f32.mrb[17].mxu1  ;;  %v4350_v57 = vsel %vm2557_vm4, %v4286_v56, %v4302_v21  ;;  %v4147_v32 = vadd.f32 %v6298_v59, %v9172_v37  ;;  %v6577_v56 = vld [vmem:[%s9564_s6 + $0x58] sm:$0xff]  }
 0x402   :  { %v4221_v27 = vsel %vm1610_vm3, %v4219_v6, %v4220_v41  ;;  %v4261_v5 = vsel %vm803_vm1, %v4259_v61, %v4260_v13  ;;  %v4145_v36 = vadd.f32 %v9172_v37, %v4007_v2  ;;  %v6299_v16 = vpop.f32.mrb[18].mxu1  ;;  %v4358_v35 = vsel %vm2580_vm5, %v4350_v57, %v4318_v10  ;;  %6327 = vmatpush3.bf16.msra.mxu1 %v6577_v56 }
 0x403   :  { %v4247_v24 = vmax.f32 %v4185_v54, %v4221_v27  ;;  %v4010_v18 = vpop.f32.mrb[19].mxu1  ;;  %v4366_v7 = vsel %vm2603_vm6, %v4358_v35, %v4334_v22  ;;  %v4148_v1 = vadd.f32 %v6299_v16, %v9172_v37  ;;  %v4317_v13 = vrot.slane %v9188_v14, 2  ;;  %6340 = vmatprep.subr.bf16.mxu1 %v6654_v51 }
 0x404   :  { %v4187_v29 = vmax.f32 %v4171_v63, %v4145_v36  ;;  %v4146_v4 = vadd.f32 %v9172_v37, %v4010_v18  ;;  %vm4374_vm11 = vcmp.ge.f32.partialorder %v4366_v7, 0.0  ;;  %v4383_v19 = vmul.f32 %v9202_v42, %v4366_v7 }
 0x405   :  { %v4287_v53 = vmax.f32 %v4247_v24, %v4261_v5  ;;  %v4349_v57 = vsel %vm2557_vm4, %v9188_v14, %v4301_v0 }
 0x406   :  { %v4188_v60 = vmax.f32 %v4172_v43, %v4146_v4  ;;  %v4391_v31 = vsel %vm4374_vm11, %v4366_v7, %v4383_v19  ;;  %v4222_v58 = vrot.slane %v4187_v29, 1  ;;  %v4262_v62 = vrot.slane %v4187_v29, 2 }
 0x407   :  { %v4303_v33 = vrot.slane %v4287_v53, 1  ;;  %v4319_v49 = vrot.slane %v4287_v53, 2  ;;  %v4399_v34 = vpack.c.bf16 %v4391_v31, %v4391_v31  ;;  %v4335_v52 = vrot.slane %v4287_v53, 3 }
 0x408   :  { %v4223_v23 = vrot.slane %v4188_v60, 1  ;;  %v4263_v30 = vrot.slane %v4188_v60, 2  ;;  %v6302_v9 = vpop.f32.mrb[20].mxu1 }
 0x409   :  { %v4023_v40 = vpop.f32.mrb[21].mxu1  ;;  %v9217_v28 = vsel %vm2580_vm5, %v4399_v34, 0  ;;  %v4351_v48 = vsel %vm2557_vm4, %v4287_v53, %v4303_v33  ;;  %v4151_v55 = vadd.f32 %v6302_v9, %v9172_v37 }
 0x40a   :  { %v4224_v25 = vsel %vm1610_vm3, %v4222_v58, %v4223_v23  ;;  %v4264_v26 = vsel %vm803_vm1, %v4262_v62, %v4263_v30  ;;  %v4149_v8 = vadd.f32 %v9172_v37, %v4023_v40  ;;  %v6303_v15 = vpop.f32.mrb[22].mxu1  ;;  %v4430_v50 = vshll.u32 %v9217_v28, 16 }
 0x40b   :  { %v4248_v11 = vmax.f32 %v4187_v29, %v4224_v25  ;;  %v4026_v47 = vpop.f32.mrb[23].mxu1  ;;  %v4359_v44 = vsel %vm2580_vm5, %v4351_v48, %v4319_v49  ;;  %v4428_v12 = vshrl.u32 %v9217_v28, 16  ;;  %v4152_v20 = vadd.f32 %v6303_v15, %v9172_v37 }
 0x40c   :  { %v4173_v38 = vmax.f32 %v4147_v32, %v4149_v8  ;;  %v4150_v17 = vadd.f32 %v9172_v37, %v4026_v47  ;;  %v4367_v46 = vsel %vm2603_vm6, %v4359_v44, %v4335_v52  ;;  %v4432_v54 = vrot.slane %v4430_v50, 1 }
 0x40d   :  { %v4288_v63 = vmax.f32 %v4248_v11, %v4264_v26  ;;  %vm4375_vm12 = vcmp.ge.f32.partialorder %v4367_v46, 0.0  ;;  %v4384_v39 = vmul.f32 %v9202_v42, %v4367_v46  ;;  %v4357_v11 = vsel %vm2580_vm5, %v4349_v57, %v4317_v13 }
 0x40e   :  { %v4189_v43 = vmax.f32 %v4173_v38, %v4151_v55  ;;  %v4174_v21 = vmax.f32 %v4148_v1, %v4150_v17  ;;  %v4433_v61 = vor.u32 %v4432_v54, %v4428_v12 }
 0x40f   :  { %v4304_v10 = vrot.slane %v4288_v63, 1  ;;  %v4320_v6 = vrot.slane %v4288_v63, 2  ;;  %v4392_v41 = vsel %vm4375_vm12, %v4367_v46, %v4384_v39  ;;  %v4336_v60 = vrot.slane %v4288_v63, 3 }
 0x410   :  { %v4190_v59 = vmax.f32 %v4174_v21, %v4152_v20  ;;  %v6306_v2 = vpop.f32.mrb[24].mxu1  ;;  %v4400_v22 = vpack.c.bf16 %v4392_v41, %v4392_v41  ;;  %v4225_v27 = vrot.slane %v4189_v43, 1  ;;  %v4265_v5 = vrot.slane %v4189_v43, 2  ;;  %4460 = vrot.lane.b32.xlu0 %v4433_v61, %s6656_s21 }
 0x411   :  { %v4155_v36 = vadd.f32 %v6306_v2, %v9172_v37  ;;  %v4039_v16 = vpop.f32.mrb[25].mxu1  ;;  %v4352_v35 = vsel %vm2557_vm4, %v4288_v63, %v4304_v10  ;;  %v4333_v63 = vrot.slane %v9188_v14, 3 }
 0x412   :  { %v4226_v24 = vrot.slane %v4190_v59, 1  ;;  %v4266_v18 = vrot.slane %v4190_v59, 2  ;;  %v4153_v7 = vadd.f32 %v9172_v37, %v4039_v16  ;;  %v6307_v29 = vpop.f32.mrb[26].mxu1  ;;  %v9246_v4 = vsel %vm2580_vm5, %v4400_v22, 0 }
 0x413   :  { %v4156_v19 = vadd.f32 %v6307_v29, %v9172_v37  ;;  %v4042_v45 = vpop.f32.mrb[27].mxu1  ;;  %v4436_v53 = vshll.u32 %v9246_v4, 16  ;;  %v4360_v31 = vsel %vm2580_vm5, %v4352_v35, %v4320_v6  ;;  %v4434_v58 = vshrl.u32 %v9246_v4, 16 }
 0x414   :  { %v4227_v3 = vsel %vm1610_vm3, %v4225_v27, %v4226_v24  ;;  %v4267_v0 = vsel %vm803_vm1, %v4265_v5, %v4266_v18  ;;  %v4175_v33 = vmax.f32 %v4151_v55, %v4153_v7  ;;  %v4154_v49 = vadd.f32 %v9172_v37, %v4042_v45 }
 0x415   :  { %v4249_v34 = vmax.f32 %v4189_v43, %v4227_v3  ;;  %v4438_v62 = vrot.slane %v4436_v53, 1  ;;  %v4368_v23 = vsel %vm2603_vm6, %v4360_v31, %v4336_v60  ;;  %v4365_v10 = vsel %vm2603_vm6, %v4357_v11, %v4333_v63 }
 0x416   :  { %v4191_v30 = vmax.f32 %v4175_v33, %v4155_v36  ;;  %v4176_v9 = vmax.f32 %v4152_v20, %v4154_v49  ;;  %vm4376_vm2 = vcmp.ge.f32.partialorder %v4368_v23, 0.0  ;;  %v4385_v32 = vmul.f32 %v9202_v42, %v4368_v23 }
 0x417   :  { %v9257_v1 = vmax.f32 %v4249_v34, %v4267_v0  ;;  %v4439_v40 = vor.u32 %v4438_v62, %v4434_v58  ;;  %v4382_v27 = vmul.f32 %v9202_v42, %v4365_v10  ;;  %vm4373_vm8 = vcmp.ge.f32.partialorder %v4365_v10, 0.0 }
 0x418   :  { %v4192_v48 = vmax.f32 %v4176_v9, %v4156_v19  ;;  %v6310_v25 = vpop.f32.mrb[28].mxu1  ;;  %v4393_v26 = vsel %vm4376_vm2, %v4368_v23, %v4385_v32  ;;  %v4228_v8 = vrot.slane %v4191_v30, 1  ;;  %v4268_v55 = vrot.slane %v4191_v30, 2 }
 0x419   :  { %4462 = vrot.lane.b32.xlu1 %v4439_v40, %s6656_s21  ;;  %v4055_v15 = vpop.f32.mrb[29].mxu1  ;;  %v4401_v52 = vpack.c.bf16 %v4393_v26, %v4393_v26  ;;  %v4159_v17 = vadd.f32 %v6310_v25, %v9172_v37  ;;  %v4305_v2 = vrot.slane %v9257_v1, 1  ;;  %v4321_v0 = vrot.slane %v9257_v1, 2 }
 0x41a   :  { %v4229_v47 = vrot.slane %v4192_v48, 1  ;;  %v4269_v50 = vrot.slane %v4192_v48, 2  ;;  %v4157_v44 = vadd.f32 %v9172_v37, %v4055_v15  ;;  %v6311_v38 = vpop.f32.mrb[30].mxu1  ;;  %v4390_v15 = vsel %vm4373_vm8, %v4365_v10, %v4382_v27 }
 0x41b   :  { %v4058_v12 = vpop.f32.mrb[31].mxu1  ;;  %v9264_v46 = vsel %vm2580_vm5, %v4401_v52, 0  ;;  %v4160_v61 = vadd.f32 %v6311_v38, %v9172_v37  ;;  %v4337_v52 = vrot.slane %v9257_v1, 3  ;;  %vm4880_vm2 = vcmask 523264  }
 0x41c   :  { %v4230_v54 = vsel %vm1610_vm3, %v4228_v8, %v4229_v47  ;;  %v4270_v39 = vsel %vm803_vm1, %v4268_v55, %v4269_v50  ;;  %v4177_v56 = vmax.f32 %v4155_v36, %v4157_v44  ;;  %v4158_v43 = vadd.f32 %v9172_v37, %v4058_v12 }
 0x41d   :  { %v4250_v20 = vmax.f32 %v4191_v30, %v4230_v54  ;;  %v4497_v21 = vshll.u32 %v9264_v46, 16  ;;  %v4495_v59 = vshrl.u32 %v9264_v46, 16  ;;  %v4353_v30 = vsel %vm2557_vm4, %v9257_v1, %v4305_v2 }
 0x41e   :  { %v4193_v6 = vmax.f32 %v4177_v56, %v4159_v17  ;;  %v4178_v41 = vmax.f32 %v4156_v19, %v4158_v43  ;;  %v4361_v11 = vsel %vm2580_vm5, %v4353_v30, %v4321_v0 }
 0x41f   :  { %v4290_v13 = vmax.f32 %v4250_v20, %v4270_v39  ;;  %v4499_v14 = vrot.slane %v4497_v21, 1  ;;  %v4398_v39 = vpack.c.bf16 %v4390_v15, %v4390_v15  ;;  %v4369_v56 = vsel %vm2603_vm6, %v4361_v11, %v4337_v52  ;;  %v6584_v52 = vld [vmem:[%s9566_s8 + $0x40] sm:$0xff]  }
 0x420   :  { %v4194_v22 = vmax.f32 %v4178_v41, %v4160_v61  ;;  %v6314_v57 = vpop.f32.mrb[32].mxu1  ;;  %v4231_v36 = vrot.slane %v4193_v6, 1  ;;  %v4271_v18 = vrot.slane %v4193_v6, 2  ;;  %v6585_v11 = vld [vmem:[%s9566_s8] sm:$0xff]   ;;  %5966 = vmatprep.subr.bf16.mxu0 %v6584_v52 }
 0x421   :  { %v4306_v5 = vrot.slane %v4290_v13, 1  ;;  %v4500_v16 = vor.u32 %v4499_v14, %v4495_v59  ;;  %v4071_v35 = vpop.f32.mrb[33].mxu1  ;;  %v4322_v24 = vrot.slane %v4290_v13, 2  ;;  %v4163_v53 = vadd.f32 %v6314_v57, %v9172_v37  ;;  %5967 = vmatpush3.bf16.msra.mxu0 %v6585_v11 }
 0x422   :  { %v4232_v7 = vrot.slane %v4194_v22, 1  ;;  %v4272_v29 = vrot.slane %v4194_v22, 2  ;;  %v4161_v19 = vadd.f32 %v9172_v37, %v4071_v35  ;;  %v6315_v45 = vpop.f32.mrb[34].mxu1  ;;  %v4338_v31 = vrot.slane %v4290_v13, 3 }
 0x423   :  { %4507 = vrot.lane.b32.xlu1 %v4500_v16, %s6656_s21  ;;  %v4074_v60 = vpop.f32.mrb[35].mxu1  ;;  %v4354_v3 = vsel %vm2557_vm4, %v4290_v13, %v4306_v5  ;;  %v4164_v32 = vadd.f32 %v6315_v45, %v9172_v37  ;;  %v4386_v13 = vmul.f32 %v9202_v42, %v4369_v56  ;;  %v9306_v57 = vsel %vm2580_vm5, %v4398_v39, 0  ;;  %v6579_v39 = vld [vmem:[%s9564_s6 + $0x8] sm:$0xff]  }
 0x424   :  { %v4233_v33 = vsel %vm1610_vm3, %v4231_v36, %v4232_v7  ;;  %v4273_v49 = vsel %vm803_vm1, %v4271_v18, %v4272_v29  ;;  %v4179_v34 = vmax.f32 %v4159_v17, %v4161_v19  ;;  %v4162_v58 = vadd.f32 %v9172_v37, %v4074_v60 }
 0x425   :  { %v4251_v62 = vmax.f32 %v4193_v6, %v4233_v33  ;;  %v4362_v23 = vsel %vm2580_vm5, %v4354_v3, %v4322_v24  ;;  %v4424_v19 = vshll.u32 %v9306_v57, 16 }
 0x426   :  { %v4195_v9 = vmax.f32 %v4179_v34, %v4163_v53  ;;  %v4180_v40 = vmax.f32 %v4160_v61, %v4162_v58  ;;  %v4370_v48 = vsel %vm2603_vm6, %v4362_v23, %v4338_v31  ;;  %v4422_v23 = vshrl.u32 %v9306_v57, 16 }
 0x427   :  { %v4291_v25 = vmax.f32 %v4251_v62, %v4273_v49  ;;  %vm4378_vm9 = vcmp.ge.f32.partialorder %v4370_v48, 0.0  ;;  %v4387_v26 = vmul.f32 %v9202_v42, %v4370_v48  ;;  %v4426_v49 = vrot.slane %v4424_v19, 1  ;;  %v6596_v19 = vld [vmem:[%s9566_s8 + $0x70] sm:$0xff]  }
 0x428   :  { %v4196_v8 = vmax.f32 %v4180_v40, %v4164_v32  ;;  %v4234_v47 = vrot.slane %v4195_v9, 1  ;;  %v4274_v38 = vrot.slane %v4195_v9, 2 }
 0x429   :  { %v4307_v55 = vrot.slane %v4291_v25, 1  ;;  %v4395_v50 = vsel %vm4378_vm9, %v4370_v48, %v4387_v26  ;;  %v4323_v44 = vrot.slane %v4291_v25, 2  ;;  %v4339_v63 = vrot.slane %v4291_v25, 3 }
 0x42a   :  { %v4235_v17 = vrot.slane %v4196_v8, 1  ;;  %v4275_v37 = vrot.slane %v4196_v8, 2  ;;  %v4403_v12 = vpack.c.bf16 %v4395_v50, %v4395_v50  ;;  %v6588_v50 = vld [vmem:[%s9566_s8 + $0x50] sm:$0xff]   ;;  %vm5441_vm9 = vcmask 58368  }
 0x42b   :  { %v4355_v54 = vsel %vm2557_vm4, %v4291_v25, %v4307_v55  ;;  %v6586_v55 = vld [vmem:[%s9566_s8 + $0x48] sm:$0xff]  }
 0x42c   :  { %v4236_v43 = vsel %vm1610_vm3, %v4234_v47, %v4235_v17  ;;  %v4276_v1 = vsel %vm803_vm1, %v4274_v38, %v4275_v37  ;;  %v9297_v20 = vsel %vm2580_vm5, %v4403_v12, 0  ;;  %v4363_v21 = vsel %vm2580_vm5, %v4355_v54, %v4323_v44  ;;  %v6587_v47 = vld [vmem:[%s9566_s8 + $0x8] sm:$0xff]   ;;  %5968 = vmatprep.subr.bf16.mxu0 %v6586_v55  ;;  %v6589_v44 = vld [vmem:[%s9566_s8 + $0x10] sm:$0xff]  }
 0x42d   :  { %v4252_v10 = vmax.f32 %v4195_v9, %v4236_v43  ;;  %v4448_v6 = vshll.u32 %v9297_v20, 16  ;;  %v4371_v61 = vsel %vm2603_vm6, %v4363_v21, %v4339_v63  ;;  %v4446_v14 = vshrl.u32 %v9297_v20, 16  ;;  %5969 = vmatpush3.bf16.msra.mxu0 %v6587_v47  ;;  %v6578_v63 = vld [vmem:[%s9564_s6] sm:$0xff]   ;;  %v6583_v43 = vld [vmem:[%s9564_s6 + $0x28] sm:$0xff]  }
 0x42e   :  { %vm4379_vm10 = vcmp.ge.f32.partialorder %v4371_v61, 0.0  ;;  %v4388_v41 = vmul.f32 %v9202_v42, %v4371_v61  ;;  %vm4377_vm1 = vcmp.ge.f32.partialorder %v4369_v56, 0.0  ;;  %v4427_v9 = vor.u32 %v4426_v49, %v4422_v23  ;;  %5970 = vmatprep.subr.bf16.mxu0 %v6588_v50  ;;  %v6599_v49 = vld [vmem:[%s9566_s8 + $0x38] sm:$0xff]   ;;  %v6608_v23 = vld [vmem:[%s9566_s8 + $0xe0] sm:$0xff]  }
 0x42f   :  { %v4292_v59 = vmax.f32 %v4252_v10, %v4276_v1  ;;  %v4450_v2 = vrot.slane %v4448_v6, 1  ;;  %v4394_v35 = vsel %vm4377_vm1, %v4369_v56, %v4386_v13  ;;  %v6582_v56 = vld [vmem:[%s9564_s6 + $0x20] sm:$0xff]  }
 0x430   :  { %v4396_v22 = vsel %vm4379_vm10, %v4371_v61, %v4388_v41  ;;  %v4402_v60 = vpack.c.bf16 %v4394_v35, %v4394_v35  ;;  %v6591_v35 = vld [vmem:[%s9566_s8 + $0x18] sm:$0xff]   ;;  %v5729_v50 = vld [vmem:[%s9565_s7] ss:$0 sm:$0xff] }
 0x431   :  { %v4308_v27 = vrot.slane %v4292_v59, 1  ;;  %v4451_v5 = vor.u32 %v4450_v2, %v4446_v14  ;;  %v4404_v36 = vpack.c.bf16 %v4396_v22, %v4396_v22  ;;  %v4324_v16 = vrot.slane %v4292_v59, 2  ;;  %5971 = vmatpush3.bf16.msra.mxu0 %v6589_v44 }
 0x432   :  { %v4340_v18 = vrot.slane %v4292_v59, 3  ;;  %v9320_v62 = vsel %vm2580_vm5, %v4402_v60, 0  ;;  %v6602_v60 = vld [vmem:[%s9566_s8 + $0xc8] sm:$0xff]  }
 0x433   :  { %4466 = vrot.lane.b32.xlu0 %v4451_v5, %s6656_s21  ;;  %v9310_v24 = vsel %vm2580_vm5, %v4404_v36, 0  ;;  %v4356_v7 = vsel %vm2557_vm4, %v4292_v59, %v4308_v27  ;;  %v4442_v40 = vshll.u32 %v9320_v62, 16  ;;  %v4440_v8 = vshrl.u32 %v9320_v62, 16 }
 0x434   :  { %v4454_v29 = vshll.u32 %v9310_v24, 16  ;;  %v4364_v45 = vsel %vm2580_vm5, %v4356_v7, %v4324_v16  ;;  %v4452_v31 = vshrl.u32 %v9310_v24, 16  ;;  %vm4470_vm4 = vcmask 392192   ;;  %v6594_v7 = vld [vmem:[%s9566_s8 + $0x68] sm:$0xff]  }
 0x435   :  { %v4372_v53 = vsel %vm2603_vm6, %v4364_v45, %v4340_v18  ;;  %v4444_v26 = vrot.slane %v4442_v40, 1  ;;  %v6593_v18 = vld [vmem:[%s9566_s8 + $0x20] sm:$0xff]  }
 0x436   :  { %v4456_v3 = vrot.slane %v4454_v29, 1  ;;  %vm4380_vm3 = vcmp.ge.f32.partialorder %v4372_v53, 0.0  ;;  %v4389_v0 = vmul.f32 %v9202_v42, %v4372_v53  ;;  %v6595_v29 = vld [vmem:[%s9566_s8 + $0x28] sm:$0xff]   ;;  %v6600_v45 = vld [vmem:[%s9566_s8 + $0xc0] sm:$0xff]  }
 0x437   :  { %v4445_v15 = vor.u32 %v4444_v26, %v4440_v8 }
 0x438   :  { %v4457_v33 = vor.u32 %v4456_v3, %v4452_v31  ;;  %v4397_v34 = vsel %vm4380_vm3, %v4372_v53, %v4389_v0  ;;  %v6601_v53 = vld [vmem:[%s9566_s8 + $0x80] sm:$0xff]   ;;  %v6597_v31 = vld [vmem:[%s9566_s8 + $0x30] sm:$0xff]   ;;  %v6598_v3 = vld [vmem:[%s9566_s8 + $0x78] sm:$0xff]  }
 0x439   :  { %v4405_v58 = vpack.c.bf16 %v4397_v34, %v4397_v34  ;;  %v6603_v0 = vld [vmem:[%s9566_s8 + $0x88] sm:$0xff]   ;;  %v6605_v34 = vld [vmem:[%s9566_s8 + $0x90] sm:$0xff]  }
 0x43a   :  { %4468 = vrot.lane.b32.xlu0 %v4457_v33, %s6656_s21  ;;  %v6604_v33 = vld [vmem:[%s9566_s8 + $0xd0] sm:$0xff]  }
 0x43b   :  { %v4421_v30 = vsel %vm2580_vm5, %v4405_v58, 0  ;;  %vm4579_vm5 = vcmask 785408   ;;  %v6606_v58 = vld [vmem:[%s9566_s8 + $0xd8] sm:$0xff]  }
 0x43c   :  { %v4503_v32 = vshll.u32 %v4421_v30, 16  ;;  %v4501_v42 = vshrl.u32 %v4421_v30, 16 }
 0x43e   :  { %4458 = vrot.lane.b32.xlu0 %v4427_v9, %s6656_s21  ;;  %v4505_v48 = vrot.slane %v4503_v32, 1 }
 0x440   :  { %v4506_v25 = vor.u32 %v4505_v48, %v4501_v42 }
 0x442   :  { %4509 = vrot.lane.b32.xlu1 %v4506_v25, %s6656_s21 }
 0x446   :  { %4464 = vrot.lane.b32.xlu1 %v4445_v15, %s6656_s21 }
 0x482   :  { %v4461_v38 = vpop.permute.xlu0 %4460 }
 0x483   :  { %v4474_v37 = vsel %vm4470_vm4, %v9217_v28, %v4461_v38  ;;  %v6580_v28 = vld [vmem:[%s9564_s6 + $0x10] sm:$0xff]  }
 0x48b   :  { %v4463_v17 = vpop.permute.xlu1 %4462 }
 0x48c   :  { %v4476_v12 = vsel %vm4470_vm4, %v9246_v4, %v4463_v17  ;;  %v6581_v4 = vld [vmem:[%s9564_s6 + $0x18] sm:$0xff]   ;;  %v4774_v17 = vstv %s5449_s23 }
 0x48d   :  { %v5705_v54 = vcombine.low %v4474_v37, %v4476_v12 }
 0x48f   :  { %6329 = vmatmul.mubr.msk.bf16.vlgmr.msra.gmra.mrb[36].mxu1 %vm4579_vm5, %v5705_v54 }
 0x490   :  { %6332 = vmatprep.mubr.msk.bf16.mxu1 %vm6655_vm15, %v6654_v51  ;;  %6341 = vmatpush3.bf16.msra.mxu1 %v6578_v63 }
 0x491   :  { %6342 = vmatprep.subr.bf16.mxu1 %v6654_v51 }
 0x494   :  { %6343 = vmatpush3.bf16.msra.mxu1 %v6579_v39 }
 0x495   :  { %6344 = vmatprep.subr.bf16.mxu1 %v6654_v51  ;;  %v4508_v1 = vpop.permute.xlu1 %4507 }
 0x496   :  { %v4512_v10 = vsel %vm4470_vm4, %v9264_v46, %v4508_v1 }
 0x498   :  { %6345 = vmatpush3.bf16.msra.mxu1 %v6580_v28 }
 0x499   :  { %6346 = vmatprep.subr.bf16.mxu1 %v6654_v51 }
 0x49c   :  { %6347 = vmatpush3.bf16.msra.mxu1 %v6581_v4 }
 0x49d   :  { %6348 = vmatprep.subr.bf16.mxu1 %v6654_v51 }
 0x4a0   :  { %6349 = vmatpush3.bf16.msra.mxu1 %v6582_v56 }
 0x4a1   :  { %6350 = vmatprep.subr.bf16.mxu1 %v6654_v51 }
 0x4a4   :  { %6351 = vmatpush3.bf16.msra.mxu1 %v6583_v43 }
 0x4a5   :  { %v4467_v21 = vpop.permute.xlu0 %4466  ;;  %5988 = vmatprep.subr.bf16.mxu1 %v6600_v45 }
 0x4a6   :  { %v4480_v6 = vsel %vm4470_vm4, %v9297_v20, %v4467_v21 }
 0x4a7   :  { %v5706_v61 = vcombine.low %v4512_v10, %v4480_v6 }
 0x4a9   :  { %6333 = vmatmul.mubr.msk.bf16.gmra.mrb[40].mxu1 %vm4579_vm5, %v5706_v61 }
 0x4aa   :  { %6336 = vmatprep.mubr.msk.bf16.mxu1 %vm6655_vm15, %v6654_v51 }
 0x4ac   :  { %v4469_v41 = vpop.permute.xlu0 %4468 }
 0x4ad   :  { %v4482_v59 = vsel %vm4470_vm4, %v9310_v24, %v4469_v41  ;;  %v6592_v24 = vld [vmem:[%s9566_s8 + $0x60] sm:$0xff]  }
 0x4ae   :  { %v5719_v16 = vcombine.low %v4480_v6, %v4482_v59 }
 0x4b0   :  { %v4459_v22 = vpop.permute.xlu0 %4458 }
 0x4b1   :  { %v4472_v46 = vsel %vm4470_vm4, %v9306_v57, %v4459_v22  ;;  %v6590_v57 = vld [vmem:[%s9566_s8 + $0x58] sm:$0xff]  }
 0x4b2   :  { %v5717_v20 = vcombine.low %v4472_v46, %v4474_v37  ;;  %5972 = vmatprep.subr.bf16.mxu0 %v6590_v57 }
 0x4b3   :  { %5973 = vmatpush3.bf16.msra.mxu0 %v6591_v35 }
 0x4b4   :  { %v4510_v13 = vpop.permute.xlu1 %4509  ;;  %5974 = vmatprep.subr.bf16.mxu0 %v6592_v24 }
 0x4b5   :  { %v4514_v14 = vsel %vm4470_vm4, %v4421_v30, %v4510_v13  ;;  %v6609_v30 = vld [vmem:[%s9566_s8 + $0xa0] sm:$0xff]  }
 0x4b6   :  { %v5707_v2 = vcombine.low %v4482_v59, %v4514_v14  ;;  %v6610_v59 = vld [vmem:[%s9566_s8 + $0xe8] sm:$0xff]  }
 0x4b7   :  { %5975 = vmatpush3.bf16.msra.mxu0 %v6593_v18  ;;  %v6611_v14 = vld [vmem:[%s9566_s8 + $0xa8] sm:$0xff]  }
 0x4b8   :  { %6337 = vmatmul.mubr.msk.bf16.gmra.mrb[44].mxu1 %vm4579_vm5, %v5707_v2  ;;  %v4465_v27 = vpop.permute.xlu1 %4464  ;;  %5976 = vmatprep.subr.bf16.mxu0 %v6594_v7  ;;  %v6612_v2 = vld [vmem:[%s9566_s8 + $0xf0] sm:$0xff]  }
 0x4b9   :  { %6352 = vmatprep.mubr.msk.bf16.mxu1 %vm6655_vm15, %v6654_v51  ;;  %v4478_v5 = vsel %vm4470_vm4, %v9320_v62, %v4465_v27  ;;  %v6607_v62 = vld [vmem:[%s9566_s8 + $0x98] sm:$0xff]  }
 0x4ba   :  { %v5718_v36 = vcombine.low %v4476_v12, %v4478_v5 }
 0x4bb   :  { %5977 = vmatpush3.bf16.msra.mxu0 %v6595_v29 }
 0x4bc   :  { %5978 = vmatprep.subr.bf16.mxu0 %v6596_v19 }
 0x4bf   :  { %5979 = vmatpush3.bf16.msra.mxu0 %v6597_v31 }
 0x4c0   :  { %6353 = vmatmul.mubr.msk.bf16.vlgmr.msra.gmra.mrb[48].mxu1 %vm4579_vm5, %v5717_v20  ;;  %5980 = vmatprep.subr.bf16.mxu0 %v6598_v3 }
 0x4c1   :  { %6356 = vmatprep.mubr.msk.bf16.mxu1 %vm6655_vm15, %v6654_v51  ;;  %5989 = vmatpush3.bf16.msra.mxu1 %v6601_v53 }
 0x4c2   :  { %5990 = vmatprep.subr.bf16.mxu1 %v6602_v60 }
 0x4c3   :  { %5981 = vmatpush3.bf16.msra.mxu0 %v6599_v49 }
 0x4c4   :  { %6364 = vmatprep.subr.bf16.mxu0 %v6654_v51 }
 0x4c5   :  { %5991 = vmatpush3.bf16.msra.mxu1 %v6603_v0 }
 0x4c6   :  { %5992 = vmatprep.subr.bf16.mxu1 %v6604_v33 }
 0x4c8   :  { %6357 = vmatmul.mubr.msk.bf16.gmra.mrb[52].mxu1 %vm4579_vm5, %v5718_v36  ;;  %v6613_v36 = vld [vmem:[%s9566_s8 + $0xb0] sm:$0xff]  }
 0x4c9   :  { %6360 = vmatprep.mubr.msk.bf16.mxu1 %vm6655_vm15, %v6654_v51  ;;  %5993 = vmatpush3.bf16.msra.mxu1 %v6605_v34 }
 0x4ca   :  { %5994 = vmatprep.subr.bf16.mxu1 %v6606_v58 }
 0x4cd   :  { %5995 = vmatpush3.bf16.msra.mxu1 %v6607_v62 }
 0x4ce   :  { %5996 = vmatprep.subr.bf16.mxu1 %v6608_v23 }
 0x4d0   :  { %6361 = vmatmul.mubr.msk.bf16.gmra.mrb[56].mxu1 %vm4579_vm5, %v5719_v16 }
 0x4d1   :  { %5997 = vmatpush3.bf16.msra.mxu1 %v6609_v30 }
 0x4d2   :  { %5998 = vmatprep.subr.bf16.mxu1 %v6610_v59 }
 0x4d5   :  { %5999 = vmatpush3.bf16.msra.mxu1 %v6611_v14  ;;  %v6615_v14 = vld [vmem:[%s9566_s8 + $0x100] sm:$0xff]  }
 0x4d6   :  { %6000 = vmatprep.subr.bf16.mxu1 %v6612_v2 }
 0x4d9   :  { %6001 = vmatpush3.bf16.msra.mxu1 %v6613_v36  ;;  %v6617_v36 = vld [vmem:[%s9566_s8 + $0x108] sm:$0xff]  }
 0x562   :  { %v4623_v9 = vpop.f32.mrb[36].mxu1 }
 0x563   :  { %v6330_v32 = vpop.f32.mrb[37].mxu1 }
 0x564   :  { %v4626_v40 = vpop.f32.mrb[38].mxu1  ;;  %v6614_v32 = vld [vmem:[%s9566_s8 + $0xf8] sm:$0xff]  }
 0x565   :  { %v6331_v42 = vpop.f32.mrb[39].mxu1  ;;  %6002 = vmatprep.subr.bf16.mxu1 %v6614_v32 }
 0x57c   :  { %v4631_v48 = vpop.f32.mrb[40].mxu1 }
 0x57d   :  { %v6334_v25 = vpop.f32.mrb[41].mxu1 }
 0x57e   :  { %v4634_v26 = vpop.f32.mrb[42].mxu1  ;;  %v6616_v25 = vld [vmem:[%s9566_s8 + $0xb8] sm:$0xff]  }
 0x57f   :  { %v6335_v8 = vpop.f32.mrb[43].mxu1  ;;  %6003 = vmatpush3.bf16.msra.mxu1 %v6616_v25 }
 0x580   :  { %6376 = vmatprep.subr.bf16.mxu1 %v6654_v51 }
 0x58b   :  { %v4639_v15 = vpop.f32.mrb[44].mxu1 }
 0x58c   :  { %v6338_v52 = vpop.f32.mrb[45].mxu1 }
 0x58d   :  { %v4642_v11 = vpop.f32.mrb[46].mxu1 }
 0x58e   :  { %v6339_v55 = vpop.f32.mrb[47].mxu1 }
 0x593   :  { %v4732_v47 = vpop.f32.mrb[48].mxu1 }
 0x594   :  { %v4733_v44 = vadd.f32 %v4732_v47, %v4623_v9  ;;  %v6354_v38 = vpop.f32.mrb[49].mxu1 }
 0x595   :  { %v4735_v37 = vpop.f32.mrb[50].mxu1 }
 0x596   :  { %v4762_v12 = vadd.f32 %v5729_v50, %v4733_v44  ;;  %v4736_v63 = vadd.f32 %v4735_v37, %v4626_v40  ;;  %v6355_v54 = vpop.f32.mrb[51].mxu1 }
 0x598   :  { %v4775_v39 = vmul.f32 %v4774_v17, %v4762_v12  ;;  %v4763_v28 = vadd.f32 %v5729_v50, %v4736_v63  ;;  %vm4768_vm6 = vcmp.ge.f32.partialorder %v4762_v12, 0.0 }
 0x59a   :  { %v4781_v56 = vsel %vm4768_vm6, %v4762_v12, %v4775_v39  ;;  %v4776_v43 = vmul.f32 %v4774_v17, %v4763_v28  ;;  %vm4769_vm13 = vcmp.ge.f32.partialorder %v4763_v28, 0.0 }
 0x59b   :  { %v4740_v4 = vpop.f32.mrb[52].mxu1  ;;  %v5796_v13 = vpack.c.bf16 %v4781_v56, %v4781_v56 }
 0x59c   :  { %v4741_v1 = vadd.f32 %v4740_v4, %v4631_v48  ;;  %v6358_v21 = vpop.f32.mrb[53].mxu1  ;;  %v4782_v22 = vsel %vm4769_vm13, %v4763_v28, %v4776_v43 }
 0x59d   :  { %v4743_v10 = vpop.f32.mrb[54].mxu1  ;;  %v4831_v16 = vunpack.c.l.b16 %v5796_v13  ;;  %v5798_v57 = vpack.c.bf16 %v4782_v22, %v4782_v22 }
 0x59e   :  { %v4764_v6 = vadd.f32 %v5729_v50, %v4741_v1  ;;  %v4744_v61 = vadd.f32 %v4743_v10, %v4634_v26  ;;  %v6359_v41 = vpop.f32.mrb[55].mxu1 }
 0x59f   :  { %v4848_v3 = vunpack.c.l.b16 %v5798_v57  ;;  %v4837_v33 = vrot.slane %v4831_v16, 1  ;;  %v4842_v30 = vrot.slane %v4831_v16, 2 }
 0x5a0   :  { %vm4770_vm14 = vcmp.ge.f32.partialorder %v4764_v6, 0.0  ;;  %v4777_v46 = vmul.f32 %v4774_v17, %v4764_v6  ;;  %v4765_v20 = vadd.f32 %v5729_v50, %v4744_v61 }
 0x5a1   :  { %v4855_v47 = vrot.slane %v4848_v3, 1 }
 0x5a2   :  { %v4783_v27 = vsel %vm4770_vm14, %v4764_v6, %v4777_v46  ;;  %vm4771_vm0 = vcmp.ge.f32.partialorder %v4765_v20, 0.0  ;;  %v4778_v5 = vmul.f32 %v4774_v17, %v4765_v20 }
 0x5a3   :  { %v4748_v35 = vpop.f32.mrb[56].mxu1  ;;  %v5800_v24 = vpack.c.bf16 %v4783_v27, %v4783_v27 }
 0x5a4   :  { %v4784_v18 = vsel %vm4771_vm0, %v4765_v20, %v4778_v5  ;;  %v4749_v7 = vadd.f32 %v4748_v35, %v4639_v15  ;;  %v6362_v29 = vpop.f32.mrb[57].mxu1 }
 0x5a5   :  { %v5797_v19 = vpack.c.bf16 %v4784_v18, %v4784_v18  ;;  %v4751_v45 = vpop.f32.mrb[58].mxu1  ;;  %v4866_v49 = vunpack.c.l.b16 %v5800_v24  ;;  %v6618_v24 = vld [vmem:[%s9566_s8 + $0x110] sm:$0xff]   ;;  %v6621_v18 = vld [vmem:[%s9568_s10 + $0x8] sm:$0xff]  }
 0x5a6   :  { %v4766_v53 = vadd.f32 %v5729_v50, %v4749_v7  ;;  %v4752_v60 = vadd.f32 %v4751_v45, %v4642_v11  ;;  %v6363_v31 = vpop.f32.mrb[59].mxu1  ;;  %v6619_v7 = vld [vmem:[%s9566_s8 + $0x118] sm:$0xff]  }
 0x5a7   :  { %v4832_v0 = vunpack.c.l.b16 %v5797_v19  ;;  %v4871_v44 = vrot.slane %v4866_v49, 1  ;;  %v4876_v1 = vrot.slane %v4866_v49, 2  ;;  %v6622_v19 = vld [vmem:[%s9568_s10 + $0x10] sm:$0xff]   ;;  %v6623_v45 = vld [vmem:[%s9568_s10 + $0x18] sm:$0xff]  }
 0x5a8   :  { %vm4772_vm11 = vcmp.ge.f32.partialorder %v4766_v53, 0.0  ;;  %v4779_v34 = vmul.f32 %v4774_v17, %v4766_v53  ;;  %v4767_v58 = vadd.f32 %v5729_v50, %v4752_v60  ;;  %v4858_v50 = vrot.slane %v4848_v3, 2  ;;  %v6625_v60 = vld [vmem:[%s9568_s10 + $0x28] sm:$0xff]   ;;  %v6626_v31 = vld [vmem:[%s9568_s10 + $0x30] sm:$0xff]  }
 0x5a9   :  { %v4838_v62 = vsel %vm4834_vm7, %v4832_v0, %v4837_v33  ;;  %v4833_v23 = vrot.slane %v4832_v0, 7  ;;  %v4843_v9 = vrot.slane %v4832_v0, 1 }
 0x5aa   :  { %v4785_v40 = vsel %vm4772_vm11, %v4766_v53, %v4779_v34  ;;  %vm4773_vm12 = vcmp.ge.f32.partialorder %v4767_v58, 0.0  ;;  %v4780_v42 = vmul.f32 %v4774_v17, %v4767_v58  ;;  %v4839_v48 = vpack.c.b16 %v4838_v62, %v4838_v62  ;;  %v6624_v53 = vld [vmem:[%s9568_s10 + $0x20] sm:$0xff]  }
 0x5ab   :  { %v5799_v26 = vpack.c.bf16 %v4785_v40, %v4785_v40  ;;  %v4835_v8 = vsel %vm4834_vm7, %v4833_v23, %v4831_v16  ;;  %v4844_v15 = vsel %vm4834_vm7, %v4843_v9, %v4842_v30  ;;  %v6620_v16 = vld [vmem:[%s9568_s10] sm:$0xff]  }
 0x5ac   :  { %v4786_v52 = vsel %vm4773_vm12, %v4767_v58, %v4780_v42  ;;  %4840 = vrot.lane.b32.xlu1 %v4839_v48, %s6657_s14  ;;  %v4845_v41 = vpack.c.b16 %v4844_v15, %v4844_v15  ;;  %v4836_v13 = vpack.c.b16 %v4835_v8, %v4835_v8  ;;  %v5742_v58 = vld [vmem:[%s9567_s9] ss:$0 sm:$0xff] }
 0x5ad   :  { %v4849_v11 = vunpack.c.l.b16 %v5799_v26  ;;  %v5801_v55 = vpack.c.bf16 %v4786_v52, %v4786_v52 }
 0x5af   :  { %v4867_v38 = vunpack.c.l.b16 %v5801_v55  ;;  %v4859_v17 = vrot.slane %v4849_v11, 1  ;;  %v4850_v37 = vrot.slane %v4849_v11, 7  ;;  %v4856_v12 = vsel %vm4834_vm7, %v4849_v11, %v4855_v47 }
 0x5b0   :  { %v4857_v27 = vpack.c.b16 %v4856_v12, %v4856_v12 }
 0x5b1   :  { %v4860_v63 = vsel %vm4834_vm7, %v4859_v17, %v4858_v50  ;;  %v4851_v54 = vsel %vm4834_vm7, %v4850_v37, %v4848_v3  ;;  %v4872_v39 = vsel %vm4834_vm7, %v4867_v38, %v4871_v44  ;;  %v4877_v28 = vrot.slane %v4867_v38, 1  ;;  %v6627_v3 = vld [vmem:[%s9568_s10 + $0x38] sm:$0xff]   ;;  %v5780_v50 = vld [vmem:[%s9569_s11] ss:$0 sm:$0xff] }
 0x5b2   :  { %v4861_v4 = vpack.c.b16 %v4860_v63, %v4860_v63  ;;  %v4852_v56 = vpack.c.b16 %v4851_v54, %v4851_v54  ;;  %v4868_v43 = vrot.slane %v4867_v38, 7  ;;  %v4873_v10 = vpack.c.b16 %v4872_v39, %v4872_v39 }
 0x5b3   :  { %v4878_v6 = vsel %vm4834_vm7, %v4877_v28, %v4876_v1  ;;  %v5431_v28 = vlaneseq }
 0x5b4   :  { %4862 = vrot.lane.b32.xlu1 %v4861_v4, %s6657_s14  ;;  %4853 = vrot.lane.b32.xlu0 %v4852_v56, %s6657_s14  ;;  %v4869_v21 = vsel %vm4834_vm7, %v4868_v43, %v4866_v49  ;;  %v4879_v29 = vpack.c.b16 %v4878_v6, %v4878_v6 }
 0x5b5   :  { %v4870_v20 = vpack.c.b16 %v4869_v21, %v4869_v21  ;;  %v5432_v4 = vand.u32 127, %v5431_v28 }
 0x5b7   :  { %vm5433_vm8 = vcmp.eq.s32.totalorder %v5432_v4, 0 }
 0x5b8   :  { %4874 = vrot.lane.b32.xlu0 %v4873_v10, %s6657_s14  ;;  %s5450_s14 = sld [smem:[#allocation2 + $0x3]] }
 0x61e   :  { %v4841_v61 = vpop.permute.xlu1 %4840 }
 0x61f   :  { %v4883_v22 = vsel %vm4880_vm2, %v4836_v13, %v4841_v61 }
 0x626   :  { %v4854_v59 = vpop.permute.xlu0 %4853  ;;  %v4863_v46 = vpop.permute.xlu1 %4862 }
 0x627   :  { %v4887_v2 = vsel %vm4880_vm2, %v4845_v41, %v4854_v59  ;;  %v4891_v35 = vsel %vm4880_vm2, %v4857_v27, %v4863_v46 }
 0x628   :  { %5227 = vmatprep.mubr.bf16.mxu0 %v4887_v2 }
 0x629   :  { %5228 = vmatmul.mubr.bf16.vlgmr.msra.gmra.mrb[144].mxu0 %v4883_v22 }
 0x62a   :  { %6365 = vmatpush3.bf16.msra.mxu0 %v6615_v14  ;;  %v4875_v5 = vpop.permute.xlu0 %4874  ;;  %6372 = vmatprep.mubr.msk.bf16.mxu0 %vm6655_vm15, %v6654_v51 }
 0x62b   :  { %v4895_v57 = vsel %vm4880_vm2, %v4870_v20, %v4875_v5  ;;  %6366 = vmatprep.subr.bf16.mxu0 %v6654_v51 }
 0x62c   :  { %5267 = vmatprep.mubr.bf16.mxu1 %v4895_v57 }
 0x62d   :  { %5268 = vmatmul.mubr.bf16.vlgmr.msra.gmra.mrb[60].mxu1 %v4891_v35 }
 0x62e   :  { %6367 = vmatpush3.bf16.msra.mxu0 %v6617_v36  ;;  %6377 = vmatpush3.bf16.msra.mxu1 %v6620_v16 }
 0x62f   :  { %6368 = vmatprep.subr.bf16.mxu0 %v6654_v51  ;;  %6378 = vmatprep.subr.bf16.mxu1 %v6654_v51 }
 0x630   :  { %6392 = vmatprep.mubr.msk.bf16.mxu1 %vm6655_vm15, %v6654_v51 }
 0x632   :  { %6369 = vmatpush3.bf16.msra.mxu0 %v6618_v24  ;;  %6379 = vmatpush3.bf16.msra.mxu1 %v6621_v18 }
 0x633   :  { %6370 = vmatprep.subr.bf16.mxu0 %v6654_v51  ;;  %6380 = vmatprep.subr.bf16.mxu1 %v6654_v51 }
 0x636   :  { %6371 = vmatpush3.bf16.msra.mxu0 %v6619_v7  ;;  %6381 = vmatpush3.bf16.msra.mxu1 %v6622_v19 }
 0x637   :  { %6382 = vmatprep.subr.bf16.mxu1 %v6654_v51 }
 0x639   :  { %6373 = vmatmul.mubr.msk.bf16.vlgmr.msra.gmra.mrb[148].mxu0 %vm4880_vm2, %v4879_v29 }
 0x63a   :  { %6383 = vmatpush3.bf16.msra.mxu1 %v6623_v45 }
 0x63b   :  { %6384 = vmatprep.subr.bf16.mxu1 %v6654_v51 }
 0x63e   :  { %6385 = vmatpush3.bf16.msra.mxu1 %v6624_v53 }
 0x63f   :  { %6386 = vmatprep.subr.bf16.mxu1 %v6654_v51 }
 0x642   :  { %6387 = vmatpush3.bf16.msra.mxu1 %v6625_v60 }
 0x643   :  { %6388 = vmatprep.subr.bf16.mxu1 %v6654_v51 }
 0x646   :  { %6389 = vmatpush3.bf16.msra.mxu1 %v6626_v31 }
 0x647   :  { %6390 = vmatprep.subr.bf16.mxu1 %v6654_v51  ;;  %v5316_v51 = vstv %s5450_s14 }
 0x64a   :  { %6391 = vmatpush3.bf16.msra.mxu1 %v6627_v3 }
 0x6fc   :  { %v5982_v0 = vpop.f32.mrb[144].mxu0 }
 0x6fd   :  { %v5983_v33 = vpop.f32.mrb[145].mxu0 }
 0x6fe   :  { %v5984_v49 = vadd.f32 %v5983_v33, %v5982_v0  ;;  %v5985_v34 = vpop.f32.mrb[146].mxu0 }
 0x6ff   :  { %v5986_v62 = vpop.f32.mrb[147].mxu0 }
 0x700   :  { %v6004_v23 = vpop.f32.mrb[60].mxu1  ;;  %v5230_v9 = vadd.f32 %v5984_v49, %v5742_v58 }
 0x701   :  { %v6005_v30 = vpop.f32.mrb[61].mxu1 }
 0x702   :  { %v6006_v32 = vadd.f32 %v6005_v30, %v6004_v23  ;;  %v6007_v40 = vpop.f32.mrb[62].mxu1 }
 0x703   :  { %v6008_v42 = vpop.f32.mrb[63].mxu1 }
 0x704   :  { %v5270_v48 = vadd.f32 %v6006_v32, %v5230_v9 }
 0x70c   :  { %v5309_v25 = vpop.f32.mrb[148].mxu0 }
 0x70d   :  { %v5310_v26 = vadd.f32 %v5309_v25, %v5270_v48  ;;  %v6374_v8 = vpop.f32.mrb[149].mxu0 }
 0x70e   :  { %v5312_v15 = vpop.f32.mrb[150].mxu0 }
 0x70f   :  { %vm5315_vm15 = vcmp.ge.f32.partialorder %v5310_v26, 0.0  ;;  %v5317_v52 = vmul.f32 %v5316_v51, %v5310_v26  ;;  %v6375_v11 = vpop.f32.mrb[151].mxu0 }
 0x711   :  { %v5318_v55 = vsel %vm5315_vm15, %v5310_v26, %v5317_v52 }
 0x712   :  { %v5319_v47 = vpack.c.bf16 %v5318_v55, %v5318_v55 }
 0x714   :  { %6393 = vmatmul.mubr.bf16.vlgmr.msra.gmra.mrb[64].mxu1 %v5319_v47 }
 0x7e7   :  { %v5425_v44 = vpop.f32.mrb[64].mxu1 }
 0x7e8   :  { %v5426_v38 = vadd.f32 %v5780_v50, %v5425_v44  ;;  %v6394_v17 = vpop.f32.mrb[65].mxu1 }
 0x7e9   :  { %v5428_v37 = vpop.f32.mrb[66].mxu1 }
 0x7ea   :  { %v5789_v12 = vmul.f32 -1.442695, %v5426_v38  ;;  %v6395_v63 = vpop.f32.mrb[67].mxu1 }
 0x7ec   :  { %6628 = vpow2.f32 %v5789_v12 }
 0x7f6   :  { %v6629_v54 = vpop.eup %6628 }
 0x7f7   :  { %v5437_v39 = vadd.f32 1.0, %v6629_v54 }
 0x7f9   :  { %6630 = vrcp.f32 %v5437_v39 }
 0x803   :  { %v6631_v56 = vpop.eup %6630 }
 0x804   :  { %v5440_v43 = vsel %vm5433_vm8, %v6631_v56, %v5426_v38 }
 0x805   :  { %5442 = vst.msk [vmem:[%s9570_s12] sm:$0x3] %vm5441_vm9, %v5440_v43 }
 0x806   :  { %5447 = vsyncpa [#allocation3], 1 }

</bundles_post_ra>
